<compile_context>
chip_gen: v6e
topology: v6e:2x2x1
jax: 0.10.0
libtpu: 0.0.40
codegen_flags: <defaults>
</compile_context>

<pallas_src>
import math

import jax
import jax.numpy as jnp
from jax.experimental import pallas as pl
from jax.experimental.pallas import tpu as pltpu

# ----------------------------- config (small ViT) ---------------------------
BATCH = 2
IN_CH = 3
IMG = 16
PATCH = 4
NUM_PATCHES = (IMG // PATCH) ** 2          # 16
SEQ = NUM_PATCHES + 1                      # +1 for [CLS] -> 17
HIDDEN = 32
NUM_HEADS = 2
HEAD_DIM = HIDDEN // NUM_HEADS             # 16
MLP_DIM = 64
NUM_LAYERS = 2
NUM_CLASSES = 8
LN_EPS = 1e-6

_VMEM_SPEC = pl.BlockSpec(memory_space=pltpu.MemorySpace.VMEM)


# ------------------------------ fused Pallas kernel ---------------------------
def _vit_forward_kernel(
    # activations
    patches_ref,                                   # (B*NP, C*P*P)
    # global params
    patch_w_ref, patch_b_ref, cls_tok_ref, pos_ref,
    lnf_g_ref, lnf_b_ref, head_w_ref, head_b_ref,
    # per-layer params, stacked along a leading (NUM_LAYERS, ...) axis
    ln1_g_ref, ln1_b_ref, wqkv_ref, bqkv_ref, wo_ref, bo_ref,
    ln2_g_ref, ln2_b_ref, w1_ref, b1_ref, w2_ref, b2_ref,
    # output
    logits_ref,                                    # (B, NUM_CLASSES)
    # scratch
    x_ref,                                         # (B*SEQ, HIDDEN) token slab
    attn_ref,                                      # (B*SEQ, HIDDEN) attn assembly
):
    f32 = jnp.float32
    bf16 = jnp.bfloat16

    def mm(a, w):
        # bf16 MXU inputs, f32 accumulation
        return jnp.dot(a.astype(bf16), w.astype(bf16), preferred_element_type=f32)

    def mm_nt(a, bmat):
        # a @ bmat.T without an explicit transpose (contract last dims on MXU)
        return jax.lax.dot_general(
            a.astype(bf16), bmat.astype(bf16),
            dimension_numbers=(((1,), (1,)), ((), ())),
            preferred_element_type=f32)

    def ln(x, gamma, beta):
        mu = jnp.mean(x, axis=-1, keepdims=True)
        var = jnp.mean(jnp.square(x - mu), axis=-1, keepdims=True)
        return (x - mu) * jax.lax.rsqrt(var + LN_EPS) * gamma + beta

    # ---- patch embedding: conv(k=stride=PATCH) as a single matmul ----
    tok = mm(patches_ref[...], patch_w_ref[...]) + patch_b_ref[...]   # (B*NP, D)

    # ---- assemble tokens: [CLS] + patch tokens, add positional embedding ----
    pos = pos_ref[...]                                   # (SEQ, D)
    cls_row = cls_tok_ref[...] + pos[0:1, :]             # (1, D)
    for b in range(BATCH):
        x_ref[pl.ds(b * SEQ, 1), :] = cls_row
        x_ref[pl.ds(b * SEQ + 1, NUM_PATCHES), :] = (
            tok[b * NUM_PATCHES:(b + 1) * NUM_PATCHES, :] + pos[1:, :])

    x = x_ref[...]                                       # (B*SEQ, D), f32
    scale = 1.0 / math.sqrt(HEAD_DIM)

    # ---- transformer encoder layers (fully unrolled, all weights in VMEM) ----
    for li in range(NUM_LAYERS):
        # -- attention sub-block (pre-LN) --
        h = ln(x, ln1_g_ref[li], ln1_b_ref[li])
        qkv = mm(h, wqkv_ref[li]) + bqkv_ref[li]         # (B*SEQ, 3D)
        q = qkv[:, 0:HIDDEN]
        k = qkv[:, HIDDEN:2 * HIDDEN]
        v = qkv[:, 2 * HIDDEN:3 * HIDDEN]

        # head split done in-kernel via static slices; unrolled (batch, head) loop
        for b in range(BATCH):
            for hd in range(NUM_HEADS):
                r0 = b * SEQ
                c0 = hd * HEAD_DIM
                qh = q[r0:r0 + SEQ, c0:c0 + HEAD_DIM]    # (SEQ, Dh)
                kh = k[r0:r0 + SEQ, c0:c0 + HEAD_DIM]
                vh = v[r0:r0 + SEQ, c0:c0 + HEAD_DIM]
                s = mm_nt(qh, kh) * scale                # (SEQ, SEQ), f32
                m = jnp.max(s, axis=-1, keepdims=True)
                p = jnp.exp(s - m)
                p = p * pl.reciprocal(jnp.sum(p, axis=-1, keepdims=True),
                                      approx=True)
                attn_ref[pl.ds(r0, SEQ), pl.ds(c0, HEAD_DIM)] = mm(p, vh)

        x = x + mm(attn_ref[...], wo_ref[li]) + bo_ref[li]   # output proj + residual

        # -- MLP sub-block (pre-LN, fused GELU) --
        h2 = ln(x, ln2_g_ref[li], ln2_b_ref[li])
        m1 = mm(h2, w1_ref[li]) + b1_ref[li]             # (B*SEQ, MLP_DIM), f32
        # TODO(synk): HF ViT default is exact erf-GELU; tanh approximation
        # differs from the PyTorch reference at the ~1e-3 level.
        m1 = 0.5 * m1 * (1.0 + jnp.tanh(
            0.7978845608028654 * (m1 + 0.044715 * m1 * m1 * m1)))
        x = x + mm(m1, w2_ref[li]) + b2_ref[li]          # residual

    # ---- final LayerNorm + classifier head on the [CLS] rows only ----
    lnf_g = lnf_g_ref[...]
    lnf_b = lnf_b_ref[...]
    head_w = head_w_ref[...]
    head_b = head_b_ref[...]
    for b in range(BATCH):
        row = ln(x[b * SEQ:b * SEQ + 1, :], lnf_g, lnf_b)     # (1, D)
        logits_ref[pl.ds(b, 1), :] = (mm(row, head_w) + head_b).astype(logits_ref.dtype)


# ------------------------------ parameter init --------------------------------
def init_params(key):
    def nrm(k, shape, std=0.02):
        return (std * jax.random.normal(k, shape)).astype(jnp.float32)

    ks = jax.random.split(key, 8)
    L, D, M3, M = NUM_LAYERS, HIDDEN, 3 * HIDDEN, MLP_DIM
    return {
        # conv2d(C, HIDDEN, kernel=PATCH, stride=PATCH) expressed as a matmul
        "patch_w": nrm(ks[0], (IN_CH * PATCH * PATCH, D)),
        "patch_b": jnp.zeros((1, D), jnp.float32),
        "cls_token": nrm(ks[1], (1, D)),
        "pos_emb": nrm(ks[2], (SEQ, D)),
        "ln_f_g": jnp.ones((1, D), jnp.float32),
        "ln_f_b": jnp.zeros((1, D), jnp.float32),
        "cls_w": nrm(ks[3], (D, NUM_CLASSES)),
        "cls_b": jnp.zeros((1, NUM_CLASSES), jnp.float32),
        # per-layer params stacked along a leading NUM_LAYERS axis
        "ln1_g": jnp.ones((L, 1, D), jnp.float32),
        "ln1_b": jnp.zeros((L, 1, D), jnp.float32),
        "wqkv": nrm(ks[4], (L, D, M3)),       # [Wq | Wk | Wv] concatenated on N
        "bqkv": jnp.zeros((L, 1, M3), jnp.float32),
        "wo": nrm(ks[5], (L, D, D)),
        "bo": jnp.zeros((L, 1, D), jnp.float32),
        "ln2_g": jnp.ones((L, 1, D), jnp.float32),
        "ln2_b": jnp.zeros((L, 1, D), jnp.float32),
        "w1": nrm(ks[6], (L, D, M)),
        "b1": jnp.zeros((L, 1, M), jnp.float32),
        "w2": nrm(ks[7], (L, M, D)),
        "b2": jnp.zeros((L, 1, D), jnp.float32),
    }


# ------------------------------ forward pass ----------------------------------
def vit_classifier_forward(params, img):
    """img: (B, C, H, W) float32 (NCHW, PyTorch convention). Returns (B, NUM_CLASSES) logits."""
    b = img.shape[0]
    assert b == BATCH, "kernel is specialized to BATCH"

    # patch extraction (pure layout plumbing); flatten order (c, u, v) matches
    # torch conv weight (D, C, p, p).reshape(D, -1).T
    nh = IMG // PATCH
    patches = img.reshape(b, IN_CH, nh, PATCH, nh, PATCH)
    patches = patches.transpose(0, 2, 4, 1, 3, 5)
    patches = patches.reshape(b * NUM_PATCHES, IN_CH * PATCH * PATCH)

    args = [
        patches,
        params["patch_w"], params["patch_b"], params["cls_token"], params["pos_emb"],
        params["ln_f_g"], params["ln_f_b"], params["cls_w"], params["cls_b"],
        params["ln1_g"], params["ln1_b"], params["wqkv"], params["bqkv"],
        params["wo"], params["bo"], params["ln2_g"], params["ln2_b"],
        params["w1"], params["b1"], params["w2"], params["b2"],
    ]

    return pl.pallas_call(
        _vit_forward_kernel,
        out_shape=jax.ShapeDtypeStruct((b, NUM_CLASSES), jnp.float32),
        in_specs=[_VMEM_SPEC] * len(args),
        out_specs=_VMEM_SPEC,
        scratch_shapes=[
            pltpu.VMEM((b * SEQ, HIDDEN), jnp.float32),   # token slab
            pltpu.VMEM((b * SEQ, HIDDEN), jnp.float32),   # attention assembly
        ],
        # TODO(synk): for a real-size ViT (D=768, 12 layers) the all-resident
        # design must switch to a per-layer weight pipeline (grid axis over
        # layers / emit_pipeline), especially on v7x's 64 MiB VMEM.
    )(*args)


# ----------------------------------- main --------------------------------------
if __name__ == "__main__":
    key = jax.random.PRNGKey(0)
    k_param, k_img = jax.random.split(key)
    params = init_params(k_param)
    img = jax.random.normal(k_img, (BATCH, IN_CH, IMG, IMG), dtype=jnp.float32)

    logits = jax.jit(vit_classifier_forward)(params, img)
    jax.block_until_ready(logits)

    assert logits.shape == (BATCH, NUM_CLASSES)
    assert bool(jnp.all(jnp.isfinite(logits)))
    print("KERNEL_OK")
</pallas_src>

<mosaic_0001>
module attributes {stable_mosaic.version = 11 : i64} {
  func.func @_vit_forward_kernel(%arg0: memref<32x48xf32, #tpu.memory_space<vmem>>, %arg1: memref<48x32xf32, #tpu.memory_space<vmem>>, %arg2: memref<1x32xf32, #tpu.memory_space<vmem>>, %arg3: memref<1x32xf32, #tpu.memory_space<vmem>>, %arg4: memref<17x32xf32, #tpu.memory_space<vmem>>, %arg5: memref<1x32xf32, #tpu.memory_space<vmem>>, %arg6: memref<1x32xf32, #tpu.memory_space<vmem>>, %arg7: memref<32x8xf32, #tpu.memory_space<vmem>>, %arg8: memref<1x8xf32, #tpu.memory_space<vmem>>, %arg9: memref<2x1x32xf32, #tpu.memory_space<vmem>>, %arg10: memref<2x1x32xf32, #tpu.memory_space<vmem>>, %arg11: memref<2x32x96xf32, #tpu.memory_space<vmem>>, %arg12: memref<2x1x96xf32, #tpu.memory_space<vmem>>, %arg13: memref<2x32x32xf32, #tpu.memory_space<vmem>>, %arg14: memref<2x1x32xf32, #tpu.memory_space<vmem>>, %arg15: memref<2x1x32xf32, #tpu.memory_space<vmem>>, %arg16: memref<2x1x32xf32, #tpu.memory_space<vmem>>, %arg17: memref<2x32x64xf32, #tpu.memory_space<vmem>>, %arg18: memref<2x1x64xf32, #tpu.memory_space<vmem>>, %arg19: memref<2x64x32xf32, #tpu.memory_space<vmem>>, %arg20: memref<2x1x32xf32, #tpu.memory_space<vmem>>, %arg21: memref<2x8xf32, #tpu.memory_space<vmem>>, %arg22: memref<34x32xf32, #tpu.memory_space<vmem>>, %arg23: memref<34x32xf32, #tpu.memory_space<vmem>>) attributes {dimension_semantics = [], scalar_prefetch = 0 : i64, scratch_operands = 2 : i64, tpu.core_type = #tpu.core_type<tc>} {
    %c0 = arith.constant 0 : index
    %c0_0 = arith.constant 0 : index
    %0 = vector.load %arg0[%c0, %c0_0] : memref<32x48xf32, #tpu.memory_space<vmem>>, vector<32x48xf32>
    %c0_1 = arith.constant 0 : index
    %c0_2 = arith.constant 0 : index
    %1 = vector.load %arg1[%c0_1, %c0_2] : memref<48x32xf32, #tpu.memory_space<vmem>>, vector<48x32xf32>
    %2 = arith.truncf %0 : vector<32x48xf32> to vector<32x48xbf16>
    %3 = arith.truncf %1 : vector<48x32xf32> to vector<48x32xbf16>
    %cst = arith.constant dense<0.000000e+00> : vector<32x32xf32>
    %4 = tpu.matmul %2, %3, %cst {dimension_numbers = #tpu.dot_dimension_numbers<[1], [0], [0], [1], [0, 0, 1, 1], [], []>} : vector<32x48xbf16>, vector<48x32xbf16>, vector<32x32xf32> -> vector<32x32xf32>
    %c0_3 = arith.constant 0 : index
    %c0_4 = arith.constant 0 : index
    %5 = vector.load %arg2[%c0_3, %c0_4] : memref<1x32xf32, #tpu.memory_space<vmem>>, vector<1x32xf32>
    %6 = vector.broadcast %5 : vector<1x32xf32> to vector<32x32xf32>
    %7 = arith.addf %4, %6 : vector<32x32xf32>
    %c0_5 = arith.constant 0 : index
    %c0_6 = arith.constant 0 : index
    %8 = vector.load %arg4[%c0_5, %c0_6] : memref<17x32xf32, #tpu.memory_space<vmem>>, vector<17x32xf32>
    %c0_7 = arith.constant 0 : index
    %c0_8 = arith.constant 0 : index
    %9 = vector.load %arg3[%c0_7, %c0_8] : memref<1x32xf32, #tpu.memory_space<vmem>>, vector<1x32xf32>
    %10 = vector.extract_strided_slice %8 {offsets = [0, 0], sizes = [1, 32], strides = [1, 1]} : vector<17x32xf32> to vector<1x32xf32>
    %11 = arith.addf %9, %10 : vector<1x32xf32>
    %c0_9 = arith.constant 0 : index
    %c0_10 = arith.constant 0 : index
    %12 = vector.load %arg22[%c0_9, %c0_10] : memref<34x32xf32, #tpu.memory_space<vmem>>, vector<1x32xf32>
    tpu.vector_store %arg22[%c0_9, %c0_10], %11 {strides = array<i32>} : memref<34x32xf32, #tpu.memory_space<vmem>>, vector<1x32xf32>,
    %13 = vector.extract_strided_slice %7 {offsets = [0, 0], sizes = [16, 32], strides = [1, 1]} : vector<32x32xf32> to vector<16x32xf32>
    %14 = vector.extract_strided_slice %8 {offsets = [1, 0], sizes = [16, 32], strides = [1, 1]} : vector<17x32xf32> to vector<16x32xf32>
    %15 = arith.addf %13, %14 : vector<16x32xf32>
    %c1 = arith.constant 1 : index
    %c0_11 = arith.constant 0 : index
    %16 = vector.load %arg22[%c1, %c0_11] : memref<34x32xf32, #tpu.memory_space<vmem>>, vector<16x32xf32>
    tpu.vector_store %arg22[%c1, %c0_11], %15 {strides = array<i32>} : memref<34x32xf32, #tpu.memory_space<vmem>>, vector<16x32xf32>,
    %c17 = arith.constant 17 : index
    %c0_12 = arith.constant 0 : index
    %17 = vector.load %arg22[%c17, %c0_12] : memref<34x32xf32, #tpu.memory_space<vmem>>, vector<1x32xf32>
    tpu.vector_store %arg22[%c17, %c0_12], %11 {strides = array<i32>} : memref<34x32xf32, #tpu.memory_space<vmem>>, vector<1x32xf32>,
    %18 = vector.extract_strided_slice %7 {offsets = [16, 0], sizes = [16, 32], strides = [1, 1]} : vector<32x32xf32> to vector<16x32xf32>
    %19 = vector.extract_strided_slice %8 {offsets = [1, 0], sizes = [16, 32], strides = [1, 1]} : vector<17x32xf32> to vector<16x32xf32>
    %20 = arith.addf %18, %19 : vector<16x32xf32>
    %c18 = arith.constant 18 : index
    %c0_13 = arith.constant 0 : index
    %21 = vector.load %arg22[%c18, %c0_13] : memref<34x32xf32, #tpu.memory_space<vmem>>, vector<16x32xf32>
    tpu.vector_store %arg22[%c18, %c0_13], %20 {strides = array<i32>} : memref<34x32xf32, #tpu.memory_space<vmem>>, vector<16x32xf32>,
    %c0_14 = arith.constant 0 : index
    %c0_15 = arith.constant 0 : index
    %22 = vector.load %arg22[%c0_14, %c0_15] : memref<34x32xf32, #tpu.memory_space<vmem>>, vector<34x32xf32>
    %c0_16 = arith.constant 0 : index
    %c0_17 = arith.constant 0 : index
    %c0_18 = arith.constant 0 : index
    %23 = vector.load %arg9[%c0_16, %c0_17, %c0_18] : memref<2x1x32xf32, #tpu.memory_space<vmem>>, vector<1x1x32xf32>
    %24 = vector.shape_cast %23 : vector<1x1x32xf32> to vector<1x32xf32>
    %c0_19 = arith.constant 0 : index
    %c0_20 = arith.constant 0 : index
    %c0_21 = arith.constant 0 : index
    %25 = vector.load %arg10[%c0_19, %c0_20, %c0_21] : memref<2x1x32xf32, #tpu.memory_space<vmem>>, vector<1x1x32xf32>
    %26 = vector.shape_cast %25 : vector<1x1x32xf32> to vector<1x32xf32>
    %cst_22 = arith.constant dense<0.000000e+00> : vector<34xf32>
    %27 = vector.multi_reduction <add>, %22, %cst_22 [1] : vector<34x32xf32> to vector<34xf32>
    %28 = vector.shape_cast %27 : vector<34xf32> to vector<34x1xf32>
    %cst_23 = arith.constant 3.200000e+01 : f32
    %29 = vector.broadcast %cst_23 : f32 to vector<34x1xf32>
    %30 = arith.divf %28, %29 : vector<34x1xf32>
    %31 = vector.broadcast %30 : vector<34x1xf32> to vector<34x32xf32>
    %32 = arith.subf %22, %31 : vector<34x32xf32>
    %33 = arith.mulf %32, %32 : vector<34x32xf32>
    %cst_24 = arith.constant dense<0.000000e+00> : vector<34xf32>
    %34 = vector.multi_reduction <add>, %33, %cst_24 [1] : vector<34x32xf32> to vector<34xf32>
    %35 = vector.shape_cast %34 : vector<34xf32> to vector<34x1xf32>
    %cst_25 = arith.constant 3.200000e+01 : f32
    %36 = vector.broadcast %cst_25 : f32 to vector<34x1xf32>
    %37 = arith.divf %35, %36 : vector<34x1xf32>
    %38 = vector.broadcast %30 : vector<34x1xf32> to vector<34x32xf32>
    %39 = arith.subf %22, %38 : vector<34x32xf32>
    %cst_26 = arith.constant 9.99999997E-7 : f32
    %40 = vector.broadcast %cst_26 : f32 to vector<34x1xf32>
    %41 = arith.addf %37, %40 : vector<34x1xf32>
    %42 = math.rsqrt %41 : vector<34x1xf32>
    %43 = vector.broadcast %42 : vector<34x1xf32> to vector<34x32xf32>
    %44 = arith.mulf %39, %43 : vector<34x32xf32>
    %45 = vector.broadcast %24 : vector<1x32xf32> to vector<34x32xf32>
    %46 = arith.mulf %44, %45 : vector<34x32xf32>
    %47 = vector.broadcast %26 : vector<1x32xf32> to vector<34x32xf32>
    %48 = arith.addf %46, %47 : vector<34x32xf32>
    %c0_27 = arith.constant 0 : index
    %c0_28 = arith.constant 0 : index
    %c0_29 = arith.constant 0 : index
    %49 = vector.load %arg11[%c0_27, %c0_28, %c0_29] : memref<2x32x96xf32, #tpu.memory_space<vmem>>, vector<1x32x96xf32>
    %50 = vector.shape_cast %49 : vector<1x32x96xf32> to vector<32x96xf32>
    %51 = arith.truncf %48 : vector<34x32xf32> to vector<34x32xbf16>
    %52 = arith.truncf %50 : vector<32x96xf32> to vector<32x96xbf16>
    %cst_30 = arith.constant dense<0.000000e+00> : vector<34x96xf32>
    %53 = tpu.matmul %51, %52, %cst_30 {dimension_numbers = #tpu.dot_dimension_numbers<[1], [0], [0], [1], [0, 0, 1, 1], [], []>} : vector<34x32xbf16>, vector<32x96xbf16>, vector<34x96xf32> -> vector<34x96xf32>
    %c0_31 = arith.constant 0 : index
    %c0_32 = arith.constant 0 : index
    %c0_33 = arith.constant 0 : index
    %54 = vector.load %arg12[%c0_31, %c0_32, %c0_33] : memref<2x1x96xf32, #tpu.memory_space<vmem>>, vector<1x1x96xf32>
    %55 = vector.shape_cast %54 : vector<1x1x96xf32> to vector<1x96xf32>
    %56 = vector.broadcast %55 : vector<1x96xf32> to vector<34x96xf32>
    %57 = arith.addf %53, %56 : vector<34x96xf32>
    %58 = vector.extract_strided_slice %57 {offsets = [0, 0], sizes = [34, 32], strides = [1, 1]} : vector<34x96xf32> to vector<34x32xf32>
    %59 = vector.extract_strided_slice %57 {offsets = [0, 32], sizes = [34, 32], strides = [1, 1]} : vector<34x96xf32> to vector<34x32xf32>
    %60 = vector.extract_strided_slice %57 {offsets = [0, 64], sizes = [34, 32], strides = [1, 1]} : vector<34x96xf32> to vector<34x32xf32>
    %61 = vector.extract_strided_slice %58 {offsets = [0, 0], sizes = [17, 16], strides = [1, 1]} : vector<34x32xf32> to vector<17x16xf32>
    %62 = vector.extract_strided_slice %59 {offsets = [0, 0], sizes = [17, 16], strides = [1, 1]} : vector<34x32xf32> to vector<17x16xf32>
    %63 = vector.extract_strided_slice %60 {offsets = [0, 0], sizes = [17, 16], strides = [1, 1]} : vector<34x32xf32> to vector<17x16xf32>
    %64 = arith.truncf %61 : vector<17x16xf32> to vector<17x16xbf16>
    %65 = arith.truncf %62 : vector<17x16xf32> to vector<17x16xbf16>
    %cst_34 = arith.constant dense<0.000000e+00> : vector<17x17xf32>
    %66 = tpu.matmul %64, %65, %cst_34 {dimension_numbers = #tpu.dot_dimension_numbers<[1], [1], [0], [0], [0, 0, 1, 0], [], []>} : vector<17x16xbf16>, vector<17x16xbf16>, vector<17x17xf32> -> vector<17x17xf32>
    %cst_35 = arith.constant 2.500000e-01 : f32
    %67 = vector.broadcast %cst_35 : f32 to vector<17x17xf32>
    %68 = arith.mulf %66, %67 : vector<17x17xf32>
    %cst_36 = arith.constant dense<0xFF800000> : vector<17xf32>
    %69 = vector.multi_reduction <maximumf>, %68, %cst_36 [1] : vector<17x17xf32> to vector<17xf32>
    %70 = vector.shape_cast %69 : vector<17xf32> to vector<17x1xf32>
    %71 = vector.broadcast %70 : vector<17x1xf32> to vector<17x17xf32>
    %72 = arith.subf %68, %71 : vector<17x17xf32>
    %73 = math.exp %72 : vector<17x17xf32>
    %cst_37 = arith.constant dense<0.000000e+00> : vector<17xf32>
    %74 = vector.multi_reduction <add>, %73, %cst_37 [1] : vector<17x17xf32> to vector<17xf32>
    %75 = vector.shape_cast %74 : vector<17xf32> to vector<17x1xf32>
    %76 = tpu.reciprocal %75 {approx = true} : vector<17x1xf32> -> vector<17x1xf32>
    %77 = vector.broadcast %76 : vector<17x1xf32> to vector<17x17xf32>
    %78 = arith.mulf %73, %77 : vector<17x17xf32>
    %79 = arith.truncf %78 : vector<17x17xf32> to vector<17x17xbf16>
    %80 = arith.truncf %63 : vector<17x16xf32> to vector<17x16xbf16>
    %cst_38 = arith.constant dense<0.000000e+00> : vector<17x16xf32>
    %81 = tpu.matmul %79, %80, %cst_38 {dimension_numbers = #tpu.dot_dimension_numbers<[1], [0], [0], [1], [0, 0, 1, 1], [], []>} : vector<17x17xbf16>, vector<17x16xbf16>, vector<17x16xf32> -> vector<17x16xf32>
    %c0_39 = arith.constant 0 : index
    %c0_40 = arith.constant 0 : index
    %82 = vector.load %arg23[%c0_39, %c0_40] : memref<34x32xf32, #tpu.memory_space<vmem>>, vector<17x16xf32>
    tpu.vector_store %arg23[%c0_39, %c0_40], %81 {strides = array<i32>} : memref<34x32xf32, #tpu.memory_space<vmem>>, vector<17x16xf32>,
    %83 = vector.extract_strided_slice %58 {offsets = [0, 16], sizes = [17, 16], strides = [1, 1]} : vector<34x32xf32> to vector<17x16xf32>
    %84 = vector.extract_strided_slice %59 {offsets = [0, 16], sizes = [17, 16], strides = [1, 1]} : vector<34x32xf32> to vector<17x16xf32>
    %85 = vector.extract_strided_slice %60 {offsets = [0, 16], sizes = [17, 16], strides = [1, 1]} : vector<34x32xf32> to vector<17x16xf32>
    %86 = arith.truncf %83 : vector<17x16xf32> to vector<17x16xbf16>
    %87 = arith.truncf %84 : vector<17x16xf32> to vector<17x16xbf16>
    %cst_41 = arith.constant dense<0.000000e+00> : vector<17x17xf32>
    %88 = tpu.matmul %86, %87, %cst_41 {dimension_numbers = #tpu.dot_dimension_numbers<[1], [1], [0], [0], [0, 0, 1, 0], [], []>} : vector<17x16xbf16>, vector<17x16xbf16>, vector<17x17xf32> -> vector<17x17xf32>
    %cst_42 = arith.constant 2.500000e-01 : f32
    %89 = vector.broadcast %cst_42 : f32 to vector<17x17xf32>
    %90 = arith.mulf %88, %89 : vector<17x17xf32>
    %cst_43 = arith.constant dense<0xFF800000> : vector<17xf32>
    %91 = vector.multi_reduction <maximumf>, %90, %cst_43 [1] : vector<17x17xf32> to vector<17xf32>
    %92 = vector.shape_cast %91 : vector<17xf32> to vector<17x1xf32>
    %93 = vector.broadcast %92 : vector<17x1xf32> to vector<17x17xf32>
    %94 = arith.subf %90, %93 : vector<17x17xf32>
    %95 = math.exp %94 : vector<17x17xf32>
    %cst_44 = arith.constant dense<0.000000e+00> : vector<17xf32>
    %96 = vector.multi_reduction <add>, %95, %cst_44 [1] : vector<17x17xf32> to vector<17xf32>
    %97 = vector.shape_cast %96 : vector<17xf32> to vector<17x1xf32>
    %98 = tpu.reciprocal %97 {approx = true} : vector<17x1xf32> -> vector<17x1xf32>
    %99 = vector.broadcast %98 : vector<17x1xf32> to vector<17x17xf32>
    %100 = arith.mulf %95, %99 : vector<17x17xf32>
    %101 = arith.truncf %100 : vector<17x17xf32> to vector<17x17xbf16>
    %102 = arith.truncf %85 : vector<17x16xf32> to vector<17x16xbf16>
    %cst_45 = arith.constant dense<0.000000e+00> : vector<17x16xf32>
    %103 = tpu.matmul %101, %102, %cst_45 {dimension_numbers = #tpu.dot_dimension_numbers<[1], [0], [0], [1], [0, 0, 1, 1], [], []>} : vector<17x17xbf16>, vector<17x16xbf16>, vector<17x16xf32> -> vector<17x16xf32>
    %c0_46 = arith.constant 0 : index
    %c16 = arith.constant 16 : index
    %104 = vector.load %arg23[%c0_46, %c16] : memref<34x32xf32, #tpu.memory_space<vmem>>, vector<17x16xf32>
    tpu.vector_store %arg23[%c0_46, %c16], %103 {strides = array<i32>} : memref<34x32xf32, #tpu.memory_space<vmem>>, vector<17x16xf32>,
    %105 = vector.extract_strided_slice %58 {offsets = [17, 0], sizes = [17, 16], strides = [1, 1]} : vector<34x32xf32> to vector<17x16xf32>
    %106 = vector.extract_strided_slice %59 {offsets = [17, 0], sizes = [17, 16], strides = [1, 1]} : vector<34x32xf32> to vector<17x16xf32>
    %107 = vector.extract_strided_slice %60 {offsets = [17, 0], sizes = [17, 16], strides = [1, 1]} : vector<34x32xf32> to vector<17x16xf32>
    %108 = arith.truncf %105 : vector<17x16xf32> to vector<17x16xbf16>
    %109 = arith.truncf %106 : vector<17x16xf32> to vector<17x16xbf16>
    %cst_47 = arith.constant dense<0.000000e+00> : vector<17x17xf32>
    %110 = tpu.matmul %108, %109, %cst_47 {dimension_numbers = #tpu.dot_dimension_numbers<[1], [1], [0], [0], [0, 0, 1, 0], [], []>} : vector<17x16xbf16>, vector<17x16xbf16>, vector<17x17xf32> -> vector<17x17xf32>
    %cst_48 = arith.constant 2.500000e-01 : f32
    %111 = vector.broadcast %cst_48 : f32 to vector<17x17xf32>
    %112 = arith.mulf %110, %111 : vector<17x17xf32>
    %cst_49 = arith.constant dense<0xFF800000> : vector<17xf32>
    %113 = vector.multi_reduction <maximumf>, %112, %cst_49 [1] : vector<17x17xf32> to vector<17xf32>
    %114 = vector.shape_cast %113 : vector<17xf32> to vector<17x1xf32>
    %115 = vector.broadcast %114 : vector<17x1xf32> to vector<17x17xf32>
    %116 = arith.subf %112, %115 : vector<17x17xf32>
    %117 = math.exp %116 : vector<17x17xf32>
    %cst_50 = arith.constant dense<0.000000e+00> : vector<17xf32>
    %118 = vector.multi_reduction <add>, %117, %cst_50 [1] : vector<17x17xf32> to vector<17xf32>
    %119 = vector.shape_cast %118 : vector<17xf32> to vector<17x1xf32>
    %120 = tpu.reciprocal %119 {approx = true} : vector<17x1xf32> -> vector<17x1xf32>
    %121 = vector.broadcast %120 : vector<17x1xf32> to vector<17x17xf32>
    %122 = arith.mulf %117, %121 : vector<17x17xf32>
    %123 = arith.truncf %122 : vector<17x17xf32> to vector<17x17xbf16>
    %124 = arith.truncf %107 : vector<17x16xf32> to vector<17x16xbf16>
    %cst_51 = arith.constant dense<0.000000e+00> : vector<17x16xf32>
    %125 = tpu.matmul %123, %124, %cst_51 {dimension_numbers = #tpu.dot_dimension_numbers<[1], [0], [0], [1], [0, 0, 1, 1], [], []>} : vector<17x17xbf16>, vector<17x16xbf16>, vector<17x16xf32> -> vector<17x16xf32>
    %c17_52 = arith.constant 17 : index
    %c0_53 = arith.constant 0 : index
    %126 = vector.load %arg23[%c17_52, %c0_53] : memref<34x32xf32, #tpu.memory_space<vmem>>, vector<17x16xf32>
    tpu.vector_store %arg23[%c17_52, %c0_53], %125 {strides = array<i32>} : memref<34x32xf32, #tpu.memory_space<vmem>>, vector<17x16xf32>,
    %127 = vector.extract_strided_slice %58 {offsets = [17, 16], sizes = [17, 16], strides = [1, 1]} : vector<34x32xf32> to vector<17x16xf32>
    %128 = vector.extract_strided_slice %59 {offsets = [17, 16], sizes = [17, 16], strides = [1, 1]} : vector<34x32xf32> to vector<17x16xf32>
    %129 = vector.extract_strided_slice %60 {offsets = [17, 16], sizes = [17, 16], strides = [1, 1]} : vector<34x32xf32> to vector<17x16xf32>
    %130 = arith.truncf %127 : vector<17x16xf32> to vector<17x16xbf16>
    %131 = arith.truncf %128 : vector<17x16xf32> to vector<17x16xbf16>
    %cst_54 = arith.constant dense<0.000000e+00> : vector<17x17xf32>
    %132 = tpu.matmul %130, %131, %cst_54 {dimension_numbers = #tpu.dot_dimension_numbers<[1], [1], [0], [0], [0, 0, 1, 0], [], []>} : vector<17x16xbf16>, vector<17x16xbf16>, vector<17x17xf32> -> vector<17x17xf32>
    %cst_55 = arith.constant 2.500000e-01 : f32
    %133 = vector.broadcast %cst_55 : f32 to vector<17x17xf32>
    %134 = arith.mulf %132, %133 : vector<17x17xf32>
    %cst_56 = arith.constant dense<0xFF800000> : vector<17xf32>
    %135 = vector.multi_reduction <maximumf>, %134, %cst_56 [1] : vector<17x17xf32> to vector<17xf32>
    %136 = vector.shape_cast %135 : vector<17xf32> to vector<17x1xf32>
    %137 = vector.broadcast %136 : vector<17x1xf32> to vector<17x17xf32>
    %138 = arith.subf %134, %137 : vector<17x17xf32>
    %139 = math.exp %138 : vector<17x17xf32>
    %cst_57 = arith.constant dense<0.000000e+00> : vector<17xf32>
    %140 = vector.multi_reduction <add>, %139, %cst_57 [1] : vector<17x17xf32> to vector<17xf32>
    %141 = vector.shape_cast %140 : vector<17xf32> to vector<17x1xf32>
    %142 = tpu.reciprocal %141 {approx = true} : vector<17x1xf32> -> vector<17x1xf32>
    %143 = vector.broadcast %142 : vector<17x1xf32> to vector<17x17xf32>
    %144 = arith.mulf %139, %143 : vector<17x17xf32>
    %145 = arith.truncf %144 : vector<17x17xf32> to vector<17x17xbf16>
    %146 = arith.truncf %129 : vector<17x16xf32> to vector<17x16xbf16>
    %cst_58 = arith.constant dense<0.000000e+00> : vector<17x16xf32>
    %147 = tpu.matmul %145, %146, %cst_58 {dimension_numbers = #tpu.dot_dimension_numbers<[1], [0], [0], [1], [0, 0, 1, 1], [], []>} : vector<17x17xbf16>, vector<17x16xbf16>, vector<17x16xf32> -> vector<17x16xf32>
    %c17_59 = arith.constant 17 : index
    %c16_60 = arith.constant 16 : index
    %148 = vector.load %arg23[%c17_59, %c16_60] : memref<34x32xf32, #tpu.memory_space<vmem>>, vector<17x16xf32>
    tpu.vector_store %arg23[%c17_59, %c16_60], %147 {strides = array<i32>} : memref<34x32xf32, #tpu.memory_space<vmem>>, vector<17x16xf32>,
    %c0_61 = arith.constant 0 : index
    %c0_62 = arith.constant 0 : index
    %149 = vector.load %arg23[%c0_61, %c0_62] : memref<34x32xf32, #tpu.memory_space<vmem>>, vector<34x32xf32>
    %c0_63 = arith.constant 0 : index
    %c0_64 = arith.constant 0 : index
    %c0_65 = arith.constant 0 : index
    %150 = vector.load %arg13[%c0_63, %c0_64, %c0_65] : memref<2x32x32xf32, #tpu.memory_space<vmem>>, vector<1x32x32xf32>
    %151 = vector.shape_cast %150 : vector<1x32x32xf32> to vector<32x32xf32>
    %152 = arith.truncf %149 : vector<34x32xf32> to vector<34x32xbf16>
    %153 = arith.truncf %151 : vector<32x32xf32> to vector<32x32xbf16>
    %cst_66 = arith.constant dense<0.000000e+00> : vector<34x32xf32>
    %154 = tpu.matmul %152, %153, %cst_66 {dimension_numbers = #tpu.dot_dimension_numbers<[1], [0], [0], [1], [0, 0, 1, 1], [], []>} : vector<34x32xbf16>, vector<32x32xbf16>, vector<34x32xf32> -> vector<34x32xf32>
    %155 = arith.addf %22, %154 : vector<34x32xf32>
    %c0_67 = arith.constant 0 : index
    %c0_68 = arith.constant 0 : index
    %c0_69 = arith.constant 0 : index
    %156 = vector.load %arg14[%c0_67, %c0_68, %c0_69] : memref<2x1x32xf32, #tpu.memory_space<vmem>>, vector<1x1x32xf32>
    %157 = vector.shape_cast %156 : vector<1x1x32xf32> to vector<1x32xf32>
    %158 = vector.broadcast %157 : vector<1x32xf32> to vector<34x32xf32>
    %159 = arith.addf %155, %158 : vector<34x32xf32>
    %c0_70 = arith.constant 0 : index
    %c0_71 = arith.constant 0 : index
    %c0_72 = arith.constant 0 : index
    %160 = vector.load %arg15[%c0_70, %c0_71, %c0_72] : memref<2x1x32xf32, #tpu.memory_space<vmem>>, vector<1x1x32xf32>
    %161 = vector.shape_cast %160 : vector<1x1x32xf32> to vector<1x32xf32>
    %c0_73 = arith.constant 0 : index
    %c0_74 = arith.constant 0 : index
    %c0_75 = arith.constant 0 : index
    %162 = vector.load %arg16[%c0_73, %c0_74, %c0_75] : memref<2x1x32xf32, #tpu.memory_space<vmem>>, vector<1x1x32xf32>
    %163 = vector.shape_cast %162 : vector<1x1x32xf32> to vector<1x32xf32>
    %cst_76 = arith.constant dense<0.000000e+00> : vector<34xf32>
    %164 = vector.multi_reduction <add>, %159, %cst_76 [1] : vector<34x32xf32> to vector<34xf32>
    %165 = vector.shape_cast %164 : vector<34xf32> to vector<34x1xf32>
    %cst_77 = arith.constant 3.200000e+01 : f32
    %166 = vector.broadcast %cst_77 : f32 to vector<34x1xf32>
    %167 = arith.divf %165, %166 : vector<34x1xf32>
    %168 = vector.broadcast %167 : vector<34x1xf32> to vector<34x32xf32>
    %169 = arith.subf %159, %168 : vector<34x32xf32>
    %170 = arith.mulf %169, %169 : vector<34x32xf32>
    %cst_78 = arith.constant dense<0.000000e+00> : vector<34xf32>
    %171 = vector.multi_reduction <add>, %170, %cst_78 [1] : vector<34x32xf32> to vector<34xf32>
    %172 = vector.shape_cast %171 : vector<34xf32> to vector<34x1xf32>
    %cst_79 = arith.constant 3.200000e+01 : f32
    %173 = vector.broadcast %cst_79 : f32 to vector<34x1xf32>
    %174 = arith.divf %172, %173 : vector<34x1xf32>
    %175 = vector.broadcast %167 : vector<34x1xf32> to vector<34x32xf32>
    %176 = arith.subf %159, %175 : vector<34x32xf32>
    %cst_80 = arith.constant 9.99999997E-7 : f32
    %177 = vector.broadcast %cst_80 : f32 to vector<34x1xf32>
    %178 = arith.addf %174, %177 : vector<34x1xf32>
    %179 = math.rsqrt %178 : vector<34x1xf32>
    %180 = vector.broadcast %179 : vector<34x1xf32> to vector<34x32xf32>
    %181 = arith.mulf %176, %180 : vector<34x32xf32>
    %182 = vector.broadcast %161 : vector<1x32xf32> to vector<34x32xf32>
    %183 = arith.mulf %181, %182 : vector<34x32xf32>
    %184 = vector.broadcast %163 : vector<1x32xf32> to vector<34x32xf32>
    %185 = arith.addf %183, %184 : vector<34x32xf32>
    %c0_81 = arith.constant 0 : index
    %c0_82 = arith.constant 0 : index
    %c0_83 = arith.constant 0 : index
    %186 = vector.load %arg17[%c0_81, %c0_82, %c0_83] : memref<2x32x64xf32, #tpu.memory_space<vmem>>, vector<1x32x64xf32>
    %187 = vector.shape_cast %186 : vector<1x32x64xf32> to vector<32x64xf32>
    %188 = arith.truncf %185 : vector<34x32xf32> to vector<34x32xbf16>
    %189 = arith.truncf %187 : vector<32x64xf32> to vector<32x64xbf16>
    %cst_84 = arith.constant dense<0.000000e+00> : vector<34x64xf32>
    %190 = tpu.matmul %188, %189, %cst_84 {dimension_numbers = #tpu.dot_dimension_numbers<[1], [0], [0], [1], [0, 0, 1, 1], [], []>} : vector<34x32xbf16>, vector<32x64xbf16>, vector<34x64xf32> -> vector<34x64xf32>
    %c0_85 = arith.constant 0 : index
    %c0_86 = arith.constant 0 : index
    %c0_87 = arith.constant 0 : index
    %191 = vector.load %arg18[%c0_85, %c0_86, %c0_87] : memref<2x1x64xf32, #tpu.memory_space<vmem>>, vector<1x1x64xf32>
    %192 = vector.shape_cast %191 : vector<1x1x64xf32> to vector<1x64xf32>
    %193 = vector.broadcast %192 : vector<1x64xf32> to vector<34x64xf32>
    %194 = arith.addf %190, %193 : vector<34x64xf32>
    %cst_88 = arith.constant 5.000000e-01 : f32
    %195 = vector.broadcast %cst_88 : f32 to vector<34x64xf32>
    %196 = arith.mulf %195, %194 : vector<34x64xf32>
    %cst_89 = arith.constant 4.471500e-02 : f32
    %197 = vector.broadcast %cst_89 : f32 to vector<34x64xf32>
    %198 = arith.mulf %197, %194 : vector<34x64xf32>
    %199 = arith.mulf %198, %194 : vector<34x64xf32>
    %200 = arith.mulf %199, %194 : vector<34x64xf32>
    %201 = arith.addf %194, %200 : vector<34x64xf32>
    %cst_90 = arith.constant 0.797884583 : f32
    %202 = vector.broadcast %cst_90 : f32 to vector<34x64xf32>
    %203 = arith.mulf %202, %201 : vector<34x64xf32>
    %204 = math.tanh %203 : vector<34x64xf32>
    %cst_91 = arith.constant 1.000000e+00 : f32
    %205 = vector.broadcast %cst_91 : f32 to vector<34x64xf32>
    %206 = arith.addf %205, %204 : vector<34x64xf32>
    %207 = arith.mulf %196, %206 : vector<34x64xf32>
    %c0_92 = arith.constant 0 : index
    %c0_93 = arith.constant 0 : index
    %c0_94 = arith.constant 0 : index
    %208 = vector.load %arg19[%c0_92, %c0_93, %c0_94] : memref<2x64x32xf32, #tpu.memory_space<vmem>>, vector<1x64x32xf32>
    %209 = vector.shape_cast %208 : vector<1x64x32xf32> to vector<64x32xf32>
    %210 = arith.truncf %207 : vector<34x64xf32> to vector<34x64xbf16>
    %211 = arith.truncf %209 : vector<64x32xf32> to vector<64x32xbf16>
    %cst_95 = arith.constant dense<0.000000e+00> : vector<34x32xf32>
    %212 = tpu.matmul %210, %211, %cst_95 {dimension_numbers = #tpu.dot_dimension_numbers<[1], [0], [0], [1], [0, 0, 1, 1], [], []>} : vector<34x64xbf16>, vector<64x32xbf16>, vector<34x32xf32> -> vector<34x32xf32>
    %213 = arith.addf %159, %212 : vector<34x32xf32>
    %c0_96 = arith.constant 0 : index
    %c0_97 = arith.constant 0 : index
    %c0_98 = arith.constant 0 : index
    %214 = vector.load %arg20[%c0_96, %c0_97, %c0_98] : memref<2x1x32xf32, #tpu.memory_space<vmem>>, vector<1x1x32xf32>
    %215 = vector.shape_cast %214 : vector<1x1x32xf32> to vector<1x32xf32>
    %216 = vector.broadcast %215 : vector<1x32xf32> to vector<34x32xf32>
    %217 = arith.addf %213, %216 : vector<34x32xf32>
    %c1_99 = arith.constant 1 : index
    %c0_100 = arith.constant 0 : index
    %c0_101 = arith.constant 0 : index
    %218 = vector.load %arg9[%c1_99, %c0_100, %c0_101] : memref<2x1x32xf32, #tpu.memory_space<vmem>>, vector<1x1x32xf32>
    %219 = vector.shape_cast %218 : vector<1x1x32xf32> to vector<1x32xf32>
    %c1_102 = arith.constant 1 : index
    %c0_103 = arith.constant 0 : index
    %c0_104 = arith.constant 0 : index
    %220 = vector.load %arg10[%c1_102, %c0_103, %c0_104] : memref<2x1x32xf32, #tpu.memory_space<vmem>>, vector<1x1x32xf32>
    %221 = vector.shape_cast %220 : vector<1x1x32xf32> to vector<1x32xf32>
    %cst_105 = arith.constant dense<0.000000e+00> : vector<34xf32>
    %222 = vector.multi_reduction <add>, %217, %cst_105 [1] : vector<34x32xf32> to vector<34xf32>
    %223 = vector.shape_cast %222 : vector<34xf32> to vector<34x1xf32>
    %cst_106 = arith.constant 3.200000e+01 : f32
    %224 = vector.broadcast %cst_106 : f32 to vector<34x1xf32>
    %225 = arith.divf %223, %224 : vector<34x1xf32>
    %226 = vector.broadcast %225 : vector<34x1xf32> to vector<34x32xf32>
    %227 = arith.subf %217, %226 : vector<34x32xf32>
    %228 = arith.mulf %227, %227 : vector<34x32xf32>
    %cst_107 = arith.constant dense<0.000000e+00> : vector<34xf32>
    %229 = vector.multi_reduction <add>, %228, %cst_107 [1] : vector<34x32xf32> to vector<34xf32>
    %230 = vector.shape_cast %229 : vector<34xf32> to vector<34x1xf32>
    %cst_108 = arith.constant 3.200000e+01 : f32
    %231 = vector.broadcast %cst_108 : f32 to vector<34x1xf32>
    %232 = arith.divf %230, %231 : vector<34x1xf32>
    %233 = vector.broadcast %225 : vector<34x1xf32> to vector<34x32xf32>
    %234 = arith.subf %217, %233 : vector<34x32xf32>
    %cst_109 = arith.constant 9.99999997E-7 : f32
    %235 = vector.broadcast %cst_109 : f32 to vector<34x1xf32>
    %236 = arith.addf %232, %235 : vector<34x1xf32>
    %237 = math.rsqrt %236 : vector<34x1xf32>
    %238 = vector.broadcast %237 : vector<34x1xf32> to vector<34x32xf32>
    %239 = arith.mulf %234, %238 : vector<34x32xf32>
    %240 = vector.broadcast %219 : vector<1x32xf32> to vector<34x32xf32>
    %241 = arith.mulf %239, %240 : vector<34x32xf32>
    %242 = vector.broadcast %221 : vector<1x32xf32> to vector<34x32xf32>
    %243 = arith.addf %241, %242 : vector<34x32xf32>
    %c1_110 = arith.constant 1 : index
    %c0_111 = arith.constant 0 : index
    %c0_112 = arith.constant 0 : index
    %244 = vector.load %arg11[%c1_110, %c0_111, %c0_112] : memref<2x32x96xf32, #tpu.memory_space<vmem>>, vector<1x32x96xf32>
    %245 = vector.shape_cast %244 : vector<1x32x96xf32> to vector<32x96xf32>
    %246 = arith.truncf %243 : vector<34x32xf32> to vector<34x32xbf16>
    %247 = arith.truncf %245 : vector<32x96xf32> to vector<32x96xbf16>
    %cst_113 = arith.constant dense<0.000000e+00> : vector<34x96xf32>
    %248 = tpu.matmul %246, %247, %cst_113 {dimension_numbers = #tpu.dot_dimension_numbers<[1], [0], [0], [1], [0, 0, 1, 1], [], []>} : vector<34x32xbf16>, vector<32x96xbf16>, vector<34x96xf32> -> vector<34x96xf32>
    %c1_114 = arith.constant 1 : index
    %c0_115 = arith.constant 0 : index
    %c0_116 = arith.constant 0 : index
    %249 = vector.load %arg12[%c1_114, %c0_115, %c0_116] : memref<2x1x96xf32, #tpu.memory_space<vmem>>, vector<1x1x96xf32>
    %250 = vector.shape_cast %249 : vector<1x1x96xf32> to vector<1x96xf32>
    %251 = vector.broadcast %250 : vector<1x96xf32> to vector<34x96xf32>
    %252 = arith.addf %248, %251 : vector<34x96xf32>
    %253 = vector.extract_strided_slice %252 {offsets = [0, 0], sizes = [34, 32], strides = [1, 1]} : vector<34x96xf32> to vector<34x32xf32>
    %254 = vector.extract_strided_slice %252 {offsets = [0, 32], sizes = [34, 32], strides = [1, 1]} : vector<34x96xf32> to vector<34x32xf32>
    %255 = vector.extract_strided_slice %252 {offsets = [0, 64], sizes = [34, 32], strides = [1, 1]} : vector<34x96xf32> to vector<34x32xf32>
    %256 = vector.extract_strided_slice %253 {offsets = [0, 0], sizes = [17, 16], strides = [1, 1]} : vector<34x32xf32> to vector<17x16xf32>
    %257 = vector.extract_strided_slice %254 {offsets = [0, 0], sizes = [17, 16], strides = [1, 1]} : vector<34x32xf32> to vector<17x16xf32>
    %258 = vector.extract_strided_slice %255 {offsets = [0, 0], sizes = [17, 16], strides = [1, 1]} : vector<34x32xf32> to vector<17x16xf32>
    %259 = arith.truncf %256 : vector<17x16xf32> to vector<17x16xbf16>
    %260 = arith.truncf %257 : vector<17x16xf32> to vector<17x16xbf16>
    %cst_117 = arith.constant dense<0.000000e+00> : vector<17x17xf32>
    %261 = tpu.matmul %259, %260, %cst_117 {dimension_numbers = #tpu.dot_dimension_numbers<[1], [1], [0], [0], [0, 0, 1, 0], [], []>} : vector<17x16xbf16>, vector<17x16xbf16>, vector<17x17xf32> -> vector<17x17xf32>
    %cst_118 = arith.constant 2.500000e-01 : f32
    %262 = vector.broadcast %cst_118 : f32 to vector<17x17xf32>
    %263 = arith.mulf %261, %262 : vector<17x17xf32>
    %cst_119 = arith.constant dense<0xFF800000> : vector<17xf32>
    %264 = vector.multi_reduction <maximumf>, %263, %cst_119 [1] : vector<17x17xf32> to vector<17xf32>
    %265 = vector.shape_cast %264 : vector<17xf32> to vector<17x1xf32>
    %266 = vector.broadcast %265 : vector<17x1xf32> to vector<17x17xf32>
    %267 = arith.subf %263, %266 : vector<17x17xf32>
    %268 = math.exp %267 : vector<17x17xf32>
    %cst_120 = arith.constant dense<0.000000e+00> : vector<17xf32>
    %269 = vector.multi_reduction <add>, %268, %cst_120 [1] : vector<17x17xf32> to vector<17xf32>
    %270 = vector.shape_cast %269 : vector<17xf32> to vector<17x1xf32>
    %271 = tpu.reciprocal %270 {approx = true} : vector<17x1xf32> -> vector<17x1xf32>
    %272 = vector.broadcast %271 : vector<17x1xf32> to vector<17x17xf32>
    %273 = arith.mulf %268, %272 : vector<17x17xf32>
    %274 = arith.truncf %273 : vector<17x17xf32> to vector<17x17xbf16>
    %275 = arith.truncf %258 : vector<17x16xf32> to vector<17x16xbf16>
    %cst_121 = arith.constant dense<0.000000e+00> : vector<17x16xf32>
    %276 = tpu.matmul %274, %275, %cst_121 {dimension_numbers = #tpu.dot_dimension_numbers<[1], [0], [0], [1], [0, 0, 1, 1], [], []>} : vector<17x17xbf16>, vector<17x16xbf16>, vector<17x16xf32> -> vector<17x16xf32>
    %c0_122 = arith.constant 0 : index
    %c0_123 = arith.constant 0 : index
    %277 = vector.load %arg23[%c0_122, %c0_123] : memref<34x32xf32, #tpu.memory_space<vmem>>, vector<17x16xf32>
    tpu.vector_store %arg23[%c0_122, %c0_123], %276 {strides = array<i32>} : memref<34x32xf32, #tpu.memory_space<vmem>>, vector<17x16xf32>,
    %278 = vector.extract_strided_slice %253 {offsets = [0, 16], sizes = [17, 16], strides = [1, 1]} : vector<34x32xf32> to vector<17x16xf32>
    %279 = vector.extract_strided_slice %254 {offsets = [0, 16], sizes = [17, 16], strides = [1, 1]} : vector<34x32xf32> to vector<17x16xf32>
    %280 = vector.extract_strided_slice %255 {offsets = [0, 16], sizes = [17, 16], strides = [1, 1]} : vector<34x32xf32> to vector<17x16xf32>
    %281 = arith.truncf %278 : vector<17x16xf32> to vector<17x16xbf16>
    %282 = arith.truncf %279 : vector<17x16xf32> to vector<17x16xbf16>
    %cst_124 = arith.constant dense<0.000000e+00> : vector<17x17xf32>
    %283 = tpu.matmul %281, %282, %cst_124 {dimension_numbers = #tpu.dot_dimension_numbers<[1], [1], [0], [0], [0, 0, 1, 0], [], []>} : vector<17x16xbf16>, vector<17x16xbf16>, vector<17x17xf32> -> vector<17x17xf32>
    %cst_125 = arith.constant 2.500000e-01 : f32
    %284 = vector.broadcast %cst_125 : f32 to vector<17x17xf32>
    %285 = arith.mulf %283, %284 : vector<17x17xf32>
    %cst_126 = arith.constant dense<0xFF800000> : vector<17xf32>
    %286 = vector.multi_reduction <maximumf>, %285, %cst_126 [1] : vector<17x17xf32> to vector<17xf32>
    %287 = vector.shape_cast %286 : vector<17xf32> to vector<17x1xf32>
    %288 = vector.broadcast %287 : vector<17x1xf32> to vector<17x17xf32>
    %289 = arith.subf %285, %288 : vector<17x17xf32>
    %290 = math.exp %289 : vector<17x17xf32>
    %cst_127 = arith.constant dense<0.000000e+00> : vector<17xf32>
    %291 = vector.multi_reduction <add>, %290, %cst_127 [1] : vector<17x17xf32> to vector<17xf32>
    %292 = vector.shape_cast %291 : vector<17xf32> to vector<17x1xf32>
    %293 = tpu.reciprocal %292 {approx = true} : vector<17x1xf32> -> vector<17x1xf32>
    %294 = vector.broadcast %293 : vector<17x1xf32> to vector<17x17xf32>
    %295 = arith.mulf %290, %294 : vector<17x17xf32>
    %296 = arith.truncf %295 : vector<17x17xf32> to vector<17x17xbf16>
    %297 = arith.truncf %280 : vector<17x16xf32> to vector<17x16xbf16>
    %cst_128 = arith.constant dense<0.000000e+00> : vector<17x16xf32>
    %298 = tpu.matmul %296, %297, %cst_128 {dimension_numbers = #tpu.dot_dimension_numbers<[1], [0], [0], [1], [0, 0, 1, 1], [], []>} : vector<17x17xbf16>, vector<17x16xbf16>, vector<17x16xf32> -> vector<17x16xf32>
    %c0_129 = arith.constant 0 : index
    %c16_130 = arith.constant 16 : index
    %299 = vector.load %arg23[%c0_129, %c16_130] : memref<34x32xf32, #tpu.memory_space<vmem>>, vector<17x16xf32>
    tpu.vector_store %arg23[%c0_129, %c16_130], %298 {strides = array<i32>} : memref<34x32xf32, #tpu.memory_space<vmem>>, vector<17x16xf32>,
    %300 = vector.extract_strided_slice %253 {offsets = [17, 0], sizes = [17, 16], strides = [1, 1]} : vector<34x32xf32> to vector<17x16xf32>
    %301 = vector.extract_strided_slice %254 {offsets = [17, 0], sizes = [17, 16], strides = [1, 1]} : vector<34x32xf32> to vector<17x16xf32>
    %302 = vector.extract_strided_slice %255 {offsets = [17, 0], sizes = [17, 16], strides = [1, 1]} : vector<34x32xf32> to vector<17x16xf32>
    %303 = arith.truncf %300 : vector<17x16xf32> to vector<17x16xbf16>
    %304 = arith.truncf %301 : vector<17x16xf32> to vector<17x16xbf16>
    %cst_131 = arith.constant dense<0.000000e+00> : vector<17x17xf32>
    %305 = tpu.matmul %303, %304, %cst_131 {dimension_numbers = #tpu.dot_dimension_numbers<[1], [1], [0], [0], [0, 0, 1, 0], [], []>} : vector<17x16xbf16>, vector<17x16xbf16>, vector<17x17xf32> -> vector<17x17xf32>
    %cst_132 = arith.constant 2.500000e-01 : f32
    %306 = vector.broadcast %cst_132 : f32 to vector<17x17xf32>
    %307 = arith.mulf %305, %306 : vector<17x17xf32>
    %cst_133 = arith.constant dense<0xFF800000> : vector<17xf32>
    %308 = vector.multi_reduction <maximumf>, %307, %cst_133 [1] : vector<17x17xf32> to vector<17xf32>
    %309 = vector.shape_cast %308 : vector<17xf32> to vector<17x1xf32>
    %310 = vector.broadcast %309 : vector<17x1xf32> to vector<17x17xf32>
    %311 = arith.subf %307, %310 : vector<17x17xf32>
    %312 = math.exp %311 : vector<17x17xf32>
    %cst_134 = arith.constant dense<0.000000e+00> : vector<17xf32>
    %313 = vector.multi_reduction <add>, %312, %cst_134 [1] : vector<17x17xf32> to vector<17xf32>
    %314 = vector.shape_cast %313 : vector<17xf32> to vector<17x1xf32>
    %315 = tpu.reciprocal %314 {approx = true} : vector<17x1xf32> -> vector<17x1xf32>
    %316 = vector.broadcast %315 : vector<17x1xf32> to vector<17x17xf32>
    %317 = arith.mulf %312, %316 : vector<17x17xf32>
    %318 = arith.truncf %317 : vector<17x17xf32> to vector<17x17xbf16>
    %319 = arith.truncf %302 : vector<17x16xf32> to vector<17x16xbf16>
    %cst_135 = arith.constant dense<0.000000e+00> : vector<17x16xf32>
    %320 = tpu.matmul %318, %319, %cst_135 {dimension_numbers = #tpu.dot_dimension_numbers<[1], [0], [0], [1], [0, 0, 1, 1], [], []>} : vector<17x17xbf16>, vector<17x16xbf16>, vector<17x16xf32> -> vector<17x16xf32>
    %c17_136 = arith.constant 17 : index
    %c0_137 = arith.constant 0 : index
    %321 = vector.load %arg23[%c17_136, %c0_137] : memref<34x32xf32, #tpu.memory_space<vmem>>, vector<17x16xf32>
    tpu.vector_store %arg23[%c17_136, %c0_137], %320 {strides = array<i32>} : memref<34x32xf32, #tpu.memory_space<vmem>>, vector<17x16xf32>,
    %322 = vector.extract_strided_slice %253 {offsets = [17, 16], sizes = [17, 16], strides = [1, 1]} : vector<34x32xf32> to vector<17x16xf32>
    %323 = vector.extract_strided_slice %254 {offsets = [17, 16], sizes = [17, 16], strides = [1, 1]} : vector<34x32xf32> to vector<17x16xf32>
    %324 = vector.extract_strided_slice %255 {offsets = [17, 16], sizes = [17, 16], strides = [1, 1]} : vector<34x32xf32> to vector<17x16xf32>
    %325 = arith.truncf %322 : vector<17x16xf32> to vector<17x16xbf16>
    %326 = arith.truncf %323 : vector<17x16xf32> to vector<17x16xbf16>
    %cst_138 = arith.constant dense<0.000000e+00> : vector<17x17xf32>
    %327 = tpu.matmul %325, %326, %cst_138 {dimension_numbers = #tpu.dot_dimension_numbers<[1], [1], [0], [0], [0, 0, 1, 0], [], []>} : vector<17x16xbf16>, vector<17x16xbf16>, vector<17x17xf32> -> vector<17x17xf32>
    %cst_139 = arith.constant 2.500000e-01 : f32
    %328 = vector.broadcast %cst_139 : f32 to vector<17x17xf32>
    %329 = arith.mulf %327, %328 : vector<17x17xf32>
    %cst_140 = arith.constant dense<0xFF800000> : vector<17xf32>
    %330 = vector.multi_reduction <maximumf>, %329, %cst_140 [1] : vector<17x17xf32> to vector<17xf32>
    %331 = vector.shape_cast %330 : vector<17xf32> to vector<17x1xf32>
    %332 = vector.broadcast %331 : vector<17x1xf32> to vector<17x17xf32>
    %333 = arith.subf %329, %332 : vector<17x17xf32>
    %334 = math.exp %333 : vector<17x17xf32>
    %cst_141 = arith.constant dense<0.000000e+00> : vector<17xf32>
    %335 = vector.multi_reduction <add>, %334, %cst_141 [1] : vector<17x17xf32> to vector<17xf32>
    %336 = vector.shape_cast %335 : vector<17xf32> to vector<17x1xf32>
    %337 = tpu.reciprocal %336 {approx = true} : vector<17x1xf32> -> vector<17x1xf32>
    %338 = vector.broadcast %337 : vector<17x1xf32> to vector<17x17xf32>
    %339 = arith.mulf %334, %338 : vector<17x17xf32>
    %340 = arith.truncf %339 : vector<17x17xf32> to vector<17x17xbf16>
    %341 = arith.truncf %324 : vector<17x16xf32> to vector<17x16xbf16>
    %cst_142 = arith.constant dense<0.000000e+00> : vector<17x16xf32>
    %342 = tpu.matmul %340, %341, %cst_142 {dimension_numbers = #tpu.dot_dimension_numbers<[1], [0], [0], [1], [0, 0, 1, 1], [], []>} : vector<17x17xbf16>, vector<17x16xbf16>, vector<17x16xf32> -> vector<17x16xf32>
    %c17_143 = arith.constant 17 : index
    %c16_144 = arith.constant 16 : index
    %343 = vector.load %arg23[%c17_143, %c16_144] : memref<34x32xf32, #tpu.memory_space<vmem>>, vector<17x16xf32>
    tpu.vector_store %arg23[%c17_143, %c16_144], %342 {strides = array<i32>} : memref<34x32xf32, #tpu.memory_space<vmem>>, vector<17x16xf32>,
    %c0_145 = arith.constant 0 : index
    %c0_146 = arith.constant 0 : index
    %344 = vector.load %arg23[%c0_145, %c0_146] : memref<34x32xf32, #tpu.memory_space<vmem>>, vector<34x32xf32>
    %c1_147 = arith.constant 1 : index
    %c0_148 = arith.constant 0 : index
    %c0_149 = arith.constant 0 : index
    %345 = vector.load %arg13[%c1_147, %c0_148, %c0_149] : memref<2x32x32xf32, #tpu.memory_space<vmem>>, vector<1x32x32xf32>
    %346 = vector.shape_cast %345 : vector<1x32x32xf32> to vector<32x32xf32>
    %347 = arith.truncf %344 : vector<34x32xf32> to vector<34x32xbf16>
    %348 = arith.truncf %346 : vector<32x32xf32> to vector<32x32xbf16>
    %cst_150 = arith.constant dense<0.000000e+00> : vector<34x32xf32>
    %349 = tpu.matmul %347, %348, %cst_150 {dimension_numbers = #tpu.dot_dimension_numbers<[1], [0], [0], [1], [0, 0, 1, 1], [], []>} : vector<34x32xbf16>, vector<32x32xbf16>, vector<34x32xf32> -> vector<34x32xf32>
    %350 = arith.addf %217, %349 : vector<34x32xf32>
    %c1_151 = arith.constant 1 : index
    %c0_152 = arith.constant 0 : index
    %c0_153 = arith.constant 0 : index
    %351 = vector.load %arg14[%c1_151, %c0_152, %c0_153] : memref<2x1x32xf32, #tpu.memory_space<vmem>>, vector<1x1x32xf32>
    %352 = vector.shape_cast %351 : vector<1x1x32xf32> to vector<1x32xf32>
    %353 = vector.broadcast %352 : vector<1x32xf32> to vector<34x32xf32>
    %354 = arith.addf %350, %353 : vector<34x32xf32>
    %c1_154 = arith.constant 1 : index
    %c0_155 = arith.constant 0 : index
    %c0_156 = arith.constant 0 : index
    %355 = vector.load %arg15[%c1_154, %c0_155, %c0_156] : memref<2x1x32xf32, #tpu.memory_space<vmem>>, vector<1x1x32xf32>
    %356 = vector.shape_cast %355 : vector<1x1x32xf32> to vector<1x32xf32>
    %c1_157 = arith.constant 1 : index
    %c0_158 = arith.constant 0 : index
    %c0_159 = arith.constant 0 : index
    %357 = vector.load %arg16[%c1_157, %c0_158, %c0_159] : memref<2x1x32xf32, #tpu.memory_space<vmem>>, vector<1x1x32xf32>
    %358 = vector.shape_cast %357 : vector<1x1x32xf32> to vector<1x32xf32>
    %cst_160 = arith.constant dense<0.000000e+00> : vector<34xf32>
    %359 = vector.multi_reduction <add>, %354, %cst_160 [1] : vector<34x32xf32> to vector<34xf32>
    %360 = vector.shape_cast %359 : vector<34xf32> to vector<34x1xf32>
    %cst_161 = arith.constant 3.200000e+01 : f32
    %361 = vector.broadcast %cst_161 : f32 to vector<34x1xf32>
    %362 = arith.divf %360, %361 : vector<34x1xf32>
    %363 = vector.broadcast %362 : vector<34x1xf32> to vector<34x32xf32>
    %364 = arith.subf %354, %363 : vector<34x32xf32>
    %365 = arith.mulf %364, %364 : vector<34x32xf32>
    %cst_162 = arith.constant dense<0.000000e+00> : vector<34xf32>
    %366 = vector.multi_reduction <add>, %365, %cst_162 [1] : vector<34x32xf32> to vector<34xf32>
    %367 = vector.shape_cast %366 : vector<34xf32> to vector<34x1xf32>
    %cst_163 = arith.constant 3.200000e+01 : f32
    %368 = vector.broadcast %cst_163 : f32 to vector<34x1xf32>
    %369 = arith.divf %367, %368 : vector<34x1xf32>
    %370 = vector.broadcast %362 : vector<34x1xf32> to vector<34x32xf32>
    %371 = arith.subf %354, %370 : vector<34x32xf32>
    %cst_164 = arith.constant 9.99999997E-7 : f32
    %372 = vector.broadcast %cst_164 : f32 to vector<34x1xf32>
    %373 = arith.addf %369, %372 : vector<34x1xf32>
    %374 = math.rsqrt %373 : vector<34x1xf32>
    %375 = vector.broadcast %374 : vector<34x1xf32> to vector<34x32xf32>
    %376 = arith.mulf %371, %375 : vector<34x32xf32>
    %377 = vector.broadcast %356 : vector<1x32xf32> to vector<34x32xf32>
    %378 = arith.mulf %376, %377 : vector<34x32xf32>
    %379 = vector.broadcast %358 : vector<1x32xf32> to vector<34x32xf32>
    %380 = arith.addf %378, %379 : vector<34x32xf32>
    %c1_165 = arith.constant 1 : index
    %c0_166 = arith.constant 0 : index
    %c0_167 = arith.constant 0 : index
    %381 = vector.load %arg17[%c1_165, %c0_166, %c0_167] : memref<2x32x64xf32, #tpu.memory_space<vmem>>, vector<1x32x64xf32>
    %382 = vector.shape_cast %381 : vector<1x32x64xf32> to vector<32x64xf32>
    %383 = arith.truncf %380 : vector<34x32xf32> to vector<34x32xbf16>
    %384 = arith.truncf %382 : vector<32x64xf32> to vector<32x64xbf16>
    %cst_168 = arith.constant dense<0.000000e+00> : vector<34x64xf32>
    %385 = tpu.matmul %383, %384, %cst_168 {dimension_numbers = #tpu.dot_dimension_numbers<[1], [0], [0], [1], [0, 0, 1, 1], [], []>} : vector<34x32xbf16>, vector<32x64xbf16>, vector<34x64xf32> -> vector<34x64xf32>
    %c1_169 = arith.constant 1 : index
    %c0_170 = arith.constant 0 : index
    %c0_171 = arith.constant 0 : index
    %386 = vector.load %arg18[%c1_169, %c0_170, %c0_171] : memref<2x1x64xf32, #tpu.memory_space<vmem>>, vector<1x1x64xf32>
    %387 = vector.shape_cast %386 : vector<1x1x64xf32> to vector<1x64xf32>
    %388 = vector.broadcast %387 : vector<1x64xf32> to vector<34x64xf32>
    %389 = arith.addf %385, %388 : vector<34x64xf32>
    %cst_172 = arith.constant 5.000000e-01 : f32
    %390 = vector.broadcast %cst_172 : f32 to vector<34x64xf32>
    %391 = arith.mulf %390, %389 : vector<34x64xf32>
    %cst_173 = arith.constant 4.471500e-02 : f32
    %392 = vector.broadcast %cst_173 : f32 to vector<34x64xf32>
    %393 = arith.mulf %392, %389 : vector<34x64xf32>
    %394 = arith.mulf %393, %389 : vector<34x64xf32>
    %395 = arith.mulf %394, %389 : vector<34x64xf32>
    %396 = arith.addf %389, %395 : vector<34x64xf32>
    %cst_174 = arith.constant 0.797884583 : f32
    %397 = vector.broadcast %cst_174 : f32 to vector<34x64xf32>
    %398 = arith.mulf %397, %396 : vector<34x64xf32>
    %399 = math.tanh %398 : vector<34x64xf32>
    %cst_175 = arith.constant 1.000000e+00 : f32
    %400 = vector.broadcast %cst_175 : f32 to vector<34x64xf32>
    %401 = arith.addf %400, %399 : vector<34x64xf32>
    %402 = arith.mulf %391, %401 : vector<34x64xf32>
    %c1_176 = arith.constant 1 : index
    %c0_177 = arith.constant 0 : index
    %c0_178 = arith.constant 0 : index
    %403 = vector.load %arg19[%c1_176, %c0_177, %c0_178] : memref<2x64x32xf32, #tpu.memory_space<vmem>>, vector<1x64x32xf32>
    %404 = vector.shape_cast %403 : vector<1x64x32xf32> to vector<64x32xf32>
    %405 = arith.truncf %402 : vector<34x64xf32> to vector<34x64xbf16>
    %406 = arith.truncf %404 : vector<64x32xf32> to vector<64x32xbf16>
    %cst_179 = arith.constant dense<0.000000e+00> : vector<34x32xf32>
    %407 = tpu.matmul %405, %406, %cst_179 {dimension_numbers = #tpu.dot_dimension_numbers<[1], [0], [0], [1], [0, 0, 1, 1], [], []>} : vector<34x64xbf16>, vector<64x32xbf16>, vector<34x32xf32> -> vector<34x32xf32>
    %408 = arith.addf %354, %407 : vector<34x32xf32>
    %c1_180 = arith.constant 1 : index
    %c0_181 = arith.constant 0 : index
    %c0_182 = arith.constant 0 : index
    %409 = vector.load %arg20[%c1_180, %c0_181, %c0_182] : memref<2x1x32xf32, #tpu.memory_space<vmem>>, vector<1x1x32xf32>
    %410 = vector.shape_cast %409 : vector<1x1x32xf32> to vector<1x32xf32>
    %411 = vector.broadcast %410 : vector<1x32xf32> to vector<34x32xf32>
    %412 = arith.addf %408, %411 : vector<34x32xf32>
    %c0_183 = arith.constant 0 : index
    %c0_184 = arith.constant 0 : index
    %413 = vector.load %arg5[%c0_183, %c0_184] : memref<1x32xf32, #tpu.memory_space<vmem>>, vector<1x32xf32>
    %c0_185 = arith.constant 0 : index
    %c0_186 = arith.constant 0 : index
    %414 = vector.load %arg6[%c0_185, %c0_186] : memref<1x32xf32, #tpu.memory_space<vmem>>, vector<1x32xf32>
    %c0_187 = arith.constant 0 : index
    %c0_188 = arith.constant 0 : index
    %415 = vector.load %arg7[%c0_187, %c0_188] : memref<32x8xf32, #tpu.memory_space<vmem>>, vector<32x8xf32>
    %c0_189 = arith.constant 0 : index
    %c0_190 = arith.constant 0 : index
    %416 = vector.load %arg8[%c0_189, %c0_190] : memref<1x8xf32, #tpu.memory_space<vmem>>, vector<1x8xf32>
    %417 = vector.extract_strided_slice %412 {offsets = [0, 0], sizes = [1, 32], strides = [1, 1]} : vector<34x32xf32> to vector<1x32xf32>
    %cst_191 = arith.constant dense<0.000000e+00> : vector<1xf32>
    %418 = vector.multi_reduction <add>, %417, %cst_191 [1] : vector<1x32xf32> to vector<1xf32>
    %419 = vector.shape_cast %418 : vector<1xf32> to vector<1x1xf32>
    %cst_192 = arith.constant 3.200000e+01 : f32
    %420 = vector.broadcast %cst_192 : f32 to vector<1x1xf32>
    %421 = arith.divf %419, %420 : vector<1x1xf32>
    %422 = vector.broadcast %421 : vector<1x1xf32> to vector<1x32xf32>
    %423 = arith.subf %417, %422 : vector<1x32xf32>
    %424 = arith.mulf %423, %423 : vector<1x32xf32>
    %cst_193 = arith.constant dense<0.000000e+00> : vector<1xf32>
    %425 = vector.multi_reduction <add>, %424, %cst_193 [1] : vector<1x32xf32> to vector<1xf32>
    %426 = vector.shape_cast %425 : vector<1xf32> to vector<1x1xf32>
    %cst_194 = arith.constant 3.200000e+01 : f32
    %427 = vector.broadcast %cst_194 : f32 to vector<1x1xf32>
    %428 = arith.divf %426, %427 : vector<1x1xf32>
    %429 = vector.broadcast %421 : vector<1x1xf32> to vector<1x32xf32>
    %430 = arith.subf %417, %429 : vector<1x32xf32>
    %cst_195 = arith.constant 9.99999997E-7 : f32
    %431 = vector.broadcast %cst_195 : f32 to vector<1x1xf32>
    %432 = arith.addf %428, %431 : vector<1x1xf32>
    %433 = math.rsqrt %432 : vector<1x1xf32>
    %434 = vector.broadcast %433 : vector<1x1xf32> to vector<1x32xf32>
    %435 = arith.mulf %430, %434 : vector<1x32xf32>
    %436 = arith.mulf %435, %413 : vector<1x32xf32>
    %437 = arith.addf %436, %414 : vector<1x32xf32>
    %438 = arith.truncf %437 : vector<1x32xf32> to vector<1x32xbf16>
    %439 = arith.truncf %415 : vector<32x8xf32> to vector<32x8xbf16>
    %cst_196 = arith.constant dense<0.000000e+00> : vector<1x8xf32>
    %440 = tpu.matmul %438, %439, %cst_196 {dimension_numbers = #tpu.dot_dimension_numbers<[1], [0], [0], [1], [0, 0, 1, 1], [], []>} : vector<1x32xbf16>, vector<32x8xbf16>, vector<1x8xf32> -> vector<1x8xf32>
    %441 = arith.addf %440, %416 : vector<1x8xf32>
    %c0_197 = arith.constant 0 : index
    %c0_198 = arith.constant 0 : index
    %442 = vector.load %arg21[%c0_197, %c0_198] : memref<2x8xf32, #tpu.memory_space<vmem>>, vector<1x8xf32>
    tpu.vector_store %arg21[%c0_197, %c0_198], %441 {strides = array<i32>} : memref<2x8xf32, #tpu.memory_space<vmem>>, vector<1x8xf32>,
    %443 = vector.extract_strided_slice %412 {offsets = [17, 0], sizes = [1, 32], strides = [1, 1]} : vector<34x32xf32> to vector<1x32xf32>
    %cst_199 = arith.constant dense<0.000000e+00> : vector<1xf32>
    %444 = vector.multi_reduction <add>, %443, %cst_199 [1] : vector<1x32xf32> to vector<1xf32>
    %445 = vector.shape_cast %444 : vector<1xf32> to vector<1x1xf32>
    %cst_200 = arith.constant 3.200000e+01 : f32
    %446 = vector.broadcast %cst_200 : f32 to vector<1x1xf32>
    %447 = arith.divf %445, %446 : vector<1x1xf32>
    %448 = vector.broadcast %447 : vector<1x1xf32> to vector<1x32xf32>
    %449 = arith.subf %443, %448 : vector<1x32xf32>
    %450 = arith.mulf %449, %449 : vector<1x32xf32>
    %cst_201 = arith.constant dense<0.000000e+00> : vector<1xf32>
    %451 = vector.multi_reduction <add>, %450, %cst_201 [1] : vector<1x32xf32> to vector<1xf32>
    %452 = vector.shape_cast %451 : vector<1xf32> to vector<1x1xf32>
    %cst_202 = arith.constant 3.200000e+01 : f32
    %453 = vector.broadcast %cst_202 : f32 to vector<1x1xf32>
    %454 = arith.divf %452, %453 : vector<1x1xf32>
    %455 = vector.broadcast %447 : vector<1x1xf32> to vector<1x32xf32>
    %456 = arith.subf %443, %455 : vector<1x32xf32>
    %cst_203 = arith.constant 9.99999997E-7 : f32
    %457 = vector.broadcast %cst_203 : f32 to vector<1x1xf32>
    %458 = arith.addf %454, %457 : vector<1x1xf32>
    %459 = math.rsqrt %458 : vector<1x1xf32>
    %460 = vector.broadcast %459 : vector<1x1xf32> to vector<1x32xf32>
    %461 = arith.mulf %456, %460 : vector<1x32xf32>
    %462 = arith.mulf %461, %413 : vector<1x32xf32>
    %463 = arith.addf %462, %414 : vector<1x32xf32>
    %464 = arith.truncf %463 : vector<1x32xf32> to vector<1x32xbf16>
    %465 = arith.truncf %415 : vector<32x8xf32> to vector<32x8xbf16>
    %cst_204 = arith.constant dense<0.000000e+00> : vector<1x8xf32>
    %466 = tpu.matmul %464, %465, %cst_204 {dimension_numbers = #tpu.dot_dimension_numbers<[1], [0], [0], [1], [0, 0, 1, 1], [], []>} : vector<1x32xbf16>, vector<32x8xbf16>, vector<1x8xf32> -> vector<1x8xf32>
    %467 = arith.addf %466, %416 : vector<1x8xf32>
    %c1_205 = arith.constant 1 : index
    %c0_206 = arith.constant 0 : index
    %468 = vector.load %arg21[%c1_205, %c0_206] : memref<2x8xf32, #tpu.memory_space<vmem>>, vector<1x8xf32>
    tpu.vector_store %arg21[%c1_205, %c0_206], %467 {strides = array<i32>} : memref<2x8xf32, #tpu.memory_space<vmem>>, vector<1x8xf32>,
    return
  }
}

</mosaic_0001>

<bundles_post_ra>
// kernel: vit_classifier_forward.1
= control target key start
LH: loop header
LB: loop body
LE: loop exit
PB: predicated region body
PF: predicated region fallthrough
CT: control target
= control target key end

     0   :  { %s4690_s0 = inlined_call_operand.vmem [shape: f32[32,48], index: 0, kind: input, shape index: {}]   ;;  %s4691_s1 = inlined_call_operand.vmem [shape: f32[48,32], index: 1, kind: input, shape index: {}]   ;;  %s4692_s2 = inlined_call_operand.vmem [shape: f32[1,32], index: 2, kind: input, shape index: {}]   ;;  %s4693_s3 = inlined_call_operand.vmem [shape: f32[1,32], index: 3, kind: input, shape index: {}]   ;;  %s4694_s4 = inlined_call_operand.vmem [shape: f32[17,32], index: 4, kind: input, shape index: {}]   ;;  %s4695_s5 = inlined_call_operand.vmem [shape: f32[1,32], index: 5, kind: input, shape index: {}]   ;;  %s4696_s6 = inlined_call_operand.vmem [shape: f32[1,32], index: 6, kind: input, shape index: {}]   ;;  %s4697_s7 = inlined_call_operand.vmem [shape: f32[32,8], index: 7, kind: input, shape index: {}]   ;;  %s4698_s8 = inlined_call_operand.vmem [shape: f32[1,8], index: 8, kind: input, shape index: {}]   ;;  %s4699_s9 = inlined_call_operand.vmem [shape: f32[2,1,32], index: 9, kind: input, shape index: {}]   ;;  %s4700_s10 = inlined_call_operand.vmem [shape: f32[2,1,32], index: 10, kind: input, shape index: {}]   ;;  %s4701_s11 = inlined_call_operand.vmem [shape: f32[2,32,96], index: 11, kind: input, shape index: {}]   ;;  %s4702_s12 = inlined_call_operand.vmem [shape: f32[2,1,96], index: 12, kind: input, shape index: {}]   ;;  %s4703_s13 = inlined_call_operand.vmem [shape: f32[2,32,32], index: 13, kind: input, shape index: {}]   ;;  %s4704_s14 = inlined_call_operand.vmem [shape: f32[2,1,32], index: 14, kind: input, shape index: {}]   ;;  %s4705_s15 = inlined_call_operand.vmem [shape: f32[2,1,32], index: 15, kind: input, shape index: {}]   ;;  %s4706_s16 = inlined_call_operand.vmem [shape: f32[2,1,32], index: 16, kind: input, shape index: {}]   ;;  %s4707_s17 = inlined_call_operand.vmem [shape: f32[2,32,64], index: 17, kind: input, shape index: {}]   ;;  %s4708_s18 = inlined_call_operand.vmem [shape: f32[2,1,64], index: 18, kind: input, shape index: {}]   ;;  %s4709_s19 = inlined_call_operand.vmem [shape: f32[2,64,32], index: 19, kind: input, shape index: {}]   ;;  %s4710_s20 = inlined_call_operand.vmem [shape: f32[2,1,32], index: 20, kind: input, shape index: {}]   ;;  %s4711_s21 = inlined_call_operand.hbm [shape: f32[2,8], index: 21, kind: output, shape index: {}]  }
   0x1   :  { %4715 = sst [smem:[#allocation7_spill]] %s4690_s0 }
   0x2   :  { %4716 = sst [smem:[#allocation8_spill]] %s4691_s1 }
   0x3   :  { %4717 = sst [smem:[#allocation9_spill]] %s4692_s2 }
   0x4   :  { %4718 = sst [smem:[#allocation10_spill]] %s4693_s3 }
   0x5   :  { %4719 = sst [smem:[#allocation11_spill]] %s4694_s4 }
   0x6   :  { %4720 = sst [smem:[#allocation12_spill]] %s4695_s5 }
   0x7   :  { %s4721_s26 = sld [smem:[#allocation8_spill]]  ;;  %vm92_vm0 = vcmask 392192  }
   0x8   :  { %s4722_s2 = sld [smem:[#allocation7_spill]] }
   0xd   :  { %v78_v0 = vld [vmem:[%s4721_s26 + $0x20] sm:$0xff]  ;;  %v79_v1 = vld [vmem:[%s4721_s26 + $0x28] sm:$0xff]  ;;  %v76_v2 = vld [vmem:[%s4721_s26 + $0x10] sm:$0xff] }
   0xe   :  { %v84_v3 = vpack.c.bf16 %v79_v1, %v78_v0  ;;  %v77_v4 = vld [vmem:[%s4721_s26 + $0x18] sm:$0xff]  ;;  %v74_v5 = vld [vmem:[%s4721_s26] sm:$0xff]  ;;  %v75_v7 = vld [vmem:[%s4721_s26 + $0x8] sm:$0xff] }
   0xf   :  { %v83_v6 = vpack.c.bf16 %v77_v4, %v76_v2  ;;  %v70_v8 = vld [vmem:[%s4722_s2] sm:$0xff]  ;;  %v71_v9 = vld [vmem:[%s4722_s2 + $0x8] sm:$0xff] }
  0x10   :  { %3177 = vmatprep.subr.bf16.mxu0 %v84_v3  ;;  %v80_v10 = vpack.c.bf16 %v71_v9, %v70_v8 }
  0x11   :  { %26 = vsyncpa [#allocation5], 0  ;;  %3178 = vmatpush3.bf16.msra.mxu0 %v84_v3  ;;  %v82_v11 = vpack.c.bf16 %v75_v7, %v74_v5  ;;  %v72_v12 = vld [vmem:[%s4722_s2 + $0x10] sm:$0xff]  ;;  %v73_v13 = vld [vmem:[%s4722_s2 + $0x18] sm:$0xff]  ;;  %s4723_s30 = sld [smem:[#allocation11_spill]]  ;;  %vm153_vm1 = vcmask 253952  }
  0x12   :  { %3179 = vmatprep.subr.bf16.mxu0 %v83_v6  ;;  %3183 = vmatprep.mubr.msk.bf16.mxu0 %vm92_vm0, %v80_v10  ;;  %v81_v14 = vpack.c.bf16 %v73_v13, %v72_v12  ;;  %s4724_s23 = sld [smem:[#allocation10_spill]]  ;;  %vm158_vm2 = vcmask 1046528   ;;  %vm168_vm3 = vcmask 261120   ;;  %v274_v2 = vld [vmem:[%s4701_s11 + $0x10] sm:$0xff]  ;;  %v275_v3 = vld [vmem:[%s4701_s11 + $0x18] sm:$0xff]  ;;  %v272_v4 = vld [vmem:[%s4701_s11] sm:$0xff] }
  0x13   :  { %s4725_s28 = sld [smem:[#allocation9_spill]]  ;;  %v3678_v5 = vmov 0.0   ;;  %v273_v7 = vld [vmem:[%s4701_s11 + $0x8] sm:$0xff]  ;;  %vm3679_vm4 = vmmov 0   ;;  %vm361_vm5 = vcmask 130048   ;;  %s3681_s26 = smov 80  }
  0x14   :  { %3187 = vmatprep.subr.bf16.mxu1 %v3678_v5  ;;  %3191 = vmatprep.mubr.msk.bf16.mxu1 %vm3679_vm4, %v3678_v5  ;;  %v279_v8 = vpack.c.bf16 %v273_v7, %v272_v4  ;;  %s3682_s29 = smov 112   ;;  %vm195_vm6 = vcmask 254976   ;;  %vm425_vm7 = vcmask 138240   ;;  %vm432_vm8 = vcmask 131072   ;;  %s3683_s0 = smov 64  }
  0x15   :  { %3180 = vmatpush3.bf16.msra.mxu0 %v83_v6  ;;  %v280_v6 = vpack.c.bf16 %v275_v3, %v274_v2  ;;  %s3684_s4 = smov 48   ;;  %vm718_vm9 = vsmask.f32 7424  ;;  %vm473_vm10 = vcmask 1040384   ;;  %vm529_vm11 = vcmask 122880  }
  0x16   :  { %3181 = vmatprep.subr.bf16.mxu0 %v82_v11  ;;  %vm711_vm12 = vcmask 261248   ;;  %vm714_vm13 = vcmask 254080   ;;  %vm1409_vm14 = vcmask 523264   ;;  %vm2863_vm15 = vcmask 254977  }
  0x17   :  { %v148_v15 = vld [vmem:[%s4723_s30] sm:$0xff]  ;;  %v149_v18 = vld [vmem:[%s4723_s30 + $0x8] sm:$0xff]  ;;  %v150_v21 = vld [vmem:[%s4723_s30 + $0x10] sm:$0x1]  ;;  %3188 = vmatpush3.bf16.msra.mxu1 %v280_v6  ;;  %s3686_s30 = smov 16  }
  0x18   :  { %v151_v16 = vld [vmem:[%s4724_s23] sm:$0x1]  ;;  %v159_v19 = vrot.slane %v148_v15, 1  ;;  %v160_v20 = vrot.slane %v149_v18, 1  ;;  %v162_v25 = vrot.slane %v150_v21, 1  ;;  %3189 = vmatprep.subr.bf16.mxu1 %v3678_v5 }
  0x19   :  { %3182 = vmatpush3.bf16.msra.mxu0 %v82_v11  ;;  %v152_v17 = vadd.f32 %v151_v16, %v148_v15  ;;  %v2953_v22 = vld [vmem:[%s4725_s28] ss:$0 sm:$0xff]  ;;  %s3680_s28 = smov 96  }
  0x1a   :  { %v161_v24 = vsel %vm158_vm2, %v159_v19, %v160_v20  ;;  %v163_v31 = vsel %vm158_vm2, %v160_v20, %v162_v25 }
  0x1b   :  { %154 = vst.msk [vmem:[#allocation2] sm:$0x1] %vm153_vm1, %v152_v17  ;;  %171 = vst.msk [vmem:[#allocation2 + $0x11] sm:$0x1] %vm153_vm1, %v152_v17  ;;  %3190 = vmatpush3.bf16.msra.mxu1 %v279_v8 }
  0x1c   :  { %3184 = vmatmul.mubr.msk.bf16.vlgmr.msra.gmra.mxu0 %vm92_vm0, %v81_v14  ;;  %vm2861_vm0 = vcmask 57344  }
  0xdc   :  { %v3185_v23 = vpop.f32.mrf.mxu0 }
  0xdd   :  { %v142_v26 = vadd.f32 %v3185_v23, %v2953_v22  ;;  %v3884_v23 = vld [vmem:[%s4699_s9] ss:$0 sm:$0xff] }
  0xde   :  { %v133_v27 = vpop.f32.mrf.mxu0 }
  0xdf   :  { %v172_v28 = vadd.f32 %v161_v24, %v142_v26  ;;  %v134_v29 = vadd.f32 %v2953_v22, %v133_v27 }
  0xe0   :  { %v3186_v30 = vpop.f32.mrf.mxu0 }
  0xe1   :  { %174 = vst.msk [vmem:[#allocation2 + $0x12] sm:$0xff] %vm168_vm3, %v172_v28  ;;  %v166_v32 = vadd.f32 %v161_v24, %v134_v29  ;;  %v145_v33 = vadd.f32 %v3186_v30, %v2953_v22  ;;  %v3890_v28 = vld [vmem:[%s4700_s10] ss:$0 sm:$0xff] }
  0xe2   :  { %v136_v34 = vpop.f32.mrf.mxu0 }
  0xe3   :  { %169 = vst.msk [vmem:[#allocation2 + $0x1] sm:$0xff] %vm168_vm3, %v166_v32  ;;  %v173_v35 = vadd.f32 %v163_v31, %v145_v33  ;;  %v137_v36 = vadd.f32 %v2953_v22, %v136_v34 }
  0xe5   :  { %175 = vst.msk [vmem:[#allocation2 + $0x1a] sm:$0xff] %vm168_vm3, %v173_v35  ;;  %v167_v37 = vadd.f32 %v163_v31, %v137_v36 }
  0xe7   :  { %170 = vst.msk [vmem:[#allocation2 + $0x9] sm:$0xff] %vm168_vm3, %v167_v37 }
  0xea   :  { %v3849_v38 = vld [vmem:[#allocation2] sm:$0xff] }
  0xeb   :  { %v183_v39 = vsel %vm168_vm3, %v3849_v38, 0.0 }
  0xec   :  { %184 = vadd.xlane.f32.xlu0 %v183_v39  ;;  %v179_v44 = vld [vmem:[#allocation2 + $0x18] sm:$0xff] }
  0xed   :  { %v192_v45 = vsel %vm168_vm3, %v179_v44, 0.0 }
  0xee   :  { %v178_v40 = vld [vmem:[#allocation2 + $0x10] sm:$0xff]  ;;  %v3853_v41 = vld [vmem:[#allocation2 + $0x8] sm:$0xff] }
  0xef   :  { %v189_v42 = vsel %vm168_vm3, %v178_v40, 0.0  ;;  %v186_v43 = vsel %vm168_vm3, %v3853_v41, 0.0 }
  0xf0   :  { %190 = vadd.xlane.f32.xlu1 %v189_v42  ;;  %187 = vadd.xlane.f32.xlu0 %v186_v43 }
  0xf4   :  { %193 = vadd.xlane.f32.xlu1 %v192_v45 }
 0x175   :  { %v185_v46 = vpop.xlane.xlu0 %184 }
 0x176   :  { %v200_v47 = vmul.f32 0.03125, %v185_v46 }
 0x178   :  { %v205_v48 = vsub.f32 %v3849_v38, %v200_v47 }
 0x179   :  { %v191_v49 = vpop.xlane.xlu1 %190  ;;  %v188_v50 = vpop.xlane.xlu0 %187 }
 0x17a   :  { %v202_v51 = vmul.f32 0.03125, %v191_v49  ;;  %v201_v52 = vmul.f32 0.03125, %v188_v50  ;;  %v210_v53 = vmul.f32 %v205_v48, %v205_v48 }
 0x17c   :  { %v207_v54 = vsub.f32 %v178_v40, %v202_v51  ;;  %v206_v55 = vsub.f32 %v3853_v41, %v201_v52  ;;  %v215_v56 = vsel %vm168_vm3, %v210_v53, 0.0 }
 0x17d   :  { %v194_v57 = vpop.xlane.xlu1 %193  ;;  %216 = vadd.xlane.f32.xlu0 %v215_v56 }
 0x17e   :  { %v203_v58 = vmul.f32 0.03125, %v194_v57  ;;  %v212_v59 = vmul.f32 %v207_v54, %v207_v54  ;;  %v211_v60 = vmul.f32 %v206_v55, %v206_v55 }
 0x180   :  { %v208_v61 = vsub.f32 %v179_v44, %v203_v58  ;;  %v221_v62 = vsel %vm168_vm3, %v212_v59, 0.0  ;;  %v218_v63 = vsel %vm168_vm3, %v211_v60, 0.0  ;;  %v3908_v44 = vld [vmem:[%s4702_s12] ss:$0 sm:$0xff] }
 0x181   :  { %222 = vadd.xlane.f32.xlu0 %v221_v62  ;;  %219 = vadd.xlane.f32.xlu1 %v218_v63  ;;  %v180_v59 = vld [vmem:[#allocation2 + $0x20] sm:$0x3] }
 0x182   :  { %v213_v0 = vmul.f32 %v208_v61, %v208_v61  ;;  %v196_v60 = vsel %vm195_vm6, %v180_v59, 0.0 }
 0x184   :  { %v224_v1 = vsel %vm168_vm3, %v213_v0, 0.0 }
 0x185   :  { %225 = vadd.xlane.f32.xlu1 %v224_v1 }
 0x206   :  { %v217_v9 = vpop.xlane.xlu0 %216 }
 0x207   :  { %v230_v10 = vmul.f32 0.03125, %v217_v9 }
 0x209   :  { %v235_v11 = vadd.f32 1e-06, %v230_v10 }
 0x20a   :  { %v220_v12 = vpop.xlane.xlu1 %219  ;;  %v223_v13 = vpop.xlane.xlu0 %222 }
 0x20b   :  { %3493 = vrsqrt.f32 %v235_v11  ;;  %v231_v14 = vmul.f32 0.03125, %v220_v12  ;;  %v232_v15 = vmul.f32 0.03125, %v223_v13 }
 0x20d   :  { %v236_v16 = vadd.f32 1e-06, %v231_v14  ;;  %v237_v17 = vadd.f32 1e-06, %v232_v15 }
 0x20e   :  { %v226_v18 = vpop.xlane.xlu1 %225 }
 0x20f   :  { %3495 = vrsqrt.f32 %v236_v16  ;;  %v233_v19 = vmul.f32 0.03125, %v226_v18 }
 0x210   :  { %3497 = vrsqrt.f32 %v237_v17 }
 0x211   :  { %v238_v20 = vadd.f32 1e-06, %v233_v19 }
 0x213   :  { %3499 = vrsqrt.f32 %v238_v20 }
 0x218   :  { %v3494_v21 = vpop.eup %3493 }
 0x219   :  { %v245_v22 = vmul.f32 %v3494_v21, %v205_v48 }
 0x21b   :  { %v256_v26 = vmul.f32 %v3884_v23, %v245_v22 }
 0x21c   :  { %v3496_v24 = vpop.eup %3495 }
 0x21d   :  { %v246_v25 = vmul.f32 %v3496_v24, %v206_v55  ;;  %v3498_v27 = vpop.eup %3497  ;;  %v267_v31 = vadd.f32 %v3890_v28, %v256_v26 }
 0x21e   :  { %v247_v33 = vmul.f32 %v3498_v27, %v207_v54 }
 0x21f   :  { %v257_v29 = vmul.f32 %v3884_v23, %v246_v25 }
 0x220   :  { %v3500_v30 = vpop.eup %3499  ;;  %v258_v37 = vmul.f32 %v3884_v23, %v247_v33 }
 0x221   :  { %v268_v32 = vadd.f32 %v3890_v28, %v257_v29  ;;  %v248_v34 = vmul.f32 %v3500_v30, %v208_v61 }
 0x222   :  { %v269_v40 = vadd.f32 %v3890_v28, %v258_v37 }
 0x223   :  { %v276_v35 = vpack.c.bf16 %v268_v32, %v267_v31  ;;  %v259_v36 = vmul.f32 %v3884_v23, %v248_v34 }
 0x225   :  { %3192 = vmatmul.mubr.msk.bf16.vlgmr.msra.gmra.mxu1 %vm168_vm3, %v276_v35  ;;  %v270_v39 = vadd.f32 %v3890_v28, %v259_v36 }
 0x226   :  { %3195 = vmatprep.mubr.msk.bf16.mxu1 %vm3679_vm4, %v3678_v5 }
 0x227   :  { %v277_v42 = vpack.c.bf16 %v270_v39, %v269_v40 }
 0x22d   :  { %3196 = vmatmul.mubr.msk.bf16.gmra.mxu1 %vm168_vm3, %v277_v42 }
 0x22e   :  { %3199 = vmatprep.mubr.msk.bf16.mxu1 %vm3679_vm4, %v3678_v5 }
 0x2e5   :  { %v331_v43 = vpop.f32.mrf.mxu1 }
 0x2e6   :  { %v332_v47 = vadd.f32 %v3908_v44, %v331_v43 }
 0x2e7   :  { %v3193_v45 = vpop.f32.mrf.mxu1 }
 0x2e9   :  { %v334_v46 = vpop.f32.mrf.mxu1 }
 0x2ea   :  { %v335_v48 = vadd.f32 %v3908_v44, %v334_v46 }
 0x2eb   :  { %v3194_v49 = vpop.f32.mrf.mxu1 }
 0x2ec   :  { %v3912_v50 = vpack.c.bf16 %v335_v48, %v332_v47 }
 0x2ed   :  { %v339_v51 = vpop.f32.mrf.mxu1 }
 0x2ee   :  { %v340_v52 = vadd.f32 %v3908_v44, %v339_v51  ;;  %357 = vrot.lane.b32.xlu1 %v3912_v50, %s3680_s28  ;;  %3207 = vmatprep.mubr.msk.bf16.mxu0 %vm361_vm5, %v3912_v50 }
 0x2ef   :  { %v3197_v53 = vpop.f32.mrf.mxu1 }
 0x2f0   :  { %v3919_v54 = vpack.c.bf16 %v340_v52, %v340_v52 }
 0x2f1   :  { %v342_v55 = vpop.f32.mrf.mxu1 }
 0x2f2   :  { %v343_v56 = vadd.f32 %v3908_v44, %v342_v55  ;;  %537 = vrot.lane.b32.xlu1 %v3919_v54, %s3681_s26  ;;  %359 = vrot.lane.b32.xlu0 %v3919_v54, %s3680_s28 }
 0x2f3   :  { %v3198_v57 = vpop.f32.mrf.mxu1 }
 0x2f4   :  { %v3926_v58 = vpack.c.bf16 %v343_v56, %v340_v52 }
 0x2f6   :  { %535 = vrot.lane.b32.xlu1 %v3912_v50, %s3681_s26  ;;  %531 = vrot.lane.b32.xlu0 %v3912_v50, %s3682_s29 }
 0x2fa   :  { %533 = vrot.lane.b32.xlu1 %v3919_v54, %s3682_s29 }
 0x315   :  { %197 = vadd.xlane.f32.xlu0 %v196_v60 }
 0x360   :  { %v358_v63 = vpop.permute.xlu1 %357 }
 0x361   :  { %v369_v0 = vsel %vm361_vm5, %v358_v63, 0 }
 0x364   :  { %v360_v61 = vpop.permute.xlu0 %359  ;;  %v538_v1 = vpop.permute.xlu1 %537 }
 0x365   :  { %3467 = vmatprep.subr.msk.bf16.mxu0 %vm361_vm5, %v360_v61  ;;  %v372_v62 = vsel %vm361_vm5, %v360_v61, 0  ;;  %v549_v3 = vsel %vm361_vm5, %v538_v1, 0 }
 0x366   :  { %3204 = vmatpush3.bf16.xpose.msra.mxu0 %v372_v62 }
 0x367   :  { %3468 = vmatprep.subr.msk.bf16.mxu0 %vm361_vm5, %v358_v63 }
 0x368   :  { %v532_v2 = vpop.permute.xlu0 %531  ;;  %v536_v4 = vpop.permute.xlu1 %535 }
 0x369   :  { %v546_v6 = vsel %vm361_vm5, %v536_v4, 0 }
 0x36c   :  { %v534_v7 = vpop.permute.xlu1 %533 }
 0x36e   :  { %3206 = vmatpush3.bf16.xpose.msra.mxu0 %v369_v0 }
 0x36f   :  { %3469 = vmatprep.subr.msk.bf16.mxu0 %vm361_vm5, %v538_v1 }
 0x375   :  { %3208 = vmatmul.mubr.msk.bf16.vlgmr.msra.gmra.mxu0 %vm361_vm5, %v3919_v54 }
 0x376   :  { %3220 = vmatpush3.bf16.xpose.msra.mxu0 %v549_v3  ;;  %3223 = vmatprep.mubr.msk.bf16.mxu0 %vm361_vm5, %v532_v2 }
 0x377   :  { %3470 = vmatprep.subr.msk.bf16.mxu0 %vm361_vm5, %v536_v4 }
 0x37e   :  { %3222 = vmatpush3.bf16.xpose.msra.mxu0 %v546_v6 }
 0x385   :  { %3224 = vmatmul.mubr.msk.bf16.vlgmr.msra.gmra.mxu0 %vm361_vm5, %v534_v7 }
 0x39e   :  { %v198_v8 = vpop.xlane.xlu0 %197 }
 0x39f   :  { %v204_v9 = vmul.f32 0.03125, %v198_v8 }
 0x3a1   :  { %v209_v10 = vsub.f32 %v180_v59, %v204_v9 }
 0x3a3   :  { %v214_v11 = vmul.f32 %v209_v10, %v209_v10 }
 0x3a5   :  { %v227_v12 = vsel %vm195_vm6, %v214_v11, 0.0 }
 0x3a6   :  { %228 = vadd.xlane.f32.xlu1 %v227_v12  ;;  %v722_v12 = vshll.u32 %v3926_v58, 16 }
 0x42f   :  { %v229_v13 = vpop.xlane.xlu1 %228 }
 0x430   :  { %v234_v14 = vmul.f32 0.03125, %v229_v13 }
 0x432   :  { %v239_v15 = vadd.f32 1e-06, %v234_v14 }
 0x434   :  { %3501 = vrsqrt.f32 %v239_v15 }
 0x435   :  { %v3209_v16 = vpop.f32.mrf.mxu0 }
 0x436   :  { %v424_v24 = vmul.f32 0.25, %v3209_v16  ;;  %v724_v16 = vrot.slane %v722_v12, 1 }
 0x437   :  { %v408_v17 = vpop.f32.mrf.mxu0 }
 0x438   :  { %v422_v18 = vmul.f32 0.25, %v408_v17  ;;  %v433_v27 = vsel %vm432_vm8, %v424_v24, -inf }
 0x439   :  { %v3210_v19 = vpop.f32.mrf.mxu0 }
 0x43a   :  { %v426_v20 = vsel %vm425_vm7, %v422_v18, -inf  ;;  %v720_v19 = vshrl.u32 %v3926_v58, 16 }
 0x43b   :  { %427 = vmax.xlane.f32.xlu0 %v426_v20  ;;  %v411_v21 = vpop.f32.mrf.mxu0 }
 0x43c   :  { %v423_v22 = vmul.f32 0.25, %v411_v21  ;;  %v725_v21 = vor.u32 %v724_v16, %v720_v19 }
 0x43e   :  { %v429_v25 = vsel %vm425_vm7, %v423_v22, -inf }
 0x43f   :  { %430 = vmax.xlane.f32.xlu0 %v429_v25 }
 0x441   :  { %v3502_v26 = vpop.eup %3501 }
 0x442   :  { %v249_v29 = vmul.f32 %v3502_v26, %v209_v10 }
 0x443   :  { %434 = vmax.xlane.f32.xlu0 %v433_v27 }
 0x444   :  { %v260_v30 = vmul.f32 %v3884_v23, %v249_v29 }
 0x445   :  { %v3225_v31 = vpop.f32.mrf.mxu0 }
 0x446   :  { %v271_v32 = vadd.f32 %v3890_v28, %v260_v30  ;;  %v601_v37 = vmul.f32 0.25, %v3225_v31  ;;  %v3685_v31 = vmov 0  }
 0x447   :  { %v585_v33 = vpop.f32.mrf.mxu0 }
 0x448   :  { %v599_v34 = vmul.f32 0.25, %v585_v33  ;;  %v278_v35 = vpack.c.bf16 %v271_v32, %v271_v32  ;;  %v608_v45 = vsel %vm432_vm8, %v601_v37, -inf  ;;  %v3992_v32 = vsel %vm473_vm10, 65535, %v3685_v31 }
 0x449   :  { %v3226_v36 = vpop.f32.mrf.mxu0 }
 0x44a   :  { %3200 = vmatmul.mubr.msk.bf16.gmra.mxu1 %vm168_vm3, %v278_v35  ;;  %v602_v39 = vsel %vm425_vm7, %v599_v34, -inf }
 0x44b   :  { %v588_v40 = vpop.f32.mrf.mxu0  ;;  %603 = vmax.xlane.f32.xlu1 %v602_v39 }
 0x44c   :  { %v600_v42 = vmul.f32 0.25, %v588_v40 }
 0x44e   :  { %v605_v43 = vsel %vm425_vm7, %v600_v42, -inf }
 0x44f   :  { %606 = vmax.xlane.f32.xlu0 %v605_v43  ;;  %609 = vmax.xlane.f32.xlu1 %v608_v45 }
 0x460   :  { %462 = vrot.lane.b32.xlu1 %v3912_v50, %s3683_s0 }
 0x464   :  { %639 = vrot.lane.b32.xlu1 %v3919_v54, %s3684_s4 }
 0x4c4   :  { %v428_v23 = vpop.xlane.xlu0 %427 }
 0x4c5   :  { %v436_v47 = vsub.f32 %v422_v18, %v428_v23 }
 0x4c7   :  { %v439_v52 = vmul.f32 1.442695, %v436_v47 }
 0x4c8   :  { %v431_v28 = vpop.xlane.xlu0 %430 }
 0x4c9   :  { %v437_v46 = vsub.f32 %v423_v22, %v431_v28 }
 0x4cb   :  { %v441_v48 = vmul.f32 1.442695, %v437_v46 }
 0x4cc   :  { %v435_v49 = vpop.xlane.xlu0 %434 }
 0x4cd   :  { %3503 = vpow2.f32 %v441_v48  ;;  %v438_v51 = vsub.f32 %v424_v24, %v435_v49 }
 0x4cf   :  { %v443_v53 = vmul.f32 1.442695, %v438_v51 }
 0x4d1   :  { %3505 = vpow2.f32 %v443_v53 }
 0x4d2   :  { %3507 = vpow2.f32 %v439_v52 }
 0x4d4   :  { %v604_v55 = vpop.xlane.xlu1 %603 }
 0x4d5   :  { %v611_v56 = vsub.f32 %v599_v34, %v604_v55 }
 0x4d7   :  { %v614_v61 = vmul.f32 1.442695, %v611_v56 }
 0x4d8   :  { %v610_v57 = vpop.xlane.xlu1 %609  ;;  %v607_v9 = vpop.xlane.xlu0 %606 }
 0x4d9   :  { %v613_v59 = vsub.f32 %v601_v37, %v610_v57  ;;  %v612_v10 = vsub.f32 %v600_v42, %v607_v9 }
 0x4da   :  { %v3961_v60 = vpop.eup %3503 }
 0x4db   :  { %v618_v62 = vmul.f32 1.442695, %v613_v59  ;;  %v448_v63 = vsel %vm425_vm7, %v3961_v60, 0.0  ;;  %v616_v11 = vmul.f32 1.442695, %v612_v10 }
 0x4dc   :  { %449 = vadd.xlane.f32.xlu1 %v448_v63  ;;  %v463_v58 = vpop.permute.xlu1 %462 }
 0x4dd   :  { %3509 = vpow2.f32 %v618_v62 }
 0x4de   :  { %v3506_v0 = vpop.eup %3505  ;;  %3511 = vpow2.f32 %v614_v61 }
 0x4df   :  { %v451_v1 = vsel %vm432_vm8, %v3506_v0, 0.0  ;;  %v3508_v2 = vpop.eup %3507  ;;  %3513 = vpow2.f32 %v616_v11 }
 0x4e0   :  { %452 = vadd.xlane.f32.xlu0 %v451_v1  ;;  %v445_v3 = vsel %vm425_vm7, %v3508_v2, 0.0  ;;  %v640_v26 = vpop.permute.xlu1 %639 }
 0x4e1   :  { %v649_v37 = vand.u32 %v640_v26, %v3992_v32 }
 0x4e4   :  { %446 = vadd.xlane.f32.xlu0 %v445_v3 }
 0x4ea   :  { %v3967_v4 = vpop.eup %3509 }
 0x4eb   :  { %v626_v6 = vsel %vm432_vm8, %v3967_v4, 0.0  ;;  %v3971_v7 = vpop.eup %3511 }
 0x4ec   :  { %627 = vadd.xlane.f32.xlu1 %v626_v6  ;;  %v620_v8 = vsel %vm425_vm7, %v3971_v7, 0.0  ;;  %v3514_v24 = vpop.eup %3513 }
 0x4f0   :  { %621 = vadd.xlane.f32.xlu1 %v620_v8 }
 0x4fa   :  { %464 = vrot.lane.b32.xlu0 %v3919_v54, %s3683_s0 }
 0x501   :  { %637 = vrot.lane.b32.xlu1 %v3912_v50, %s3684_s4 }
 0x50a   :  { %v347_v13 = vpop.f32.mrf.mxu1 }
 0x50b   :  { %v348_v14 = vadd.f32 %v3908_v44, %v347_v13  ;;  %v623_v44 = vsel %vm425_vm7, %v3514_v24, 0.0 }
 0x50c   :  { %v3201_v15 = vpop.f32.mrf.mxu1 }
 0x50d   :  { %v717_v17 = vpack.c.bf16 %v348_v14, %v348_v14 }
 0x50e   :  { %v350_v18 = vpop.f32.mrf.mxu1 }
 0x50f   :  { %v727_v20 = vshll.u32 %v717_v17, 16  ;;  %v3988_v25 = vshrl.u32 %v717_v17, 16 }
 0x510   :  { %v3202_v54 = vpop.f32.mrf.mxu1 }
 0x511   :  { %v729_v22 = vrot.slane %v727_v20, 1 }
 0x513   :  { %v3983_v50 = vsel %vm718_vm9, %v725_v21, %v729_v22 }
 0x514   :  { %733 = vrot.lane.b32.xlu1 %v3983_v50, %s3680_s28 }
 0x519   :  { %624 = vadd.xlane.f32.xlu0 %v623_v44 }
 0x52f   :  { %735 = vrot.lane.b32.xlu0 %v3988_v25, %s3680_s28 }
 0x565   :  { %v450_v27 = vpop.xlane.xlu1 %449 }
 0x569   :  { %v453_v29 = vpop.xlane.xlu0 %452 }
 0x56a   :  { %3515 = vrcp.f32 %v453_v29 }
 0x56b   :  { %3517 = vrcp.f32 %v450_v27 }
 0x56d   :  { %v447_v30 = vpop.xlane.xlu0 %446 }
 0x56e   :  { %3519 = vrcp.f32 %v447_v30 }
 0x571   :  { %v465_v33 = vpop.permute.xlu0 %464 }
 0x572   :  { %v477_v34 = vand.u32 %v3992_v32, %v465_v33 }
 0x574   :  { %3211 = vmatprep.subr.bf16.mxu1 %v477_v34 }
 0x575   :  { %3212 = vmatpush3.bf16.msra.mxu1 %v477_v34  ;;  %v628_v35 = vpop.xlane.xlu1 %627 }
 0x576   :  { %3213 = vmatprep.subr.bf16.mxu1 %v463_v58  ;;  %3521 = vrcp.f32 %v628_v35 }
 0x577   :  { %v3516_v36 = vpop.eup %3515 }
 0x578   :  { %v3518_v39 = vpop.eup %3517  ;;  %v459_v42 = vmul.f32 %v3516_v36, %v3506_v0 }
 0x579   :  { %3214 = vmatpush3.bf16.msra.mxu1 %v463_v58  ;;  %v622_v43 = vpop.xlane.xlu1 %621  ;;  %v458_v23 = vmul.f32 %v3518_v39, %v3961_v60 }
 0x57a   :  { %3227 = vmatprep.subr.bf16.mxu1 %v649_v37  ;;  %v461_v46 = vpack.c.bf16 %v459_v42, %v459_v42  ;;  %3523 = vrcp.f32 %v622_v43 }
 0x57b   :  { %v3520_v40 = vpop.eup %3519 }
 0x57c   :  { %v457_v45 = vmul.f32 %v3520_v40, %v3508_v2 }
 0x57d   :  { %v638_v47 = vpop.permute.xlu1 %637 }
 0x57e   :  { %v460_v28 = vpack.c.bf16 %v458_v23, %v457_v45 }
 0x580   :  { %3215 = vmatprep.mubr.msk.bf16.mxu1 %vm425_vm7, %v460_v28 }
 0x581   :  { %3216 = vmatmul.mubr.msk.bf16.vlgmr.msra.gmra.mxu1 %vm425_vm7, %v461_v46 }
 0x582   :  { %3228 = vmatpush3.bf16.msra.mxu1 %v649_v37 }
 0x583   :  { %3229 = vmatprep.subr.bf16.mxu1 %v638_v47  ;;  %v3522_v51 = vpop.eup %3521 }
 0x584   :  { %v634_v55 = vmul.f32 %v3522_v51, %v3967_v4 }
 0x586   :  { %3230 = vmatpush3.bf16.msra.mxu1 %v638_v47  ;;  %v636_v60 = vpack.c.bf16 %v634_v55, %v634_v55  ;;  %v734_v62 = vpop.permute.xlu1 %733 }
 0x587   :  { %v3524_v52 = vpop.eup %3523  ;;  %v744_v63 = vsel %vm361_vm5, %v734_v62, 0 }
 0x588   :  { %v632_v56 = vmul.f32 %v3524_v52, %v3971_v7 }
 0x5a2   :  { %v625_v48 = vpop.xlane.xlu0 %624 }
 0x5a3   :  { %3525 = vrcp.f32 %v625_v48 }
 0x5a6   :  { %v736_v49 = vpop.permute.xlu0 %735 }
 0x5a7   :  { %3471 = vmatprep.subr.msk.bf16.mxu1 %vm361_vm5, %v736_v49  ;;  %v747_v61 = vsel %vm361_vm5, %v736_v49, 0 }
 0x5b0   :  { %v3526_v53 = vpop.eup %3525 }
 0x5b1   :  { %v633_v57 = vmul.f32 %v3526_v53, %v3514_v24 }
 0x5b3   :  { %v635_v59 = vpack.c.bf16 %v633_v57, %v632_v56 }
 0x5b5   :  { %3231 = vmatprep.mubr.msk.bf16.mxu1 %vm425_vm7, %v635_v59 }
 0x5b6   :  { %3232 = vmatmul.mubr.msk.bf16.vlgmr.msra.gmra.mxu1 %vm425_vm7, %v636_v60 }
 0x5b7   :  { %3236 = vmatpush3.bf16.xpose.msra.mxu1 %v747_v61  ;;  %3239 = vmatprep.mubr.msk.bf16.mxu1 %vm361_vm5, %v3983_v50 }
 0x5b8   :  { %3472 = vmatprep.subr.msk.bf16.mxu1 %vm361_vm5, %v734_v62 }
 0x5bf   :  { %3238 = vmatpush3.bf16.xpose.msra.mxu1 %v744_v63 }
 0x5c6   :  { %3240 = vmatmul.mubr.msk.bf16.vlgmr.msra.gmra.mxu1 %vm361_vm5, %v3988_v25 }
 0x641   :  { %v3217_v0 = vpop.f32.mrf.mxu1 }
 0x642   :  { %530 = vst.msk [vmem:[#allocation3 + $0x10] sm:$0x1] %vm529_vm11, %v3217_v0 }
 0x643   :  { %v513_v1 = vpop.f32.mrf.mxu1 }
 0x644   :  { %527 = vst.msk [vmem:[#allocation3] sm:$0xff] %vm361_vm5, %v513_v1 }
 0x645   :  { %v3218_v2 = vpop.f32.mrf.mxu1 }
 0x647   :  { %v516_v3 = vpop.f32.mrf.mxu1 }
 0x648   :  { %528 = vst.msk [vmem:[#allocation3 + $0x8] sm:$0xff] %vm361_vm5, %v516_v3 }
 0x676   :  { %v4014_v4 = vpop.f32.mrf.mxu1 }
 0x678   :  { %v4016_v6 = vpop.f32.mrf.mxu1 }
 0x67a   :  { %v3234_v7 = vpop.f32.mrf.mxu1 }
 0x67c   :  { %v4018_v8 = vpop.f32.mrf.mxu1 }
 0x686   :  { %v3241_v9 = vpop.f32.mrf.mxu1 }
 0x687   :  { %v799_v13 = vmul.f32 0.25, %v3241_v9 }
 0x688   :  { %v783_v10 = vpop.f32.mrf.mxu1 }
 0x689   :  { %v797_v11 = vmul.f32 0.25, %v783_v10  ;;  %v806_v17 = vsel %vm432_vm8, %v799_v13, -inf }
 0x68a   :  { %v3242_v12 = vpop.f32.mrf.mxu1 }
 0x68b   :  { %v800_v14 = vsel %vm425_vm7, %v797_v11, -inf }
 0x68c   :  { %801 = vmax.xlane.f32.xlu0 %v800_v14  ;;  %v786_v15 = vpop.f32.mrf.mxu1 }
 0x68d   :  { %v798_v16 = vmul.f32 0.25, %v786_v15 }
 0x68f   :  { %v803_v18 = vsel %vm425_vm7, %v798_v16, -inf }
 0x690   :  { %807 = vmax.xlane.f32.xlu0 %v806_v17  ;;  %804 = vmax.xlane.f32.xlu1 %v803_v18 }
 0x715   :  { %v802_v19 = vpop.xlane.xlu0 %801 }
 0x716   :  { %v809_v20 = vsub.f32 %v797_v11, %v802_v19 }
 0x718   :  { %v812_v54 = vmul.f32 1.442695, %v809_v20 }
 0x719   :  { %v808_v21 = vpop.xlane.xlu0 %807  ;;  %v805_v22 = vpop.xlane.xlu1 %804 }
 0x71a   :  { %3527 = vpow2.f32 %v812_v54  ;;  %v811_v24 = vsub.f32 %v799_v13, %v808_v21  ;;  %v810_v44 = vsub.f32 %v798_v16, %v805_v22 }
 0x71c   :  { %v816_v58 = vmul.f32 1.442695, %v811_v24  ;;  %v814_v26 = vmul.f32 1.442695, %v810_v44 }
 0x71e   :  { %3529 = vpow2.f32 %v816_v58 }
 0x71f   :  { %3531 = vpow2.f32 %v814_v26 }
 0x727   :  { %v3528_v27 = vpop.eup %3527 }
 0x728   :  { %v818_v29 = vsel %vm425_vm7, %v3528_v27, 0.0 }
 0x729   :  { %819 = vadd.xlane.f32.xlu0 %v818_v29 }
 0x72b   :  { %v3530_v30 = vpop.eup %3529 }
 0x72c   :  { %v3532_v31 = vpop.eup %3531  ;;  %v824_v33 = vsel %vm432_vm8, %v3530_v30, 0.0 }
 0x72d   :  { %825 = vadd.xlane.f32.xlu1 %v824_v33  ;;  %v821_v34 = vsel %vm425_vm7, %v3532_v31, 0.0 }
 0x72e   :  { %822 = vadd.xlane.f32.xlu0 %v821_v34 }
 0x73e   :  { %835 = vrot.lane.b32.xlu1 %v3983_v50, %s3683_s0 }
 0x742   :  { %906 = vrot.lane.b32.xlu1 %v3988_v25, %s3681_s26 }
 0x744   :  { %837 = vrot.lane.b32.xlu0 %v3988_v25, %s3683_s0 }
 0x746   :  { %904 = vrot.lane.b32.xlu1 %v3983_v50, %s3681_s26 }
 0x748   :  { %900 = vrot.lane.b32.xlu0 %v3983_v50, %s3682_s29 }
 0x74a   :  { %902 = vrot.lane.b32.xlu1 %v3988_v25, %s3682_s29 }
 0x7b2   :  { %v820_v35 = vpop.xlane.xlu0 %819 }
 0x7b3   :  { %3533 = vrcp.f32 %v820_v35 }
 0x7b6   :  { %v826_v36 = vpop.xlane.xlu1 %825 }
 0x7b7   :  { %v823_v37 = vpop.xlane.xlu0 %822  ;;  %3535 = vrcp.f32 %v826_v36 }
 0x7b8   :  { %3537 = vrcp.f32 %v823_v37  ;;  %v1090_v37 = vld [vmem:[%s4703_s13 + $0x10] sm:$0xff] }
 0x7ba   :  { %v836_v42 = vpop.permute.xlu1 %835 }
 0x7bb   :  { %v838_v39 = vpop.permute.xlu0 %837 }
 0x7bc   :  { %v847_v40 = vand.u32 %v838_v39, %v3992_v32  ;;  %v1091_v39 = vld [vmem:[%s4703_s13 + $0x18] sm:$0xff] }
 0x7be   :  { %3243 = vmatprep.subr.bf16.mxu0 %v847_v40  ;;  %v907_v45 = vpop.permute.xlu1 %906 }
 0x7bf   :  { %3244 = vmatpush3.bf16.msra.mxu0 %v847_v40  ;;  %v901_v52 = vpop.permute.xlu0 %900  ;;  %v918_v53 = vsel %vm361_vm5, %v907_v45, 0 }
 0x7c0   :  { %3245 = vmatprep.subr.bf16.mxu0 %v836_v42  ;;  %v3534_v43 = vpop.eup %3533 }
 0x7c1   :  { %v830_v47 = vmul.f32 %v3534_v43, %v3528_v27 }
 0x7c2   :  { %v905_v55 = vpop.permute.xlu1 %904 }
 0x7c3   :  { %3246 = vmatpush3.bf16.msra.mxu0 %v836_v42  ;;  %v915_v56 = vsel %vm361_vm5, %v905_v55, 0 }
 0x7c4   :  { %v3536_v23 = vpop.eup %3535  ;;  %3473 = vmatprep.subr.msk.bf16.mxu0 %vm361_vm5, %v907_v45 }
 0x7c5   :  { %v3538_v28 = vpop.eup %3537  ;;  %v832_v46 = vmul.f32 %v3536_v23, %v3530_v30  ;;  %v1096_v23 = vpack.c.bf16 %v1091_v39, %v1090_v37 }
 0x7c6   :  { %v831_v48 = vmul.f32 %v3538_v28, %v3532_v31  ;;  %v903_v57 = vpop.permute.xlu1 %902  ;;  %v1088_v28 = vld [vmem:[%s4703_s13] sm:$0xff] }
 0x7c7   :  { %v834_v49 = vpack.c.bf16 %v832_v46, %v832_v46  ;;  %v1089_v46 = vld [vmem:[%s4703_s13 + $0x8] sm:$0xff] }
 0x7c8   :  { %v833_v51 = vpack.c.bf16 %v831_v48, %v830_v47  ;;  %v1095_v47 = vpack.c.bf16 %v1089_v46, %v1088_v28 }
 0x7ca   :  { %3247 = vmatprep.mubr.msk.bf16.mxu0 %vm425_vm7, %v833_v51 }
 0x7cb   :  { %3248 = vmatmul.mubr.msk.bf16.vlgmr.msra.gmra.mxu0 %vm425_vm7, %v834_v49 }
 0x7cc   :  { %3252 = vmatpush3.bf16.xpose.msra.mxu0 %v918_v53  ;;  %3255 = vmatprep.mubr.msk.bf16.mxu0 %vm361_vm5, %v901_v52 }
 0x7cd   :  { %3474 = vmatprep.subr.msk.bf16.mxu0 %vm361_vm5, %v905_v55 }
 0x7d4   :  { %3254 = vmatpush3.bf16.xpose.msra.mxu0 %v915_v56 }
 0x7d5   :  { %3283 = vmatprep.subr.bf16.mxu0 %v3678_v5 }
 0x7db   :  { %3256 = vmatmul.mubr.msk.bf16.vlgmr.msra.gmra.mxu0 %vm361_vm5, %v903_v57 }
 0x7dc   :  { %3287 = vmatprep.mubr.msk.bf16.mxu0 %vm3679_vm4, %v3678_v5 }
 0x88b   :  { %v3249_v59 = vpop.f32.mrf.mxu0 }
 0x88c   :  { %899 = vst.msk [vmem:[#allocation3 + $0x21] sm:$0x1] %vm529_vm11, %v3249_v59 }
 0x88d   :  { %v883_v60 = vpop.f32.mrf.mxu0 }
 0x88e   :  { %897 = vst.msk [vmem:[#allocation3 + $0x11] sm:$0xff] %vm361_vm5, %v883_v60 }
 0x88f   :  { %v3250_v61 = vpop.f32.mrf.mxu0 }
 0x891   :  { %v886_v62 = vpop.f32.mrf.mxu0 }
 0x892   :  { %898 = vst.msk [vmem:[#allocation3 + $0x19] sm:$0xff] %vm361_vm5, %v886_v62 }
 0x89b   :  { %v3257_v63 = vpop.f32.mrf.mxu0 }
 0x89c   :  { %v970_v3 = vmul.f32 0.25, %v3257_v63 }
 0x89d   :  { %v954_v0 = vpop.f32.mrf.mxu0 }
 0x89e   :  { %v968_v1 = vmul.f32 0.25, %v954_v0  ;;  %v977_v11 = vsel %vm432_vm8, %v970_v3, -inf  ;;  %v4104_v0 = vld [vmem:[%s4704_s14] ss:$0 sm:$0xff] }
 0x89f   :  { %v3258_v2 = vpop.f32.mrf.mxu0 }
 0x8a0   :  { %v971_v7 = vsel %vm425_vm7, %v968_v1, -inf }
 0x8a1   :  { %972 = vmax.xlane.f32.xlu0 %v971_v7  ;;  %v957_v9 = vpop.f32.mrf.mxu0 }
 0x8a2   :  { %v969_v10 = vmul.f32 0.25, %v957_v9 }
 0x8a4   :  { %v974_v12 = vsel %vm425_vm7, %v969_v10, -inf }
 0x8a5   :  { %978 = vmax.xlane.f32.xlu0 %v977_v11  ;;  %975 = vmax.xlane.f32.xlu1 %v974_v12 }
 0x92a   :  { %v973_v13 = vpop.xlane.xlu0 %972 }
 0x92b   :  { %v980_v14 = vsub.f32 %v968_v1, %v973_v13 }
 0x92d   :  { %v983_v15 = vmul.f32 1.442695, %v980_v14 }
 0x92e   :  { %v979_v16 = vpop.xlane.xlu0 %978  ;;  %v976_v17 = vpop.xlane.xlu1 %975 }
 0x92f   :  { %3539 = vpow2.f32 %v983_v15  ;;  %v982_v18 = vsub.f32 %v970_v3, %v979_v16  ;;  %v981_v19 = vsub.f32 %v969_v10, %v976_v17 }
 0x931   :  { %v987_v20 = vmul.f32 1.442695, %v982_v18  ;;  %v985_v54 = vmul.f32 1.442695, %v981_v19 }
 0x933   :  { %3541 = vpow2.f32 %v987_v20  ;;  %v3653_v20 = vld [vmem:[#allocation2 + $0x10] sm:$0xff] }
 0x934   :  { %3543 = vpow2.f32 %v985_v54 }
 0x93c   :  { %v3540_v21 = vpop.eup %3539 }
 0x93d   :  { %v989_v22 = vsel %vm425_vm7, %v3540_v21, 0.0 }
 0x93e   :  { %990 = vadd.xlane.f32.xlu0 %v989_v22 }
 0x940   :  { %v3542_v24 = vpop.eup %3541 }
 0x941   :  { %v3544_v44 = vpop.eup %3543  ;;  %v995_v58 = vsel %vm432_vm8, %v3542_v24, 0.0 }
 0x942   :  { %996 = vadd.xlane.f32.xlu1 %v995_v58  ;;  %v992_v26 = vsel %vm425_vm7, %v3544_v44, 0.0  ;;  %v3654_v58 = vld [vmem:[#allocation2 + $0x18] sm:$0xff] }
 0x943   :  { %993 = vadd.xlane.f32.xlu0 %v992_v26 }
 0x953   :  { %1006 = vrot.lane.b32.xlu1 %v3983_v50, %s3684_s4 }
 0x957   :  { %702 = vrot.lane.b32.xlu1 %v4016_v6, %s3686_s30 }
 0x959   :  { %1008 = vrot.lane.b32.xlu0 %v3988_v25, %s3684_s4 }
 0x95b   :  { %704 = vrot.lane.b32.xlu1 %v4018_v8, %s3686_s30 }
 0x95d   :  { %706 = vrot.lane.b32.xlu0 %v4014_v4, %s3686_s30 }
 0x9c7   :  { %v991_v27 = vpop.xlane.xlu0 %990 }
 0x9c8   :  { %3545 = vrcp.f32 %v991_v27 }
 0x9cb   :  { %v997_v29 = vpop.xlane.xlu1 %996 }
 0x9cc   :  { %v994_v30 = vpop.xlane.xlu0 %993  ;;  %3547 = vrcp.f32 %v997_v29 }
 0x9cd   :  { %3549 = vrcp.f32 %v994_v30 }
 0x9cf   :  { %v1007_v50 = vpop.permute.xlu1 %1006 }
 0x9d0   :  { %v1009_v31 = vpop.permute.xlu0 %1008 }
 0x9d1   :  { %v1018_v33 = vand.u32 %v1009_v31, %v3992_v32 }
 0x9d3   :  { %3259 = vmatprep.subr.bf16.mxu1 %v1018_v33  ;;  %v703_v25 = vpop.permute.xlu1 %702 }
 0x9d4   :  { %3260 = vmatpush3.bf16.msra.mxu1 %v1018_v33  ;;  %v707_v6 = vpop.permute.xlu0 %706  ;;  %712 = vst.msk [vmem:[#allocation3] sm:$0xff] %vm711_vm12, %v703_v25  ;;  %v1270_v25 = vld [vmem:[%s4707_s17 + $0x10] sm:$0xff] }
 0x9d5   :  { %715 = vst.msk [vmem:[#allocation3 + $0x10] sm:$0x1] %vm714_vm13, %v707_v6  ;;  %3261 = vmatprep.subr.bf16.mxu1 %v1007_v50  ;;  %v3546_v8 = vpop.eup %3545  ;;  %v1271_v6 = vld [vmem:[%s4707_s17 + $0x18] sm:$0xff] }
 0x9d6   :  { %v1001_v40 = vmul.f32 %v3546_v8, %v3540_v21  ;;  %v1268_v8 = vld [vmem:[%s4707_s17] sm:$0xff] }
 0x9d7   :  { %v705_v4 = vpop.permute.xlu1 %704 }
 0x9d8   :  { %3262 = vmatpush3.bf16.msra.mxu1 %v1007_v50  ;;  %713 = vst.msk [vmem:[#allocation3 + $0x8] sm:$0xff] %vm711_vm12, %v705_v4  ;;  %v1276_v4 = vpack.c.bf16 %v1271_v6, %v1270_v25 }
 0x9d9   :  { %v3548_v34 = vpop.eup %3547  ;;  %3267 = vmatprep.subr.bf16.mxu1 %v3678_v5 }
 0x9da   :  { %v3550_v35 = vpop.eup %3549  ;;  %v1003_v36 = vmul.f32 %v3548_v34, %v3542_v24  ;;  %v1269_v34 = vld [vmem:[%s4707_s17 + $0x8] sm:$0xff]  ;;  %3284 = vmatpush3.bf16.msra.mxu0 %v1276_v4 }
 0x9db   :  { %v1002_v42 = vmul.f32 %v3550_v35, %v3544_v44  ;;  %v1083_v49 = vld [vmem:[#allocation3] sm:$0xff]  ;;  %v1275_v35 = vpack.c.bf16 %v1269_v34, %v1268_v8  ;;  %3285 = vmatprep.subr.bf16.mxu0 %v3678_v5 }
 0x9dc   :  { %v1005_v43 = vpack.c.bf16 %v1003_v36, %v1003_v36 }
 0x9dd   :  { %v1004_v45 = vpack.c.bf16 %v1002_v42, %v1001_v40 }
 0x9de   :  { %3286 = vmatpush3.bf16.msra.mxu0 %v1275_v35 }
 0x9df   :  { %3263 = vmatprep.mubr.msk.bf16.mxu1 %vm425_vm7, %v1004_v45  ;;  %v1084_v48 = vld [vmem:[#allocation3 + $0x8] sm:$0xff]  ;;  %3319 = vmatprep.subr.bf16.mxu0 %v3678_v5 }
 0x9e0   :  { %3264 = vmatmul.mubr.msk.bf16.vlgmr.msra.gmra.mxu1 %vm425_vm7, %v1005_v43  ;;  %v1092_v51 = vpack.c.bf16 %v1084_v48, %v1083_v49 }
 0x9e1   :  { %3268 = vmatpush3.bf16.msra.mxu1 %v1096_v23  ;;  %3271 = vmatprep.mubr.msk.bf16.mxu1 %vm3679_vm4, %v3678_v5 }
 0x9e2   :  { %3269 = vmatprep.subr.bf16.mxu1 %v3678_v5 }
 0x9e5   :  { %3270 = vmatpush3.bf16.msra.mxu1 %v1095_v47 }
 0x9e6   :  { %3299 = vmatprep.subr.bf16.mxu1 %v3678_v5 }
 0x9e8   :  { %3272 = vmatmul.mubr.msk.bf16.vlgmr.msra.gmra.mxu1 %vm168_vm3, %v1092_v51 }
 0x9e9   :  { %3275 = vmatprep.mubr.msk.bf16.mxu1 %vm3679_vm4, %v3678_v5 }
 0xaa0   :  { %v4095_v52 = vpop.f32.mrf.mxu1 }
 0xaa2   :  { %v1054_v53 = vpop.f32.mrf.mxu1 }
 0xaa3   :  { %1071 = vrot.lane.b32.xlu1 %v1054_v53, %s3686_s30 }
 0xaa4   :  { %v3266_v55 = vpop.f32.mrf.mxu1 }
 0xaa6   :  { %v1057_v56 = vpop.f32.mrf.mxu1 }
 0xaa7   :  { %1073 = vrot.lane.b32.xlu0 %v1057_v56, %s3686_s30 }
 0xaa8   :  { %v1140_v57 = vpop.f32.mrf.mxu1 }
 0xaa9   :  { %v1162_v63 = vadd.f32 %v1140_v57, %v3849_v38 }
 0xaaa   :  { %v3273_v59 = vpop.f32.mrf.mxu1 }
 0xaab   :  { %v4110_v2 = vadd.f32 %v4104_v0, %v1162_v63  ;;  %v4160_v59 = vld [vmem:[%s4705_s15] ss:$0 sm:$0xff] }
 0xaac   :  { %v1143_v60 = vpop.f32.mrf.mxu1  ;;  %v4168_v63 = vld [vmem:[%s4706_s16] ss:$0 sm:$0xff] }
 0xaad   :  { %v1163_v62 = vadd.f32 %v1143_v60, %v3853_v41  ;;  %v1181_v41 = vsel %vm168_vm3, %v4110_v2, 0.0 }
 0xaae   :  { %v3274_v61 = vpop.f32.mrf.mxu1 }
 0xaaf   :  { %v4107_v1 = vadd.f32 %v4104_v0, %v1163_v62 }
 0xab1   :  { %v1184_v3 = vsel %vm168_vm3, %v4107_v1, 0.0 }
 0xac6   :  { %1185 = vadd.xlane.f32.xlu0 %v1184_v3 }
 0xac7   :  { %1182 = vadd.xlane.f32.xlu1 %v1181_v41 }
 0xb15   :  { %v1072_v38 = vpop.permute.xlu1 %1071 }
 0xb16   :  { %1080 = vst.msk [vmem:[#allocation3 + $0x11] sm:$0xff] %vm711_vm12, %v1072_v38 }
 0xb19   :  { %v1074_v7 = vpop.permute.xlu0 %1073 }
 0xb1a   :  { %1081 = vst.msk [vmem:[#allocation3 + $0x19] sm:$0xff] %vm711_vm12, %v1074_v7 }
 0xb1d   :  { %v1085_v9 = vld [vmem:[#allocation3 + $0x10] sm:$0xff] }
 0xb21   :  { %v1086_v10 = vld [vmem:[#allocation3 + $0x18] sm:$0xff] }
 0xb22   :  { %v1093_v11 = vpack.c.bf16 %v1086_v10, %v1085_v9  ;;  %v1401_v9 = vld [vmem:[%s4709_s19 + $0x38] sm:$0xff] }
 0xb24   :  { %3276 = vmatmul.mubr.msk.bf16.gmra.mxu1 %vm168_vm3, %v1093_v11  ;;  %v1398_v11 = vld [vmem:[%s4709_s19 + $0x20] sm:$0xff] }
 0xb25   :  { %3279 = vmatprep.mubr.msk.bf16.mxu1 %vm3679_vm4, %v3678_v5 }
 0xb4f   :  { %v1186_v17 = vpop.xlane.xlu0 %1185 }
 0xb50   :  { %v1183_v12 = vpop.xlane.xlu1 %1182  ;;  %v1197_v19 = vmul.f32 0.03125, %v1186_v17  ;;  %v1394_v17 = vld [vmem:[%s4709_s19] sm:$0xff] }
 0xb51   :  { %v1196_v13 = vmul.f32 0.03125, %v1183_v12  ;;  %v1399_v12 = vld [vmem:[%s4709_s19 + $0x28] sm:$0xff] }
 0xb52   :  { %v1202_v44 = vsub.f32 %v4107_v1, %v1197_v19 }
 0xb53   :  { %v1201_v14 = vsub.f32 %v4110_v2, %v1196_v13  ;;  %v1407_v13 = vpack.c.bf16 %v1399_v12, %v1398_v11 }
 0xb54   :  { %v1207_v31 = vmul.f32 %v1202_v44, %v1202_v44 }
 0xb55   :  { %v1206_v15 = vmul.f32 %v1201_v14, %v1201_v14 }
 0xb56   :  { %v1214_v33 = vsel %vm168_vm3, %v1207_v31, 0.0 }
 0xb57   :  { %v1211_v16 = vsel %vm168_vm3, %v1206_v15, 0.0  ;;  %v1397_v15 = vld [vmem:[%s4709_s19 + $0x18] sm:$0xff] }
 0xb58   :  { %1212 = vadd.xlane.f32.xlu1 %v1211_v16 }
 0xbe1   :  { %v1213_v36 = vpop.xlane.xlu1 %1212 }
 0xbe2   :  { %v1226_v37 = vmul.f32 0.03125, %v1213_v36  ;;  %v4218_v36 = vld [vmem:[%s4708_s18] ss:$0 sm:$0xff] }
 0xbe4   :  { %v1148_v18 = vpop.f32.mrf.mxu1  ;;  %v1231_v42 = vadd.f32 1e-06, %v1226_v37 }
 0xbe5   :  { %v1164_v54 = vadd.f32 %v3653_v20, %v1148_v18  ;;  %v1395_v18 = vld [vmem:[%s4709_s19 + $0x8] sm:$0xff] }
 0xbe6   :  { %v3277_v21 = vpop.f32.mrf.mxu1  ;;  %3551 = vrsqrt.f32 %v1231_v42  ;;  %v1405_v19 = vpack.c.bf16 %v1395_v18, %v1394_v17 }
 0xbe7   :  { %v4124_v22 = vadd.f32 %v4104_v0, %v1164_v54 }
 0xbe8   :  { %v1151_v24 = vpop.f32.mrf.mxu1 }
 0xbe9   :  { %v1165_v26 = vadd.f32 %v3654_v58, %v1151_v24  ;;  %v1187_v27 = vsel %vm168_vm3, %v4124_v22, 0.0 }
 0xbea   :  { %1188 = vadd.xlane.f32.xlu0 %v1187_v27  ;;  %v3278_v29 = vpop.f32.mrf.mxu1 }
 0xbeb   :  { %v4130_v30 = vadd.f32 %v4104_v0, %v1165_v26 }
 0xbed   :  { %v1190_v50 = vsel %vm168_vm3, %v4130_v30, 0.0 }
 0xbee   :  { %1191 = vadd.xlane.f32.xlu0 %v1190_v50 }
 0xbf2   :  { %1215 = vadd.xlane.f32.xlu0 %v1214_v33 }
 0xbf3   :  { %v3552_v56 = vpop.eup %3551 }
 0xbf4   :  { %v1241_v57 = vmul.f32 %v3552_v56, %v1201_v14  ;;  %v1396_v14 = vld [vmem:[%s4709_s19 + $0x10] sm:$0xff] }
 0xbf5   :  { %v1406_v16 = vpack.c.bf16 %v1397_v15, %v1396_v14 }
 0xbf6   :  { %v1252_v62 = vmul.f32 %v4160_v59, %v1241_v57 }
 0xbf8   :  { %v1263_v41 = vadd.f32 %v4168_v63, %v1252_v62 }
 0xc73   :  { %v1189_v39 = vpop.xlane.xlu0 %1188 }
 0xc74   :  { %v1198_v40 = vmul.f32 0.03125, %v1189_v39 }
 0xc76   :  { %v4150_v43 = vsub.f32 %v4124_v22, %v1198_v40 }
 0xc77   :  { %v1192_v45 = vpop.xlane.xlu0 %1191 }
 0xc78   :  { %v1199_v23 = vmul.f32 0.03125, %v1192_v45  ;;  %v1208_v28 = vmul.f32 %v4150_v43, %v4150_v43 }
 0xc7a   :  { %v1204_v46 = vsub.f32 %v4130_v30, %v1199_v23  ;;  %v1217_v47 = vsel %vm168_vm3, %v1208_v28, 0.0 }
 0xc7b   :  { %1218 = vadd.xlane.f32.xlu1 %v1217_v47  ;;  %v1216_v48 = vpop.xlane.xlu0 %1215 }
 0xc7c   :  { %v1227_v49 = vmul.f32 0.03125, %v1216_v48  ;;  %v1209_v51 = vmul.f32 %v1204_v46, %v1204_v46 }
 0xc7e   :  { %v1232_v53 = vadd.f32 1e-06, %v1227_v49  ;;  %v1220_v55 = vsel %vm168_vm3, %v1209_v51, 0.0 }
 0xc7f   :  { %1221 = vadd.xlane.f32.xlu0 %v1220_v55 }
 0xc80   :  { %3553 = vrsqrt.f32 %v1232_v53 }
 0xc8c   :  { %1075 = vrot.lane.b32.xlu1 %v4095_v52, %s3686_s30  ;;  %v1400_v52 = vld [vmem:[%s4709_s19 + $0x30] sm:$0xff] }
 0xc8d   :  { %v3554_v60 = vpop.eup %3553  ;;  %v1408_v10 = vpack.c.bf16 %v1401_v9, %v1400_v52 }
 0xc8e   :  { %v1242_v61 = vmul.f32 %v3554_v60, %v1202_v44 }
 0xc8f   :  { %3300 = vmatpush3.bf16.msra.mxu1 %v1408_v10  ;;  %v3655_v10 = vld [vmem:[#allocation2 + $0x20] sm:$0x3] }
 0xc90   :  { %v1253_v3 = vmul.f32 %v4160_v59, %v1242_v61  ;;  %3301 = vmatprep.subr.bf16.mxu1 %v3678_v5 }
 0xc92   :  { %v1264_v38 = vadd.f32 %v4168_v63, %v1253_v3 }
 0xc93   :  { %3302 = vmatpush3.bf16.msra.mxu1 %v1407_v13 }
 0xc94   :  { %v1272_v7 = vpack.c.bf16 %v1264_v38, %v1263_v41  ;;  %3303 = vmatprep.subr.bf16.mxu1 %v3678_v5 }
 0xc96   :  { %3288 = vmatmul.mubr.msk.bf16.vlgmr.msra.gmra.mxu0 %vm168_vm3, %v1272_v7 }
 0xc97   :  { %3291 = vmatprep.mubr.msk.bf16.mxu0 %vm3679_vm4, %v3678_v5  ;;  %3304 = vmatpush3.bf16.msra.mxu1 %v1406_v16 }
 0xc98   :  { %3305 = vmatprep.subr.bf16.mxu1 %v3678_v5 }
 0xc9b   :  { %3306 = vmatpush3.bf16.msra.mxu1 %v1405_v19 }
 0xd04   :  { %v1219_v20 = vpop.xlane.xlu1 %1218 }
 0xd05   :  { %v1228_v54 = vmul.f32 0.03125, %v1219_v20 }
 0xd07   :  { %v1233_v21 = vadd.f32 1e-06, %v1228_v54 }
 0xd08   :  { %v1076_v24 = vpop.permute.xlu1 %1075  ;;  %v1222_v44 = vpop.xlane.xlu0 %1221 }
 0xd09   :  { %3555 = vrsqrt.f32 %v1233_v21  ;;  %1082 = vst.msk [vmem:[#allocation3 + $0x21] sm:$0x1] %vm714_vm13, %v1076_v24  ;;  %v1229_v58 = vmul.f32 0.03125, %v1222_v44 }
 0xd0b   :  { %v1234_v26 = vadd.f32 1e-06, %v1229_v58 }
 0xd0d   :  { %3557 = vrsqrt.f32 %v1234_v26 }
 0xd10   :  { %v1087_v27 = vld [vmem:[#allocation3 + $0x20] sm:$0x3] }
 0xd11   :  { %v1094_v29 = vpack.c.bf16 %v1087_v27, %v1087_v27 }
 0xd13   :  { %3280 = vmatmul.mubr.msk.bf16.gmra.mxu1 %vm168_vm3, %v1094_v29 }
 0xd14   :  { %3307 = vmatprep.mubr.msk.bf16.mxu1 %vm3679_vm4, %v3678_v5 }
 0xd16   :  { %v3556_v50 = vpop.eup %3555 }
 0xd17   :  { %v1243_v31 = vmul.f32 %v3556_v50, %v4150_v43 }
 0xd19   :  { %v1254_v6 = vmul.f32 %v4160_v59, %v1243_v31 }
 0xd1a   :  { %v3558_v33 = vpop.eup %3557 }
 0xd1b   :  { %v1244_v25 = vmul.f32 %v3558_v33, %v1204_v46  ;;  %v1265_v8 = vadd.f32 %v4168_v63, %v1254_v6 }
 0xd1d   :  { %v1255_v4 = vmul.f32 %v4160_v59, %v1244_v25 }
 0xd1f   :  { %v1266_v34 = vadd.f32 %v4168_v63, %v1255_v4 }
 0xd21   :  { %v1273_v35 = vpack.c.bf16 %v1266_v34, %v1265_v8 }
 0xd23   :  { %3292 = vmatmul.mubr.msk.bf16.gmra.mxu0 %vm168_vm3, %v1273_v35 }
 0xd24   :  { %3295 = vmatprep.mubr.msk.bf16.mxu0 %vm3679_vm4, %v3678_v5 }
 0xd56   :  { %v1327_v37 = vpop.f32.mrf.mxu0 }
 0xd57   :  { %v1328_v39 = vadd.f32 %v4218_v36, %v1327_v37 }
 0xd58   :  { %v3289_v40 = vpop.f32.mrf.mxu0 }
 0xd59   :  { %v1354_v42 = vmul.f32 0.044715, %v1328_v39  ;;  %v1349_v62 = vmul.f32 0.5, %v1328_v39 }
 0xd5a   :  { %v1330_v43 = vpop.f32.mrf.mxu0 }
 0xd5b   :  { %v1359_v45 = vmul.f32 %v1354_v42, %v1328_v39  ;;  %v1331_v23 = vadd.f32 %v4218_v36, %v1330_v43 }
 0xd5c   :  { %v3290_v28 = vpop.f32.mrf.mxu0 }
 0xd5d   :  { %v1364_v46 = vmul.f32 %v1359_v45, %v1328_v39  ;;  %v1355_v47 = vmul.f32 0.044715, %v1331_v23  ;;  %v1350_v3 = vmul.f32 0.5, %v1331_v23 }
 0xd5f   :  { %v1369_v48 = vadd.f32 %v1364_v46, %v1328_v39  ;;  %v1360_v49 = vmul.f32 %v1355_v47, %v1331_v23 }
 0xd61   :  { %v1374_v51 = vmul.f32 0.7978846, %v1369_v48  ;;  %v1365_v53 = vmul.f32 %v1360_v49, %v1331_v23  ;;  %v4240_v49 = vld [vmem:[%s4710_s20] ss:$0 sm:$0xff] }
 0xd63   :  { %3559 = vtanh.f32 %v1374_v51  ;;  %v1370_v55 = vadd.f32 %v1365_v53, %v1331_v23 }
 0xd65   :  { %v1375_v56 = vmul.f32 0.7978846, %v1370_v55 }
 0xd67   :  { %3561 = vtanh.f32 %v1375_v56 }
 0xd70   :  { %v3560_v57 = vpop.eup %3559 }
 0xd71   :  { %v1384_v60 = vadd.f32 1.0, %v3560_v57 }
 0xd73   :  { %v1389_v38 = vmul.f32 %v1384_v60, %v1349_v62 }
 0xd74   :  { %v3562_v61 = vpop.eup %3561 }
 0xd75   :  { %v1385_v41 = vadd.f32 1.0, %v3562_v61 }
 0xd77   :  { %v1390_v7 = vmul.f32 %v1385_v41, %v1350_v3 }
 0xd79   :  { %v1402_v52 = vpack.c.bf16 %v1390_v7, %v1389_v38 }
 0xd7b   :  { %3308 = vmatmul.mubr.msk.bf16.vlgmr.msra.gmra.mxu1 %vm1409_vm14, %v1402_v52 }
 0xd7c   :  { %3311 = vmatprep.mubr.msk.bf16.mxu1 %vm3679_vm4, %v3678_v5 }
 0xdd3   :  { %v1156_v9 = vpop.f32.mrf.mxu1 }
 0xdd4   :  { %v1166_v11 = vadd.f32 %v3655_v10, %v1156_v9 }
 0xdd5   :  { %v3281_v12 = vpop.f32.mrf.mxu1 }
 0xdd6   :  { %v4226_v13 = vadd.f32 %v4104_v0, %v1166_v11 }
 0xdd7   :  { %v1159_v14 = vpop.f32.mrf.mxu1 }
 0xdd8   :  { %v1193_v15 = vsel %vm195_vm6, %v4226_v13, 0.0 }
 0xdd9   :  { %1194 = vadd.xlane.f32.xlu0 %v1193_v15  ;;  %v3282_v16 = vpop.f32.mrf.mxu1 }
 0xde3   :  { %v1335_v17 = vpop.f32.mrf.mxu0 }
 0xde4   :  { %v1336_v18 = vadd.f32 %v4218_v36, %v1335_v17 }
 0xde5   :  { %v3293_v19 = vpop.f32.mrf.mxu0 }
 0xde6   :  { %v1356_v20 = vmul.f32 0.044715, %v1336_v18  ;;  %v1351_v8 = vmul.f32 0.5, %v1336_v18 }
 0xde7   :  { %v1338_v54 = vpop.f32.mrf.mxu0 }
 0xde8   :  { %v1361_v21 = vmul.f32 %v1356_v20, %v1336_v18  ;;  %v1339_v24 = vadd.f32 %v4218_v36, %v1338_v54 }
 0xde9   :  { %v3294_v44 = vpop.f32.mrf.mxu0 }
 0xdea   :  { %v1366_v58 = vmul.f32 %v1361_v21, %v1336_v18  ;;  %v1357_v26 = vmul.f32 0.044715, %v1339_v24  ;;  %v1352_v34 = vmul.f32 0.5, %v1339_v24 }
 0xdec   :  { %v1371_v0 = vadd.f32 %v1366_v58, %v1336_v18  ;;  %v1362_v27 = vmul.f32 %v1357_v26, %v1339_v24 }
 0xdee   :  { %v1376_v29 = vmul.f32 0.7978846, %v1371_v0  ;;  %v1367_v50 = vmul.f32 %v1362_v27, %v1339_v24  ;;  %v2998_v27 = vld [vmem:[%s4701_s11 + $0x30] sm:$0xff] }
 0xdf0   :  { %3563 = vtanh.f32 %v1376_v29  ;;  %v1372_v31 = vadd.f32 %v1367_v50, %v1339_v24  ;;  %v2999_v29 = vld [vmem:[%s4701_s11 + $0x38] sm:$0xff] }
 0xdf1   :  { %v1592_v50 = vpack.c.bf16 %v2999_v29, %v2998_v27 }
 0xdf2   :  { %v1377_v33 = vmul.f32 0.7978846, %v1372_v31 }
 0xdf3   :  { %3320 = vmatpush3.bf16.msra.mxu0 %v1592_v50 }
 0xdf4   :  { %3565 = vtanh.f32 %v1377_v33  ;;  %3321 = vmatprep.subr.bf16.mxu0 %v3678_v5 }
 0xdfd   :  { %v3564_v25 = vpop.eup %3563 }
 0xdfe   :  { %v1386_v6 = vadd.f32 1.0, %v3564_v25 }
 0xe00   :  { %v1391_v37 = vmul.f32 %v1386_v6, %v1351_v8 }
 0xe01   :  { %v3566_v4 = vpop.eup %3565 }
 0xe02   :  { %v1387_v35 = vadd.f32 1.0, %v3566_v4 }
 0xe04   :  { %v1392_v39 = vmul.f32 %v1387_v35, %v1352_v34 }
 0xe06   :  { %v1403_v40 = vpack.c.bf16 %v1392_v39, %v1391_v37 }
 0xe08   :  { %3312 = vmatmul.mubr.msk.bf16.gmra.mxu1 %vm1409_vm14, %v1403_v40 }
 0xe09   :  { %3315 = vmatprep.mubr.msk.bf16.mxu1 %vm3679_vm4, %v3678_v5 }
 0xe3b   :  { %v1453_v42 = vpop.f32.mrf.mxu1 }
 0xe3c   :  { %v1475_v47 = vadd.f32 %v1453_v42, %v4110_v2 }
 0xe3d   :  { %v3309_v43 = vpop.f32.mrf.mxu1 }
 0xe3e   :  { %v4243_v53 = vadd.f32 %v4240_v49, %v1475_v47 }
 0xe3f   :  { %v1456_v45 = vpop.f32.mrf.mxu1 }
 0xe40   :  { %v1476_v55 = vadd.f32 %v1456_v45, %v4107_v1  ;;  %v1496_v2 = vsel %vm168_vm3, %v4243_v53, 0.0 }
 0xe41   :  { %v3310_v23 = vpop.f32.mrf.mxu1 }
 0xe42   :  { %v4248_v57 = vadd.f32 %v4240_v49, %v1476_v55 }
 0xe44   :  { %v1499_v60 = vsel %vm168_vm3, %v4248_v57, 0.0 }
 0xe62   :  { %v1195_v28 = vpop.xlane.xlu0 %1194 }
 0xe63   :  { %v1200_v46 = vmul.f32 0.03125, %v1195_v28 }
 0xe65   :  { %v1205_v48 = vsub.f32 %v4226_v13, %v1200_v46 }
 0xe67   :  { %v1210_v51 = vmul.f32 %v1205_v48, %v1205_v48 }
 0xe69   :  { %v1223_v56 = vsel %vm195_vm6, %v1210_v51, 0.0  ;;  %v4295_v51 = vld [vmem:[%s4699_s9 + $0x1] ss:$0 sm:$0xff] }
 0xe6a   :  { %1224 = vadd.xlane.f32.xlu0 %v1223_v56 }
 0xe6e   :  { %1497 = vadd.xlane.f32.xlu0 %v1496_v2 }
 0xe72   :  { %1500 = vadd.xlane.f32.xlu0 %v1499_v60  ;;  %v4301_v60 = vld [vmem:[%s4700_s10 + $0x1] ss:$0 sm:$0xff] }
 0xec8   :  { %v1461_v61 = vpop.f32.mrf.mxu1 }
 0xec9   :  { %v1477_v62 = vadd.f32 %v1461_v61, %v4124_v22 }
 0xeca   :  { %v3313_v3 = vpop.f32.mrf.mxu1 }
 0xecb   :  { %v4256_v1 = vadd.f32 %v4240_v49, %v1477_v62 }
 0xecc   :  { %v1464_v41 = vpop.f32.mrf.mxu1 }
 0xecd   :  { %v1478_v38 = vadd.f32 %v1464_v41, %v4130_v30  ;;  %v1502_v7 = vsel %vm168_vm3, %v4256_v1, 0.0 }
 0xece   :  { %1503 = vadd.xlane.f32.xlu1 %v1502_v7  ;;  %v3314_v52 = vpop.f32.mrf.mxu1 }
 0xecf   :  { %v4262_v9 = vadd.f32 %v4240_v49, %v1478_v38 }
 0xed1   :  { %v1505_v10 = vsel %vm168_vm3, %v4262_v9, 0.0 }
 0xed2   :  { %1506 = vadd.xlane.f32.xlu0 %v1505_v10 }
 0xef3   :  { %v1225_v22 = vpop.xlane.xlu0 %1224 }
 0xef4   :  { %v1230_v11 = vmul.f32 0.03125, %v1225_v22 }
 0xef6   :  { %v1235_v12 = vadd.f32 1e-06, %v1230_v11 }
 0xef7   :  { %v1498_v14 = vpop.xlane.xlu0 %1497 }
 0xef8   :  { %3567 = vrsqrt.f32 %v1235_v12  ;;  %v1511_v15 = vmul.f32 0.03125, %v1498_v14 }
 0xefa   :  { %v1516_v30 = vsub.f32 %v4243_v53, %v1511_v15 }
 0xefb   :  { %v1501_v16 = vpop.xlane.xlu0 %1500 }
 0xefc   :  { %v1512_v17 = vmul.f32 0.03125, %v1501_v16  ;;  %v1521_v18 = vmul.f32 %v1516_v30, %v1516_v30 }
 0xefe   :  { %v1517_v19 = vsub.f32 %v4248_v57, %v1512_v17  ;;  %v1526_v20 = vsel %vm168_vm3, %v1521_v18, 0.0 }
 0xeff   :  { %1527 = vadd.xlane.f32.xlu0 %v1526_v20 }
 0xf00   :  { %v1522_v54 = vmul.f32 %v1517_v19, %v1517_v19 }
 0xf02   :  { %v1529_v21 = vsel %vm168_vm3, %v1522_v54, 0.0 }
 0xf03   :  { %1530 = vadd.xlane.f32.xlu0 %v1529_v21 }
 0xf05   :  { %v3568_v24 = vpop.eup %3567 }
 0xf06   :  { %v1245_v44 = vmul.f32 %v3568_v24, %v1205_v48 }
 0xf08   :  { %v1256_v58 = vmul.f32 %v4160_v59, %v1245_v44  ;;  %v2996_v59 = vld [vmem:[%s4701_s11 + $0x20] sm:$0xff] }
 0xf0a   :  { %v1267_v26 = vadd.f32 %v4168_v63, %v1256_v58  ;;  %v2997_v63 = vld [vmem:[%s4701_s11 + $0x28] sm:$0xff] }
 0xf0b   :  { %v1591_v31 = vpack.c.bf16 %v2997_v63, %v2996_v59 }
 0xf0c   :  { %v1274_v0 = vpack.c.bf16 %v1267_v26, %v1267_v26 }
 0xf0d   :  { %3322 = vmatpush3.bf16.msra.mxu0 %v1591_v31 }
 0xf0e   :  { %3296 = vmatmul.mubr.msk.bf16.gmra.mxu0 %vm168_vm3, %v1274_v0 }
 0xf0f   :  { %3323 = vmatprep.mubr.msk.bf16.mxu0 %vm3679_vm4, %v3678_v5 }
 0xf57   :  { %v1504_v33 = vpop.xlane.xlu1 %1503 }
 0xf58   :  { %v1513_v25 = vmul.f32 0.03125, %v1504_v33 }
 0xf5a   :  { %v1518_v6 = vsub.f32 %v4256_v1, %v1513_v25 }
 0xf5b   :  { %v1507_v4 = vpop.xlane.xlu0 %1506 }
 0xf5c   :  { %v1514_v8 = vmul.f32 0.03125, %v1507_v4  ;;  %v1523_v34 = vmul.f32 %v1518_v6, %v1518_v6 }
 0xf5e   :  { %v1519_v35 = vsub.f32 %v4262_v9, %v1514_v8  ;;  %v1532_v37 = vsel %vm168_vm3, %v1523_v34, 0.0 }
 0xf5f   :  { %1533 = vadd.xlane.f32.xlu0 %v1532_v37 }
 0xf60   :  { %v1524_v39 = vmul.f32 %v1519_v35, %v1519_v35 }
 0xf62   :  { %v1535_v40 = vsel %vm168_vm3, %v1524_v39, 0.0 }
 0xf63   :  { %1536 = vadd.xlane.f32.xlu0 %v1535_v40 }
 0xf88   :  { %v1528_v42 = vpop.xlane.xlu0 %1527 }
 0xf89   :  { %v1541_v43 = vmul.f32 0.03125, %v1528_v42 }
 0xf8b   :  { %v1546_v45 = vadd.f32 1e-06, %v1541_v43 }
 0xf8c   :  { %v1531_v23 = vpop.xlane.xlu0 %1530 }
 0xf8d   :  { %3569 = vrsqrt.f32 %v1546_v45  ;;  %v1542_v28 = vmul.f32 0.03125, %v1531_v23 }
 0xf8f   :  { %v1547_v46 = vadd.f32 1e-06, %v1542_v28 }
 0xf91   :  { %3571 = vrsqrt.f32 %v1547_v46 }
 0xf9a   :  { %v3570_v47 = vpop.eup %3569 }
 0xf9b   :  { %v1556_v48 = vmul.f32 %v3570_v47, %v1516_v30 }
 0xf9d   :  { %v1567_v56 = vmul.f32 %v4295_v51, %v1556_v48 }
 0xf9e   :  { %v3572_v55 = vpop.eup %3571 }
 0xf9f   :  { %v1557_v2 = vmul.f32 %v3572_v55, %v1517_v19  ;;  %v1578_v62 = vadd.f32 %v4301_v60, %v1567_v56 }
 0xfa1   :  { %v1568_v61 = vmul.f32 %v4295_v51, %v1557_v2 }
 0xfa3   :  { %v1579_v3 = vadd.f32 %v4301_v60, %v1568_v61 }
 0xfa5   :  { %v1588_v41 = vpack.c.bf16 %v1579_v3, %v1578_v62 }
 0xfa7   :  { %3324 = vmatmul.mubr.msk.bf16.vlgmr.msra.gmra.mxu0 %vm168_vm3, %v1588_v41 }
 0xfa8   :  { %3327 = vmatprep.mubr.msk.bf16.mxu0 %vm3679_vm4, %v3678_v5 }
 0xfce   :  { %v1343_v38 = vpop.f32.mrf.mxu0 }
 0xfcf   :  { %v1344_v7 = vadd.f32 %v4218_v36, %v1343_v38 }
 0xfd0   :  { %v3297_v52 = vpop.f32.mrf.mxu0 }
 0xfd1   :  { %v1358_v10 = vmul.f32 0.044715, %v1344_v7  ;;  %v1353_v19 = vmul.f32 0.5, %v1344_v7 }
 0xfd2   :  { %v1346_v22 = vpop.f32.mrf.mxu0 }
 0xfd3   :  { %v1363_v11 = vmul.f32 %v1358_v10, %v1344_v7 }
 0xfd4   :  { %v3298_v12 = vpop.f32.mrf.mxu0 }
 0xfd5   :  { %v1368_v14 = vmul.f32 %v1363_v11, %v1344_v7 }
 0xfd7   :  { %v1373_v15 = vadd.f32 %v1368_v14, %v1344_v7 }
 0xfd9   :  { %v1378_v30 = vmul.f32 0.7978846, %v1373_v15 }
 0xfdb   :  { %3573 = vtanh.f32 %v1378_v30 }
 0xfe8   :  { %v3574_v16 = vpop.eup %3573  ;;  %v1534_v17 = vpop.xlane.xlu0 %1533 }
 0xfe9   :  { %v1543_v18 = vmul.f32 0.03125, %v1534_v17  ;;  %v1388_v20 = vadd.f32 1.0, %v3574_v16 }
 0xfeb   :  { %v1548_v54 = vadd.f32 1e-06, %v1543_v18  ;;  %v1393_v21 = vmul.f32 %v1388_v20, %v1353_v19 }
 0xfec   :  { %v1537_v24 = vpop.xlane.xlu0 %1536 }
 0xfed   :  { %3575 = vrsqrt.f32 %v1548_v54  ;;  %v1544_v44 = vmul.f32 0.03125, %v1537_v24  ;;  %v1404_v36 = vpack.c.bf16 %v1393_v21, %v1393_v21 }
 0xfef   :  { %v1549_v58 = vadd.f32 1e-06, %v1544_v44  ;;  %3316 = vmatmul.mubr.msk.bf16.gmra.mxu1 %vm1409_vm14, %v1404_v36 }
 0xff1   :  { %3577 = vrsqrt.f32 %v1549_v58 }
 0xffa   :  { %v3576_v26 = vpop.eup %3575 }
 0xffb   :  { %v1558_v0 = vmul.f32 %v3576_v26, %v1518_v6  ;;  %v4321_v6 = vld [vmem:[%s4702_s12 + $0x1] ss:$0 sm:$0xff] }
 0xffd   :  { %v1569_v50 = vmul.f32 %v4295_v51, %v1558_v0 }
 0xffe   :  { %v3578_v27 = vpop.eup %3577 }
 0xfff   :  { %v1559_v29 = vmul.f32 %v3578_v27, %v1519_v35  ;;  %v1580_v63 = vadd.f32 %v4301_v60, %v1569_v50 }
0x1001   :  { %v1570_v59 = vmul.f32 %v4295_v51, %v1559_v29 }
0x1003   :  { %v1581_v31 = vadd.f32 %v4301_v60, %v1570_v59 }
0x1005   :  { %v1589_v33 = vpack.c.bf16 %v1581_v31, %v1580_v63 }
0x1007   :  { %3328 = vmatmul.mubr.msk.bf16.gmra.mxu0 %vm168_vm3, %v1589_v33 }
0x1008   :  { %3331 = vmatprep.mubr.msk.bf16.mxu0 %vm3679_vm4, %v3678_v5 }
0x1067   :  { %v1644_v25 = vpop.f32.mrf.mxu0 }
0x1068   :  { %v1645_v34 = vadd.f32 %v4321_v6, %v1644_v25 }
0x1069   :  { %v3325_v4 = vpop.f32.mrf.mxu0 }
0x106b   :  { %v1647_v8 = vpop.f32.mrf.mxu0 }
0x106c   :  { %v1648_v35 = vadd.f32 %v4321_v6, %v1647_v8 }
0x106d   :  { %v3326_v37 = vpop.f32.mrf.mxu0 }
0x106e   :  { %v4325_v39 = vpack.c.bf16 %v1648_v35, %v1645_v34 }
0x1070   :  { %1670 = vrot.lane.b32.xlu1 %v4325_v39, %s3680_s28  ;;  %3339 = vmatprep.mubr.msk.bf16.mxu1 %vm361_vm5, %v4325_v39 }
0x10af   :  { %v1469_v40 = vpop.f32.mrf.mxu1 }
0x10b0   :  { %v1479_v61 = vadd.f32 %v1469_v40, %v4226_v13 }
0x10b1   :  { %v3317_v42 = vpop.f32.mrf.mxu1 }
0x10b2   :  { %v4349_v62 = vadd.f32 %v4240_v49, %v1479_v61 }
0x10b3   :  { %v1472_v43 = vpop.f32.mrf.mxu1 }
0x10b4   :  { %v1508_v3 = vsel %vm195_vm6, %v4349_v62, 0.0 }
0x10b5   :  { %v3318_v45 = vpop.f32.mrf.mxu1 }
0x10c7   :  { %v1652_v23 = vpop.f32.mrf.mxu0 }
0x10c8   :  { %v1653_v28 = vadd.f32 %v4321_v6, %v1652_v23 }
0x10c9   :  { %v3329_v46 = vpop.f32.mrf.mxu0 }
0x10ca   :  { %v4332_v47 = vpack.c.bf16 %v1653_v28, %v1653_v28 }
0x10cb   :  { %v1655_v48 = vpop.f32.mrf.mxu0 }
0x10cc   :  { %v1656_v55 = vadd.f32 %v4321_v6, %v1655_v48  ;;  %1839 = vrot.lane.b32.xlu1 %v4332_v47, %s3682_s29  ;;  %1672 = vrot.lane.b32.xlu0 %v4332_v47, %s3680_s28 }
0x10cd   :  { %v3330_v56 = vpop.f32.mrf.mxu0 }
0x10ce   :  { %v4339_v2 = vpack.c.bf16 %v1656_v55, %v1653_v28 }
0x10d0   :  { %1841 = vrot.lane.b32.xlu0 %v4325_v39, %s3681_s26 }
0x10d4   :  { %1843 = vrot.lane.b32.xlu0 %v4332_v47, %s3681_s26 }
0x10d8   :  { %1837 = vrot.lane.b32.xlu0 %v4325_v39, %s3682_s29 }
0x10e2   :  { %v1671_v7 = vpop.permute.xlu1 %1670 }
0x10e3   :  { %v1681_v10 = vsel %vm361_vm5, %v1671_v7, 0 }
0x10f7   :  { %1509 = vadd.xlane.f32.xlu0 %v1508_v3 }
0x113e   :  { %v1673_v41 = vpop.permute.xlu0 %1672  ;;  %v1840_v12 = vpop.permute.xlu1 %1839 }
0x113f   :  { %v1684_v38 = vsel %vm361_vm5, %v1673_v41, 0  ;;  %3475 = vmatprep.subr.msk.bf16.mxu1 %vm361_vm5, %v1673_v41 }
0x1140   :  { %3336 = vmatpush3.bf16.xpose.msra.mxu1 %v1684_v38 }
0x1141   :  { %3476 = vmatprep.subr.msk.bf16.mxu1 %vm361_vm5, %v1671_v7 }
0x1142   :  { %v1842_v52 = vpop.permute.xlu0 %1841 }
0x1143   :  { %v1852_v11 = vsel %vm361_vm5, %v1842_v52, 0 }
0x1146   :  { %v1844_v13 = vpop.permute.xlu0 %1843 }
0x1147   :  { %v1855_v49 = vsel %vm361_vm5, %v1844_v13, 0 }
0x1148   :  { %3338 = vmatpush3.bf16.xpose.msra.mxu1 %v1681_v10 }
0x1149   :  { %3477 = vmatprep.subr.msk.bf16.mxu1 %vm361_vm5, %v1844_v13 }
0x114a   :  { %v1838_v22 = vpop.permute.xlu0 %1837 }
0x114f   :  { %3340 = vmatmul.mubr.msk.bf16.vlgmr.msra.gmra.mxu1 %vm361_vm5, %v4332_v47 }
0x1150   :  { %3352 = vmatpush3.bf16.xpose.msra.mxu1 %v1855_v49  ;;  %3355 = vmatprep.mubr.msk.bf16.mxu1 %vm361_vm5, %v1838_v22 }
0x1151   :  { %3478 = vmatprep.subr.msk.bf16.mxu1 %vm361_vm5, %v1842_v52 }
0x1158   :  { %3354 = vmatpush3.bf16.xpose.msra.mxu1 %v1852_v11 }
0x115f   :  { %3356 = vmatmul.mubr.msk.bf16.vlgmr.msra.gmra.mxu1 %vm361_vm5, %v1840_v12 }
0x1180   :  { %v1510_v14 = vpop.xlane.xlu0 %1509 }
0x1181   :  { %v1515_v15 = vmul.f32 0.03125, %v1510_v14 }
0x1183   :  { %v1520_v30 = vsub.f32 %v4349_v62, %v1515_v15 }
0x1185   :  { %v1525_v16 = vmul.f32 %v1520_v30, %v1520_v30 }
0x1187   :  { %v1538_v17 = vsel %vm195_vm6, %v1525_v16, 0.0 }
0x1188   :  { %1539 = vadd.xlane.f32.xlu1 %v1538_v17 }
0x120f   :  { %v3341_v18 = vpop.f32.mrf.mxu1 }
0x1210   :  { %v1736_v19 = vmul.f32 0.25, %v3341_v18 }
0x1211   :  { %v1540_v20 = vpop.xlane.xlu1 %1539  ;;  %v1720_v54 = vpop.f32.mrf.mxu1 }
0x1212   :  { %v1545_v21 = vmul.f32 0.03125, %v1540_v20  ;;  %v1734_v24 = vmul.f32 0.25, %v1720_v54  ;;  %v1743_v44 = vsel %vm432_vm8, %v1736_v19, -inf }
0x1213   :  { %1744 = vmax.xlane.f32.xlu1 %v1743_v44  ;;  %v3342_v36 = vpop.f32.mrf.mxu1 }
0x1214   :  { %v1550_v58 = vadd.f32 1e-06, %v1545_v21  ;;  %v1737_v26 = vsel %vm425_vm7, %v1734_v24, -inf }
0x1215   :  { %1738 = vmax.xlane.f32.xlu0 %v1737_v26  ;;  %v1723_v0 = vpop.f32.mrf.mxu1  ;;  %v2025_v26 = vshll.u32 %v4339_v2, 16 }
0x1216   :  { %3579 = vrsqrt.f32 %v1550_v58  ;;  %v1735_v27 = vmul.f32 0.25, %v1723_v0 }
0x1218   :  { %v1740_v29 = vsel %vm425_vm7, %v1735_v27, -inf }
0x1219   :  { %1741 = vmax.xlane.f32.xlu0 %v1740_v29 }
0x121f   :  { %v3357_v50 = vpop.f32.mrf.mxu1 }
0x1220   :  { %v1907_v25 = vmul.f32 0.25, %v3357_v50  ;;  %v2027_v50 = vrot.slane %v2025_v26, 1 }
0x1221   :  { %v1891_v59 = vpop.f32.mrf.mxu1 }
0x1222   :  { %v1905_v63 = vmul.f32 0.25, %v1891_v59  ;;  %v1914_v42 = vsel %vm432_vm8, %v1907_v25, -inf }
0x1223   :  { %v3580_v31 = vpop.eup %3579  ;;  %v3358_v33 = vpop.f32.mrf.mxu1 }
0x1224   :  { %v1908_v4 = vsel %vm425_vm7, %v1905_v63, -inf  ;;  %v1560_v8 = vmul.f32 %v3580_v31, %v1520_v30  ;;  %v2023_v31 = vshrl.u32 %v4339_v2, 16 }
0x1225   :  { %v1894_v34 = vpop.f32.mrf.mxu1  ;;  %1909 = vmax.xlane.f32.xlu0 %v1908_v4 }
0x1226   :  { %v1906_v35 = vmul.f32 0.25, %v1894_v34  ;;  %v1571_v37 = vmul.f32 %v4295_v51, %v1560_v8  ;;  %v2028_v8 = vor.u32 %v2027_v50, %v2023_v31 }
0x1228   :  { %v1911_v40 = vsel %vm425_vm7, %v1906_v35, -inf  ;;  %v1582_v43 = vadd.f32 %v4301_v60, %v1571_v37 }
0x1229   :  { %1912 = vmax.xlane.f32.xlu1 %v1911_v40  ;;  %1915 = vmax.xlane.f32.xlu0 %v1914_v42 }
0x122a   :  { %v1590_v45 = vpack.c.bf16 %v1582_v43, %v1582_v43 }
0x122c   :  { %3332 = vmatmul.mubr.msk.bf16.gmra.mxu0 %vm168_vm3, %v1590_v45 }
0x123a   :  { %1774 = vrot.lane.b32.xlu1 %v4332_v47, %s3683_s0 }
0x123e   :  { %1945 = vrot.lane.b32.xlu1 %v4332_v47, %s3684_s4 }
0x123f   :  { %1772 = vrot.lane.b32.xlu0 %v4325_v39, %s3683_s0 }
0x129c   :  { %v1745_v51 = vpop.xlane.xlu1 %1744 }
0x129d   :  { %v1748_v23 = vsub.f32 %v1736_v19, %v1745_v51 }
0x129e   :  { %v1739_v28 = vpop.xlane.xlu0 %1738 }
0x129f   :  { %v1753_v46 = vmul.f32 1.442695, %v1748_v23  ;;  %v1746_v48 = vsub.f32 %v1734_v24, %v1739_v28 }
0x12a1   :  { %3581 = vpow2.f32 %v1753_v46  ;;  %v1749_v60 = vmul.f32 1.442695, %v1746_v48 }
0x12a2   :  { %v1742_v55 = vpop.xlane.xlu0 %1741 }
0x12a3   :  { %3583 = vpow2.f32 %v1749_v60  ;;  %v1747_v56 = vsub.f32 %v1735_v27, %v1742_v55 }
0x12a5   :  { %v1751_v61 = vmul.f32 1.442695, %v1747_v56 }
0x12a7   :  { %3585 = vpow2.f32 %v1751_v61 }
0x12ae   :  { %v4382_v3 = vpop.eup %3581  ;;  %v1910_v41 = vpop.xlane.xlu0 %1909 }
0x12af   :  { %v1761_v47 = vsel %vm432_vm8, %v4382_v3, 0.0  ;;  %v1917_v7 = vsub.f32 %v1905_v63, %v1910_v41 }
0x12b0   :  { %v4386_v38 = vpop.eup %3583  ;;  %1762 = vadd.xlane.f32.xlu1 %v1761_v47 }
0x12b1   :  { %v1755_v22 = vsel %vm425_vm7, %v4386_v38, 0.0  ;;  %v1920_v30 = vmul.f32 1.442695, %v1917_v7 }
0x12b2   :  { %v1913_v52 = vpop.xlane.xlu1 %1912  ;;  %v1916_v10 = vpop.xlane.xlu0 %1915 }
0x12b3   :  { %v1918_v13 = vsub.f32 %v1906_v35, %v1913_v52  ;;  %v1919_v49 = vsub.f32 %v1907_v25, %v1916_v10 }
0x12b4   :  { %v3586_v11 = vpop.eup %3585  ;;  %1756 = vadd.xlane.f32.xlu1 %v1755_v22 }
0x12b5   :  { %v1922_v12 = vmul.f32 1.442695, %v1918_v13  ;;  %v1924_v14 = vmul.f32 1.442695, %v1919_v49  ;;  %v1758_v15 = vsel %vm425_vm7, %v3586_v11, 0.0 }
0x12b6   :  { %v1775_v16 = vpop.permute.xlu1 %1774  ;;  %1759 = vadd.xlane.f32.xlu0 %v1758_v15  ;;  %v1773_v18 = vpop.permute.xlu0 %1772 }
0x12b7   :  { %3587 = vpow2.f32 %v1922_v12  ;;  %v1784_v17 = vand.u32 %v1775_v16, %v3992_v32 }
0x12b8   :  { %3589 = vpow2.f32 %v1924_v14 }
0x12b9   :  { %3343 = vmatprep.subr.bf16.mxu0 %v1784_v17  ;;  %3591 = vpow2.f32 %v1920_v30 }
0x12ba   :  { %3344 = vmatpush3.bf16.msra.mxu0 %v1784_v17  ;;  %v1946_v19 = vpop.permute.xlu1 %1945 }
0x12bb   :  { %3345 = vmatprep.subr.bf16.mxu0 %v1773_v18  ;;  %v1955_v20 = vand.u32 %v1946_v19, %v3992_v32 }
0x12be   :  { %3346 = vmatpush3.bf16.msra.mxu0 %v1773_v18 }
0x12bf   :  { %3359 = vmatprep.subr.bf16.mxu0 %v1955_v20 }
0x12c4   :  { %v3588_v54 = vpop.eup %3587 }
0x12c5   :  { %v3590_v21 = vpop.eup %3589  ;;  %v1929_v24 = vsel %vm425_vm7, %v3588_v54, 0.0 }
0x12c6   :  { %1930 = vadd.xlane.f32.xlu1 %v1929_v24  ;;  %v1932_v44 = vsel %vm432_vm8, %v3590_v21, 0.0  ;;  %v3592_v36 = vpop.eup %3591 }
0x12c7   :  { %1933 = vadd.xlane.f32.xlu0 %v1932_v44  ;;  %v1926_v58 = vsel %vm425_vm7, %v3592_v36, 0.0 }
0x12cb   :  { %1927 = vadd.xlane.f32.xlu0 %v1926_v58 }
0x12d7   :  { %1943 = vrot.lane.b32.xlu1 %v4325_v39, %s3684_s4 }
0x12ec   :  { %v1660_v0 = vpop.f32.mrf.mxu0 }
0x12ed   :  { %v1661_v27 = vadd.f32 %v4321_v6, %v1660_v0 }
0x12ee   :  { %v3333_v29 = vpop.f32.mrf.mxu0 }
0x12ef   :  { %v2021_v59 = vpack.c.bf16 %v1661_v27, %v1661_v27 }
0x12f0   :  { %v1663_v63 = vpop.f32.mrf.mxu0 }
0x12f1   :  { %v2030_v33 = vshll.u32 %v2021_v59, 16  ;;  %v4401_v25 = vshrl.u32 %v2021_v59, 16 }
0x12f2   :  { %v3334_v4 = vpop.f32.mrf.mxu0 }
0x12f3   :  { %v2032_v34 = vrot.slane %v2030_v33, 1  ;;  %2038 = vrot.lane.b32.xlu0 %v4401_v25, %s3680_s28 }
0x12f5   :  { %v4406_v39 = vsel %vm718_vm9, %v2028_v8, %v2032_v34 }
0x12f6   :  { %2036 = vrot.lane.b32.xlu1 %v4406_v39, %s3680_s28 }
0x1339   :  { %v1763_v6 = vpop.xlane.xlu1 %1762 }
0x133a   :  { %3593 = vrcp.f32 %v1763_v6 }
0x133d   :  { %v1757_v35 = vpop.xlane.xlu1 %1756 }
0x133e   :  { %3595 = vrcp.f32 %v1757_v35 }
0x133f   :  { %v1760_v2 = vpop.xlane.xlu0 %1759 }
0x1340   :  { %3597 = vrcp.f32 %v1760_v2 }
0x1347   :  { %v3594_v37 = vpop.eup %3593 }
0x1348   :  { %v1769_v43 = vmul.f32 %v3594_v37, %v4382_v3 }
0x134a   :  { %v1771_v48 = vpack.c.bf16 %v1769_v43, %v1769_v43 }
0x134b   :  { %v3596_v40 = vpop.eup %3595 }
0x134c   :  { %v1767_v45 = vmul.f32 %v3596_v40, %v4386_v38 }
0x134d   :  { %v3598_v42 = vpop.eup %3597 }
0x134e   :  { %v1768_v51 = vmul.f32 %v3598_v42, %v3586_v11 }
0x134f   :  { %v1931_v23 = vpop.xlane.xlu1 %1930 }
0x1350   :  { %v1934_v28 = vpop.xlane.xlu0 %1933  ;;  %v1770_v46 = vpack.c.bf16 %v1768_v51, %v1767_v45 }
0x1351   :  { %3599 = vrcp.f32 %v1934_v28 }
0x1352   :  { %3347 = vmatprep.mubr.msk.bf16.mxu0 %vm425_vm7, %v1770_v46  ;;  %3601 = vrcp.f32 %v1931_v23 }
0x1353   :  { %v1944_v60 = vpop.permute.xlu1 %1943  ;;  %3348 = vmatmul.mubr.msk.bf16.vlgmr.msra.gmra.mxu0 %vm425_vm7, %v1771_v48 }
0x1354   :  { %3360 = vmatpush3.bf16.msra.mxu0 %v1955_v20  ;;  %v1928_v55 = vpop.xlane.xlu0 %1927 }
0x1355   :  { %3603 = vrcp.f32 %v1928_v55  ;;  %3361 = vmatprep.subr.bf16.mxu0 %v1944_v60 }
0x1358   :  { %3362 = vmatpush3.bf16.msra.mxu0 %v1944_v60 }
0x135e   :  { %v3600_v56 = vpop.eup %3599 }
0x135f   :  { %v3602_v61 = vpop.eup %3601  ;;  %v1940_v41 = vmul.f32 %v3600_v56, %v3590_v21 }
0x1360   :  { %v1939_v38 = vmul.f32 %v3602_v61, %v3588_v54 }
0x1361   :  { %v1942_v13 = vpack.c.bf16 %v1940_v41, %v1940_v41 }
0x1362   :  { %v3604_v3 = vpop.eup %3603 }
0x1363   :  { %v1938_v47 = vmul.f32 %v3604_v3, %v3592_v36 }
0x1365   :  { %v2039_v7 = vpop.permute.xlu0 %2038  ;;  %v1941_v52 = vpack.c.bf16 %v1939_v38, %v1938_v47 }
0x1366   :  { %v2050_v10 = vsel %vm361_vm5, %v2039_v7, 0  ;;  %3479 = vmatprep.subr.msk.bf16.mxu0 %vm361_vm5, %v2039_v7 }
0x1367   :  { %3363 = vmatprep.mubr.msk.bf16.mxu0 %vm425_vm7, %v1941_v52 }
0x1368   :  { %3364 = vmatmul.mubr.msk.bf16.vlgmr.msra.gmra.mxu0 %vm425_vm7, %v1942_v13  ;;  %v2037_v49 = vpop.permute.xlu1 %2036 }
0x1369   :  { %3368 = vmatpush3.bf16.xpose.msra.mxu0 %v2050_v10  ;;  %3371 = vmatprep.mubr.msk.bf16.mxu0 %vm361_vm5, %v4406_v39  ;;  %v2047_v22 = vsel %vm361_vm5, %v2037_v49, 0 }
0x136a   :  { %3480 = vmatprep.subr.msk.bf16.mxu0 %vm361_vm5, %v2037_v49 }
0x1371   :  { %3370 = vmatpush3.bf16.xpose.msra.mxu0 %v2047_v22 }
0x1378   :  { %3372 = vmatmul.mubr.msk.bf16.vlgmr.msra.gmra.mxu0 %vm361_vm5, %v4401_v25 }
0x1413   :  { %v3349_v11 = vpop.f32.mrf.mxu0 }
0x1414   :  { %1836 = vst.msk [vmem:[#allocation3 + $0x10] sm:$0x1] %vm529_vm11, %v3349_v11 }
0x1415   :  { %v1820_v12 = vpop.f32.mrf.mxu0 }
0x1416   :  { %1834 = vst.msk [vmem:[#allocation3] sm:$0xff] %vm361_vm5, %v1820_v12 }
0x1417   :  { %v3350_v14 = vpop.f32.mrf.mxu0 }
0x1419   :  { %v1823_v15 = vpop.f32.mrf.mxu0 }
0x141a   :  { %1835 = vst.msk [vmem:[#allocation3 + $0x8] sm:$0xff] %vm361_vm5, %v1823_v15 }
0x1428   :  { %v4427_v30 = vpop.f32.mrf.mxu0 }
0x142a   :  { %v4429_v16 = vpop.f32.mrf.mxu0 }
0x142c   :  { %v3366_v17 = vpop.f32.mrf.mxu0 }
0x142e   :  { %v4431_v18 = vpop.f32.mrf.mxu0 }
0x1438   :  { %v3373_v19 = vpop.f32.mrf.mxu0 }
0x1439   :  { %v2102_v24 = vmul.f32 0.25, %v3373_v19 }
0x143a   :  { %v2086_v20 = vpop.f32.mrf.mxu0 }
0x143b   :  { %v2100_v54 = vmul.f32 0.25, %v2086_v20  ;;  %v2109_v26 = vsel %vm432_vm8, %v2102_v24, -inf }
0x143c   :  { %v3374_v21 = vpop.f32.mrf.mxu0 }
0x143d   :  { %v2103_v44 = vsel %vm425_vm7, %v2100_v54, -inf }
0x143e   :  { %2104 = vmax.xlane.f32.xlu0 %v2103_v44  ;;  %v2089_v36 = vpop.f32.mrf.mxu0 }
0x143f   :  { %v2101_v58 = vmul.f32 0.25, %v2089_v36 }
0x1441   :  { %v2106_v0 = vsel %vm425_vm7, %v2101_v58, -inf }
0x1442   :  { %2110 = vmax.xlane.f32.xlu0 %v2109_v26  ;;  %2107 = vmax.xlane.f32.xlu1 %v2106_v0 }
0x1453   :  { %2140 = vrot.lane.b32.xlu1 %v4401_v25, %s3683_s0 }
0x14c7   :  { %v2105_v27 = vpop.xlane.xlu0 %2104 }
0x14c8   :  { %v2112_v29 = vsub.f32 %v2100_v54, %v2105_v27 }
0x14ca   :  { %v2115_v33 = vmul.f32 1.442695, %v2112_v29 }
0x14cb   :  { %v2111_v50 = vpop.xlane.xlu0 %2110  ;;  %v2108_v59 = vpop.xlane.xlu1 %2107 }
0x14cc   :  { %v2114_v63 = vsub.f32 %v2102_v24, %v2111_v50  ;;  %v2113_v31 = vsub.f32 %v2101_v58, %v2108_v59 }
0x14ce   :  { %v2119_v4 = vmul.f32 1.442695, %v2114_v63  ;;  %v2117_v8 = vmul.f32 1.442695, %v2113_v31 }
0x14cf   :  { %v2141_v34 = vpop.permute.xlu1 %2140 }
0x14d0   :  { %3605 = vpow2.f32 %v2119_v4  ;;  %v2150_v6 = vand.u32 %v2141_v34, %v3992_v32 }
0x14d1   :  { %3607 = vpow2.f32 %v2117_v8 }
0x14d2   :  { %3609 = vpow2.f32 %v2115_v33  ;;  %3375 = vmatprep.subr.bf16.mxu1 %v2150_v6 }
0x14d3   :  { %3376 = vmatpush3.bf16.msra.mxu1 %v2150_v6 }
0x14dd   :  { %v3606_v35 = vpop.eup %3605 }
0x14de   :  { %v3608_v2 = vpop.eup %3607  ;;  %v2127_v37 = vsel %vm432_vm8, %v3606_v35, 0.0 }
0x14df   :  { %v3610_v40 = vpop.eup %3609  ;;  %2128 = vadd.xlane.f32.xlu0 %v2127_v37  ;;  %v2124_v42 = vsel %vm425_vm7, %v3608_v2, 0.0 }
0x14e0   :  { %2125 = vadd.xlane.f32.xlu1 %v2124_v42  ;;  %v2121_v43 = vsel %vm425_vm7, %v3610_v40, 0.0 }
0x14e3   :  { %2122 = vadd.xlane.f32.xlu0 %v2121_v43 }
0x14f1   :  { %2209 = vrot.lane.b32.xlu1 %v4401_v25, %s3681_s26 }
0x14f5   :  { %2207 = vrot.lane.b32.xlu1 %v4406_v39, %s3681_s26 }
0x14f9   :  { %2205 = vrot.lane.b32.xlu1 %v4401_v25, %s3682_s29  ;;  %2138 = vrot.lane.b32.xlu0 %v4406_v39, %s3683_s0  ;;  %s3687_s0 = smov [#allocation4]  }
0x14fd   :  { %2203 = vrot.lane.b32.xlu0 %v4406_v39, %s3682_s29 }
0x1568   :  { %v2129_v45 = vpop.xlane.xlu0 %2128 }
0x1569   :  { %v2126_v51 = vpop.xlane.xlu1 %2125  ;;  %3611 = vrcp.f32 %v2129_v45 }
0x156a   :  { %3613 = vrcp.f32 %v2126_v51 }
0x156c   :  { %v2123_v23 = vpop.xlane.xlu0 %2122 }
0x156d   :  { %3615 = vrcp.f32 %v2123_v23  ;;  %v2210_v46 = vpop.permute.xlu1 %2209  ;;  %v3023_v23 = vld [vmem:[%s4703_s13 + $0x30] sm:$0xff] }
0x156e   :  { %v2221_v38 = vsel %vm361_vm5, %v2210_v46, 0 }
0x1570   :  { %v2139_v28 = vpop.permute.xlu0 %2138 }
0x1571   :  { %3377 = vmatprep.subr.bf16.mxu1 %v2139_v28  ;;  %v2208_v52 = vpop.permute.xlu1 %2207 }
0x1572   :  { %3378 = vmatpush3.bf16.msra.mxu1 %v2139_v28  ;;  %v2218_v10 = vsel %vm361_vm5, %v2208_v52, 0  ;;  %v3024_v28 = vld [vmem:[%s4703_s13 + $0x38] sm:$0xff] }
0x1573   :  { %3481 = vmatprep.subr.msk.bf16.mxu1 %vm361_vm5, %v2210_v46 }
0x1574   :  { %v2204_v7 = vpop.permute.xlu0 %2203 }
0x1575   :  { %v2206_v13 = vpop.permute.xlu1 %2205 }
0x1576   :  { %v3612_v48 = vpop.eup %3611 }
0x1577   :  { %v3614_v60 = vpop.eup %3613  ;;  %v2135_v56 = vmul.f32 %v3612_v48, %v3606_v35 }
0x1578   :  { %v2134_v3 = vmul.f32 %v3614_v60, %v3608_v2 }
0x1579   :  { %v2137_v47 = vpack.c.bf16 %v2135_v56, %v2135_v56 }
0x157a   :  { %v3616_v55 = vpop.eup %3615 }
0x157b   :  { %v2133_v61 = vmul.f32 %v3616_v55, %v3610_v40  ;;  %v2400_v55 = vpack.c.bf16 %v3024_v28, %v3023_v23 }
0x157d   :  { %v2136_v41 = vpack.c.bf16 %v2134_v3, %v2133_v61  ;;  %v3021_v61 = vld [vmem:[%s4703_s13 + $0x20] sm:$0xff]  ;;  %v3022_v3 = vld [vmem:[%s4703_s13 + $0x28] sm:$0xff] }
0x157f   :  { %3379 = vmatprep.mubr.msk.bf16.mxu1 %vm425_vm7, %v2136_v41  ;;  %v2399_v41 = vpack.c.bf16 %v3022_v3, %v3021_v61 }
0x1580   :  { %3380 = vmatmul.mubr.msk.bf16.vlgmr.msra.gmra.mxu1 %vm425_vm7, %v2137_v47 }
0x1581   :  { %3384 = vmatpush3.bf16.xpose.msra.mxu1 %v2221_v38  ;;  %3387 = vmatprep.mubr.msk.bf16.mxu1 %vm361_vm5, %v2204_v7 }
0x1582   :  { %3482 = vmatprep.subr.msk.bf16.mxu1 %vm361_vm5, %v2208_v52 }
0x1589   :  { %3386 = vmatpush3.bf16.xpose.msra.mxu1 %v2218_v10 }
0x158a   :  { %3415 = vmatprep.subr.bf16.mxu1 %v3678_v5 }
0x1590   :  { %3388 = vmatmul.mubr.msk.bf16.vlgmr.msra.gmra.mxu1 %vm361_vm5, %v2206_v13 }
0x1591   :  { %3419 = vmatprep.mubr.msk.bf16.mxu1 %vm3679_vm4, %v3678_v5 }
0x1640   :  { %v3381_v49 = vpop.f32.mrf.mxu1 }
0x1641   :  { %2202 = vst.msk [vmem:[#allocation3 + $0x21] sm:$0x1] %vm529_vm11, %v3381_v49 }
0x1642   :  { %v2186_v22 = vpop.f32.mrf.mxu1 }
0x1643   :  { %2200 = vst.msk [vmem:[#allocation3 + $0x11] sm:$0xff] %vm361_vm5, %v2186_v22 }
0x1644   :  { %v3382_v11 = vpop.f32.mrf.mxu1 }
0x1646   :  { %v2189_v12 = vpop.f32.mrf.mxu1 }
0x1647   :  { %2201 = vst.msk [vmem:[#allocation3 + $0x19] sm:$0xff] %vm361_vm5, %v2189_v12 }
0x1650   :  { %v3389_v14 = vpop.f32.mrf.mxu1 }
0x1651   :  { %v2273_v20 = vmul.f32 0.25, %v3389_v14 }
0x1652   :  { %v2257_v15 = vpop.f32.mrf.mxu1 }
0x1653   :  { %v2271_v17 = vmul.f32 0.25, %v2257_v15  ;;  %v2280_v44 = vsel %vm432_vm8, %v2273_v20, -inf }
0x1654   :  { %v3390_v19 = vpop.f32.mrf.mxu1 }
0x1655   :  { %v2274_v54 = vsel %vm425_vm7, %v2271_v17, -inf  ;;  %v4517_v19 = vld [vmem:[%s4704_s14 + $0x1] ss:$0 sm:$0xff] }
0x1656   :  { %2275 = vmax.xlane.f32.xlu0 %v2274_v54  ;;  %v2260_v21 = vpop.f32.mrf.mxu1 }
0x1657   :  { %v2272_v24 = vmul.f32 0.25, %v2260_v21 }
0x1659   :  { %v2277_v36 = vsel %vm425_vm7, %v2272_v24, -inf }
0x165a   :  { %2281 = vmax.xlane.f32.xlu0 %v2280_v44  ;;  %2278 = vmax.xlane.f32.xlu1 %v2277_v36 }
0x16df   :  { %v2276_v58 = vpop.xlane.xlu0 %2275 }
0x16e0   :  { %v2283_v26 = vsub.f32 %v2271_v17, %v2276_v58 }
0x16e2   :  { %v2286_v59 = vmul.f32 1.442695, %v2283_v26 }
0x16e3   :  { %v2282_v0 = vpop.xlane.xlu0 %2281  ;;  %v2279_v27 = vpop.xlane.xlu1 %2278 }
0x16e4   :  { %v2285_v29 = vsub.f32 %v2273_v20, %v2282_v0  ;;  %v2284_v50 = vsub.f32 %v2272_v24, %v2279_v27 }
0x16e6   :  { %v2290_v63 = vmul.f32 1.442695, %v2285_v29  ;;  %v2288_v31 = vmul.f32 1.442695, %v2284_v50 }
0x16e8   :  { %3617 = vpow2.f32 %v2290_v63 }
0x16e9   :  { %3619 = vpow2.f32 %v2288_v31 }
0x16ea   :  { %3621 = vpow2.f32 %v2286_v59 }
0x16f5   :  { %v3618_v33 = vpop.eup %3617 }
0x16f6   :  { %v3620_v4 = vpop.eup %3619  ;;  %v2298_v8 = vsel %vm432_vm8, %v3618_v33, 0.0 }
0x16f7   :  { %v3622_v34 = vpop.eup %3621  ;;  %2299 = vadd.xlane.f32.xlu0 %v2298_v8  ;;  %v2295_v6 = vsel %vm425_vm7, %v3620_v4, 0.0 }
0x16f8   :  { %2296 = vadd.xlane.f32.xlu1 %v2295_v6  ;;  %v2292_v35 = vsel %vm425_vm7, %v3622_v34, 0.0 }
0x16fb   :  { %2293 = vadd.xlane.f32.xlu0 %v2292_v35 }
0x1709   :  { %2311 = vrot.lane.b32.xlu1 %v4401_v25, %s3684_s4 }
0x170d   :  { %2008 = vrot.lane.b32.xlu1 %v4429_v16, %s3686_s30 }
0x1711   :  { %2010 = vrot.lane.b32.xlu1 %v4431_v18, %s3686_s30  ;;  %2309 = vrot.lane.b32.xlu0 %v4406_v39, %s3684_s4  ;;  %s2945_s4 = sshll.u32 %s3687_s0, 4  ;;  %s2946_s4 = int_to_ptr.vmem [resolvable:$true] %s2945_s4 }
0x1712   :  { %p3661_p1 = scmp.lt.s32.totalorder %s2946_s4, %s2946_s4 }
0x1715   :  { %2012 = vrot.lane.b32.xlu0 %v4427_v30, %s3686_s30 }
0x1780   :  { %v2300_v2 = vpop.xlane.xlu0 %2299 }
0x1781   :  { %v2297_v37 = vpop.xlane.xlu1 %2296  ;;  %3623 = vrcp.f32 %v2300_v2 }
0x1782   :  { %3625 = vrcp.f32 %v2297_v37 }
0x1784   :  { %v2294_v40 = vpop.xlane.xlu0 %2293 }
0x1785   :  { %3627 = vrcp.f32 %v2294_v40  ;;  %v2312_v42 = vpop.permute.xlu1 %2311 }
0x1786   :  { %v2321_v25 = vand.u32 %v2312_v42, %v3992_v32 }
0x1788   :  { %3391 = vmatprep.subr.bf16.mxu0 %v2321_v25  ;;  %v2310_v16 = vpop.permute.xlu0 %2309 }
0x1789   :  { %3392 = vmatpush3.bf16.msra.mxu0 %v2321_v25  ;;  %v2009_v43 = vpop.permute.xlu1 %2008 }
0x178a   :  { %2017 = vst.msk [vmem:[#allocation3] sm:$0xff] %vm711_vm12, %v2009_v43  ;;  %3393 = vmatprep.subr.bf16.mxu0 %v2310_v16 }
0x178c   :  { %v2013_v39 = vpop.permute.xlu0 %2012 }
0x178d   :  { %2019 = vst.msk [vmem:[#allocation3 + $0x10] sm:$0x1] %vm714_vm13, %v2013_v39  ;;  %3394 = vmatpush3.bf16.msra.mxu0 %v2310_v16  ;;  %v2011_v30 = vpop.permute.xlu1 %2010  ;;  %v3037_v16 = vld [vmem:[%s4707_s17 + $0x38] sm:$0xff]  ;;  %v3034_v39 = vld [vmem:[%s4707_s17 + $0x20] sm:$0xff] }
0x178e   :  { %2018 = vst.msk [vmem:[#allocation3 + $0x8] sm:$0xff] %vm711_vm12, %v2011_v30  ;;  %3399 = vmatprep.subr.bf16.mxu0 %v3678_v5  ;;  %v3624_v18 = vpop.eup %3623  ;;  %v3035_v30 = vld [vmem:[%s4707_s17 + $0x28] sm:$0xff] }
0x178f   :  { %v3626_v45 = vpop.eup %3625  ;;  %v2306_v32 = vmul.f32 %v3624_v18, %v3618_v33  ;;  %v2583_v18 = vpack.c.bf16 %v3035_v30, %v3034_v39  ;;  %v4625_v30 = vld [vmem:[%s4708_s18 + $0x1] ss:$0 sm:$0xff] }
0x1790   :  { %v2305_v48 = vmul.f32 %v3626_v45, %v3620_v4 }
0x1791   :  { %v2308_v56 = vpack.c.bf16 %v2306_v32, %v2306_v32  ;;  %v2386_v38 = vld [vmem:[#allocation3] sm:$0xff] }
0x1792   :  { %v3628_v51 = vpop.eup %3627 }
0x1793   :  { %v2304_v46 = vmul.f32 %v3628_v51, %v3622_v34 }
0x1795   :  { %v2307_v60 = vpack.c.bf16 %v2305_v48, %v2304_v46  ;;  %v2387_v47 = vld [vmem:[#allocation3 + $0x8] sm:$0xff] }
0x1796   :  { %v2396_v7 = vpack.c.bf16 %v2387_v47, %v2386_v38 }
0x1797   :  { %3395 = vmatprep.mubr.msk.bf16.mxu0 %vm425_vm7, %v2307_v60 }
0x1798   :  { %3396 = vmatmul.mubr.msk.bf16.vlgmr.msra.gmra.mxu0 %vm425_vm7, %v2308_v56 }
0x1799   :  { %3400 = vmatpush3.bf16.msra.mxu0 %v2400_v55  ;;  %3403 = vmatprep.mubr.msk.bf16.mxu0 %vm3679_vm4, %v3678_v5 }
0x179a   :  { %3401 = vmatprep.subr.bf16.mxu0 %v3678_v5 }
0x179d   :  { %3402 = vmatpush3.bf16.msra.mxu0 %v2399_v41 }
0x179e   :  { %3431 = vmatprep.subr.bf16.mxu0 %v3678_v5 }
0x17a0   :  { %3404 = vmatmul.mubr.msk.bf16.vlgmr.msra.gmra.mxu0 %vm168_vm3, %v2396_v7 }
0x17a1   :  { %3407 = vmatprep.mubr.msk.bf16.mxu0 %vm3679_vm4, %v3678_v5 }
0x1858   :  { %v4508_v52 = vpop.f32.mrf.mxu0 }
0x185a   :  { %v2357_v10 = vpop.f32.mrf.mxu0 }
0x185b   :  { %2374 = vrot.lane.b32.xlu1 %v2357_v10, %s3686_s30 }
0x185c   :  { %v3398_v13 = vpop.f32.mrf.mxu0 }
0x185e   :  { %v2360_v49 = vpop.f32.mrf.mxu0 }
0x185f   :  { %2376 = vrot.lane.b32.xlu0 %v2360_v49, %s3686_s30  ;;  %v4567_v49 = vld [vmem:[%s4705_s15 + $0x1] ss:$0 sm:$0xff] }
0x1860   :  { %v2444_v22 = vpop.f32.mrf.mxu0 }
0x1861   :  { %v2466_v17 = vadd.f32 %v2444_v22, %v4243_v53 }
0x1862   :  { %v3405_v11 = vpop.f32.mrf.mxu0 }
0x1863   :  { %v4521_v54 = vadd.f32 %v4517_v19, %v2466_v17 }
0x1864   :  { %v2447_v12 = vpop.f32.mrf.mxu0 }
0x1865   :  { %v2467_v15 = vadd.f32 %v2447_v12, %v4248_v57  ;;  %v2488_v24 = vsel %vm168_vm3, %v4521_v54, 0.0 }
0x1866   :  { %v3406_v14 = vpop.f32.mrf.mxu0 }
0x1867   :  { %v2480_v20 = vadd.f32 %v4517_v19, %v2467_v15  ;;  %v4573_v14 = vld [vmem:[%s4706_s16 + $0x1] ss:$0 sm:$0xff]  ;;  %s4726_s16 = sld [smem:[#allocation12_spill]] }
0x1869   :  { %v2491_v21 = vsel %vm168_vm3, %v2480_v20, 0.0 }
0x187e   :  { %2492 = vadd.xlane.f32.xlu0 %v2491_v21 }
0x187f   :  { %2489 = vadd.xlane.f32.xlu1 %v2488_v24  ;;  %v3049_v24 = vld [vmem:[%s4709_s19 + $0x70] sm:$0xff] }
0x18cd   :  { %v2375_v57 = vpop.permute.xlu1 %2374 }
0x18ce   :  { %2383 = vst.msk [vmem:[#allocation3 + $0x11] sm:$0xff] %vm711_vm12, %v2375_v57  ;;  %v3050_v57 = vld [vmem:[%s4709_s19 + $0x78] sm:$0xff] }
0x18d1   :  { %v2377_v53 = vpop.permute.xlu0 %2376 }
0x18d2   :  { %2384 = vst.msk [vmem:[#allocation3 + $0x19] sm:$0xff] %vm711_vm12, %v2377_v53  ;;  %v2718_v53 = vpack.c.bf16 %v3050_v57, %v3049_v24 }
0x18d4   :  { %3432 = vmatpush3.bf16.msra.mxu0 %v2718_v53 }
0x18d5   :  { %v2388_v44 = vld [vmem:[#allocation3 + $0x10] sm:$0xff]  ;;  %3433 = vmatprep.subr.bf16.mxu0 %v3678_v5 }
0x18d9   :  { %v2389_v36 = vld [vmem:[#allocation3 + $0x18] sm:$0xff] }
0x18da   :  { %v2397_v58 = vpack.c.bf16 %v2389_v36, %v2388_v44  ;;  %v3048_v44 = vld [vmem:[%s4709_s19 + $0x68] sm:$0xff] }
0x18dc   :  { %3408 = vmatmul.mubr.msk.bf16.gmra.mxu0 %vm168_vm3, %v2397_v58  ;;  %v3045_v58 = vld [vmem:[%s4709_s19 + $0x50] sm:$0xff] }
0x18dd   :  { %3411 = vmatprep.mubr.msk.bf16.mxu0 %vm3679_vm4, %v3678_v5 }
0x1907   :  { %v2493_v27 = vpop.xlane.xlu0 %2492 }
0x1908   :  { %v2490_v26 = vpop.xlane.xlu1 %2489  ;;  %v2504_v50 = vmul.f32 0.03125, %v2493_v27  ;;  %v3043_v27 = vld [vmem:[%s4709_s19 + $0x40] sm:$0xff] }
0x1909   :  { %v2503_v0 = vmul.f32 0.03125, %v2490_v26  ;;  %v3046_v26 = vld [vmem:[%s4709_s19 + $0x58] sm:$0xff] }
0x190a   :  { %v2509_v8 = vsub.f32 %v2480_v20, %v2504_v50 }
0x190b   :  { %v2508_v59 = vsub.f32 %v4521_v54, %v2503_v0  ;;  %v2716_v0 = vpack.c.bf16 %v3046_v26, %v3045_v58 }
0x190c   :  { %v2514_v42 = vmul.f32 %v2509_v8, %v2509_v8 }
0x190d   :  { %v2513_v35 = vmul.f32 %v2508_v59, %v2508_v59 }
0x190e   :  { %v2521_v25 = vsel %vm168_vm3, %v2514_v42, 0.0 }
0x199c   :  { %v2452_v29 = vpop.f32.mrf.mxu0 }
0x199d   :  { %v2468_v63 = vadd.f32 %v2452_v29, %v4256_v1  ;;  %v2518_v1 = vsel %vm168_vm3, %v2513_v35, 0.0  ;;  %v3044_v29 = vld [vmem:[%s4709_s19 + $0x48] sm:$0xff] }
0x199e   :  { %v3409_v31 = vpop.f32.mrf.mxu0  ;;  %v2715_v50 = vpack.c.bf16 %v3044_v29, %v3043_v27 }
0x199f   :  { %v4534_v33 = vadd.f32 %v4517_v19, %v2468_v63 }
0x19a0   :  { %v2455_v4 = vpop.f32.mrf.mxu0 }
0x19a1   :  { %v2469_v34 = vadd.f32 %v2455_v4, %v4262_v9  ;;  %v2494_v6 = vsel %vm168_vm3, %v4534_v33, 0.0  ;;  %v3036_v9 = vld [vmem:[%s4707_s17 + $0x30] sm:$0xff] }
0x19a2   :  { %2495 = vadd.xlane.f32.xlu0 %v2494_v6  ;;  %v3410_v2 = vpop.f32.mrf.mxu0  ;;  %v2584_v43 = vpack.c.bf16 %v3037_v16, %v3036_v9 }
0x19a3   :  { %v2482_v37 = vadd.f32 %v4517_v19, %v2469_v34 }
0x19a4   :  { %3416 = vmatpush3.bf16.msra.mxu1 %v2584_v43 }
0x19a5   :  { %v2497_v40 = vsel %vm168_vm3, %v2482_v37, 0.0  ;;  %3417 = vmatprep.subr.bf16.mxu1 %v3678_v5 }
0x19a6   :  { %2498 = vadd.xlane.f32.xlu1 %v2497_v40  ;;  %2519 = vadd.xlane.f32.xlu0 %v2518_v1 }
0x19a8   :  { %3418 = vmatpush3.bf16.msra.mxu1 %v2583_v18 }
0x19a9   :  { %3451 = vmatprep.subr.bf16.mxu1 %v3678_v5 }
0x19aa   :  { %2522 = vadd.xlane.f32.xlu1 %v2521_v25 }
0x1a2b   :  { %v2496_v45 = vpop.xlane.xlu0 %2495 }
0x1a2c   :  { %v2505_v51 = vmul.f32 0.03125, %v2496_v45 }
0x1a2e   :  { %v4558_v32 = vsub.f32 %v4534_v33, %v2505_v51 }
0x1a2f   :  { %v2520_v23 = vpop.xlane.xlu0 %2519  ;;  %v2499_v28 = vpop.xlane.xlu1 %2498 }
0x1a30   :  { %v2533_v46 = vmul.f32 0.03125, %v2520_v23  ;;  %v2506_v48 = vmul.f32 0.03125, %v2499_v28  ;;  %v2515_v60 = vmul.f32 %v4558_v32, %v4558_v32 }
0x1a32   :  { %v2538_v55 = vadd.f32 1e-06, %v2533_v46  ;;  %v2511_v56 = vsub.f32 %v2482_v37, %v2506_v48  ;;  %v2524_v61 = vsel %vm168_vm3, %v2515_v60, 0.0 }
0x1a33   :  { %2525 = vadd.xlane.f32.xlu0 %v2524_v61  ;;  %v2523_v3 = vpop.xlane.xlu1 %2522 }
0x1a34   :  { %3629 = vrsqrt.f32 %v2538_v55  ;;  %v2534_v41 = vmul.f32 0.03125, %v2523_v3  ;;  %v2516_v47 = vmul.f32 %v2511_v56, %v2511_v56 }
0x1a36   :  { %v2539_v38 = vadd.f32 1e-06, %v2534_v41  ;;  %v2527_v7 = vsel %vm168_vm3, %v2516_v47, 0.0 }
0x1a37   :  { %2528 = vadd.xlane.f32.xlu1 %v2527_v7 }
0x1a38   :  { %3631 = vrsqrt.f32 %v2539_v38 }
0x1a41   :  { %v3630_v10 = vpop.eup %3629 }
0x1a42   :  { %v2548_v13 = vmul.f32 %v3630_v10, %v2508_v59 }
0x1a44   :  { %v2559_v12 = vmul.f32 %v4567_v49, %v2548_v13 }
0x1a45   :  { %v3632_v22 = vpop.eup %3631 }
0x1a46   :  { %v2549_v11 = vmul.f32 %v3632_v22, %v2509_v8  ;;  %v2570_v17 = vadd.f32 %v4573_v14, %v2559_v12 }
0x1a48   :  { %v2560_v15 = vmul.f32 %v4567_v49, %v2549_v11 }
0x1a49   :  { %2378 = vrot.lane.b32.xlu0 %v4508_v52, %s3686_s30  ;;  %v3047_v52 = vld [vmem:[%s4709_s19 + $0x60] sm:$0xff] }
0x1a4a   :  { %v2571_v20 = vadd.f32 %v4573_v14, %v2560_v15  ;;  %v2717_v36 = vpack.c.bf16 %v3048_v44, %v3047_v52 }
0x1a4c   :  { %v2580_v21 = vpack.c.bf16 %v2571_v20, %v2570_v17  ;;  %3434 = vmatpush3.bf16.msra.mxu0 %v2717_v36 }
0x1a4d   :  { %3435 = vmatprep.subr.bf16.mxu0 %v3678_v5 }
0x1a4e   :  { %3420 = vmatmul.mubr.msk.bf16.vlgmr.msra.gmra.mxu1 %vm168_vm3, %v2580_v21 }
0x1a4f   :  { %3423 = vmatprep.mubr.msk.bf16.mxu1 %vm3679_vm4, %v3678_v5 }
0x1a50   :  { %3436 = vmatpush3.bf16.msra.mxu0 %v2716_v0 }
0x1a51   :  { %3437 = vmatprep.subr.bf16.mxu0 %v3678_v5 }
0x1a54   :  { %3438 = vmatpush3.bf16.msra.mxu0 %v2715_v50 }
0x1abc   :  { %v2526_v59 = vpop.xlane.xlu0 %2525 }
0x1abd   :  { %v2535_v63 = vmul.f32 0.03125, %v2526_v59 }
0x1abf   :  { %v2540_v31 = vadd.f32 1e-06, %v2535_v63 }
0x1ac0   :  { %v2379_v4 = vpop.permute.xlu0 %2378  ;;  %v2529_v8 = vpop.xlane.xlu1 %2528 }
0x1ac1   :  { %3633 = vrsqrt.f32 %v2540_v31  ;;  %2385 = vst.msk [vmem:[#allocation3 + $0x21] sm:$0x1] %vm714_vm13, %v2379_v4  ;;  %v2536_v34 = vmul.f32 0.03125, %v2529_v8 }
0x1ac3   :  { %v2541_v6 = vadd.f32 1e-06, %v2536_v34 }
0x1ac5   :  { %3635 = vrsqrt.f32 %v2541_v6 }
0x1ac8   :  { %v2390_v35 = vld [vmem:[#allocation3 + $0x20] sm:$0x3] }
0x1ac9   :  { %v2398_v2 = vpack.c.bf16 %v2390_v35, %v2390_v35 }
0x1acb   :  { %3412 = vmatmul.mubr.msk.bf16.gmra.mxu0 %vm168_vm3, %v2398_v2 }
0x1acc   :  { %3439 = vmatprep.mubr.msk.bf16.mxu0 %vm3679_vm4, %v3678_v5 }
0x1ace   :  { %v3634_v37 = vpop.eup %3633 }
0x1acf   :  { %v2550_v40 = vmul.f32 %v3634_v37, %v4558_v32 }
0x1ad1   :  { %v2561_v25 = vmul.f32 %v4567_v49, %v2550_v40 }
0x1ad2   :  { %v3636_v1 = vpop.eup %3635 }
0x1ad3   :  { %v2551_v42 = vmul.f32 %v3636_v1, %v2511_v56  ;;  %v2572_v16 = vadd.f32 %v4573_v14, %v2561_v25 }
0x1ad5   :  { %v2562_v9 = vmul.f32 %v4567_v49, %v2551_v42 }
0x1ad7   :  { %v2573_v43 = vadd.f32 %v4573_v14, %v2562_v9 }
0x1ad9   :  { %v2581_v39 = vpack.c.bf16 %v2573_v43, %v2572_v16 }
0x1adb   :  { %3424 = vmatmul.mubr.msk.bf16.gmra.mxu1 %vm168_vm3, %v2581_v39 }
0x1adc   :  { %3427 = vmatprep.mubr.msk.bf16.mxu1 %vm3679_vm4, %v3678_v5 }
0x1b0e   :  { %v2636_v18 = vpop.f32.mrf.mxu1 }
0x1b0f   :  { %v2637_v45 = vadd.f32 %v4625_v30, %v2636_v18 }
0x1b10   :  { %v3421_v51 = vpop.f32.mrf.mxu1 }
0x1b11   :  { %v2663_v32 = vmul.f32 0.044715, %v2637_v45  ;;  %v2658_v22 = vmul.f32 0.5, %v2637_v45 }
0x1b12   :  { %v2639_v23 = vpop.f32.mrf.mxu1 }
0x1b13   :  { %v2668_v28 = vmul.f32 %v2663_v32, %v2637_v45  ;;  %v2640_v46 = vadd.f32 %v4625_v30, %v2639_v23 }
0x1b14   :  { %v3422_v48 = vpop.f32.mrf.mxu1 }
0x1b15   :  { %v2673_v60 = vmul.f32 %v2668_v28, %v2637_v45  ;;  %v2664_v55 = vmul.f32 0.044715, %v2640_v46  ;;  %v2659_v11 = vmul.f32 0.5, %v2640_v46  ;;  %v3055_v48 = vld [vmem:[%s4710_s20 + $0x1] ss:$0 sm:$0xff] }
0x1b17   :  { %v2678_v56 = vadd.f32 %v2673_v60, %v2637_v45  ;;  %v2669_v61 = vmul.f32 %v2664_v55, %v2640_v46 }
0x1b19   :  { %v2683_v3 = vmul.f32 0.7978846, %v2678_v56  ;;  %v2674_v41 = vmul.f32 %v2669_v61, %v2640_v46 }
0x1b1b   :  { %3637 = vtanh.f32 %v2683_v3  ;;  %v2679_v47 = vadd.f32 %v2674_v41, %v2640_v46 }
0x1b1d   :  { %v2684_v38 = vmul.f32 0.7978846, %v2679_v47 }
0x1b1f   :  { %3639 = vtanh.f32 %v2684_v38 }
0x1b28   :  { %v3638_v7 = vpop.eup %3637 }
0x1b29   :  { %v2693_v10 = vadd.f32 1.0, %v3638_v7 }
0x1b2b   :  { %v2698_v15 = vmul.f32 %v2693_v10, %v2658_v22 }
0x1b2c   :  { %v3640_v13 = vpop.eup %3639 }
0x1b2d   :  { %v2694_v12 = vadd.f32 1.0, %v3640_v13 }
0x1b2f   :  { %v2699_v17 = vmul.f32 %v2694_v12, %v2659_v11 }
0x1b31   :  { %v2712_v20 = vpack.c.bf16 %v2699_v17, %v2698_v15 }
0x1b33   :  { %3440 = vmatmul.mubr.msk.bf16.vlgmr.msra.gmra.mxu0 %vm1409_vm14, %v2712_v20 }
0x1b34   :  { %3443 = vmatprep.mubr.msk.bf16.mxu0 %vm3679_vm4, %v3678_v5 }
0x1b8b   :  { %v2460_v21 = vpop.f32.mrf.mxu0 }
0x1b8c   :  { %v2470_v24 = vadd.f32 %v2460_v21, %v4349_v62 }
0x1b8d   :  { %v3413_v57 = vpop.f32.mrf.mxu0 }
0x1b8e   :  { %v2483_v53 = vadd.f32 %v4517_v19, %v2470_v24 }
0x1b8f   :  { %v2463_v52 = vpop.f32.mrf.mxu0 }
0x1b90   :  { %v2500_v44 = vsel %vm195_vm6, %v2483_v53, 0.0 }
0x1b91   :  { %v3414_v36 = vpop.f32.mrf.mxu0  ;;  %2501 = vadd.xlane.f32.xlu1 %v2500_v44  ;;  %v2797_v44 = vld [vmem:[%s4697_s7 + $0x10] sm:$0xff] }
0x1b92   :  { %v2798_v36 = vld [vmem:[%s4697_s7 + $0x18] sm:$0xff] }
0x1b9b   :  { %v2644_v58 = vpop.f32.mrf.mxu1 }
0x1b9c   :  { %v2645_v26 = vadd.f32 %v4625_v30, %v2644_v58  ;;  %v2817_v58 = vpack.c.bf16 %v2798_v36, %v2797_v44 }
0x1b9d   :  { %v3425_v0 = vpop.f32.mrf.mxu1 }
0x1b9e   :  { %v2665_v27 = vmul.f32 0.044715, %v2645_v26  ;;  %v2660_v1 = vmul.f32 0.5, %v2645_v26  ;;  %3452 = vmatpush3.bf16.msra.mxu1 %v2817_v58 }
0x1b9f   :  { %v2647_v29 = vpop.f32.mrf.mxu1  ;;  %3453 = vmatprep.subr.bf16.mxu1 %v3678_v5 }
0x1ba0   :  { %v2670_v50 = vmul.f32 %v2665_v27, %v2645_v26  ;;  %v2648_v59 = vadd.f32 %v4625_v30, %v2647_v29 }
0x1ba1   :  { %v3426_v63 = vpop.f32.mrf.mxu1 }
0x1ba2   :  { %v2675_v31 = vmul.f32 %v2670_v50, %v2645_v26  ;;  %v2666_v62 = vmul.f32 0.044715, %v2648_v59  ;;  %v2661_v42 = vmul.f32 0.5, %v2648_v59 }
0x1ba4   :  { %v2680_v4 = vadd.f32 %v2675_v31, %v2645_v26  ;;  %v2671_v8 = vmul.f32 %v2666_v62, %v2648_v59 }
0x1ba6   :  { %v2685_v19 = vmul.f32 0.7978846, %v2680_v4  ;;  %v2676_v34 = vmul.f32 %v2671_v8, %v2648_v59  ;;  %v2793_v8 = vld [vmem:[%s4726_s16] sm:$0x1] }
0x1ba8   :  { %3641 = vtanh.f32 %v2685_v19  ;;  %v2681_v6 = vadd.f32 %v2676_v34, %v2648_v59  ;;  %v2794_v34 = vld [vmem:[%s4696_s6] sm:$0x1] }
0x1baa   :  { %v2686_v35 = vmul.f32 0.7978846, %v2681_v6 }
0x1bac   :  { %3643 = vtanh.f32 %v2686_v35 }
0x1bb5   :  { %v3642_v2 = vpop.eup %3641 }
0x1bb6   :  { %v2695_v37 = vadd.f32 1.0, %v3642_v2 }
0x1bb8   :  { %v2700_v9 = vmul.f32 %v2695_v37, %v2660_v1 }
0x1bb9   :  { %v3644_v40 = vpop.eup %3643 }
0x1bba   :  { %v2696_v25 = vadd.f32 1.0, %v3644_v40 }
0x1bbc   :  { %v2701_v16 = vmul.f32 %v2696_v25, %v2661_v42 }
0x1bbe   :  { %v2713_v43 = vpack.c.bf16 %v2701_v16, %v2700_v9 }
0x1bc0   :  { %3444 = vmatmul.mubr.msk.bf16.gmra.mxu0 %vm1409_vm14, %v2713_v43 }
0x1bc1   :  { %3447 = vmatprep.mubr.msk.bf16.mxu0 %vm3679_vm4, %v3678_v5 }
0x1bf3   :  { %v2762_v39 = vpop.f32.mrf.mxu0 }
0x1bf4   :  { %v2781_v28 = vadd.f32 %v2762_v39, %v4521_v54 }
0x1bf5   :  { %v3441_v18 = vpop.f32.mrf.mxu0 }
0x1bf6   :  { %v2791_v55 = vadd.f32 %v3055_v48, %v2781_v28 }
0x1bf7   :  { %v2765_v45 = vpop.f32.mrf.mxu0 }
0x1bf8   :  { %v2800_v61 = vsel %vm153_vm1, %v2791_v55, 0.0 }
0x1bf9   :  { %v3442_v51 = vpop.f32.mrf.mxu0 }
0x1c1a   :  { %v2502_v32 = vpop.xlane.xlu1 %2501 }
0x1c1b   :  { %v2507_v23 = vmul.f32 0.03125, %v2502_v32 }
0x1c1d   :  { %v2512_v46 = vsub.f32 %v2483_v53, %v2507_v23 }
0x1c1f   :  { %v2517_v60 = vmul.f32 %v2512_v46, %v2512_v46 }
0x1c21   :  { %v2530_v56 = vsel %vm195_vm6, %v2517_v60, 0.0  ;;  %v2878_v60 = vlaneseq }
0x1c22   :  { %2531 = vadd.xlane.f32.xlu1 %v2530_v56 }
0x1c26   :  { %2801 = vadd.xlane.f32.xlu1 %v2800_v61 }
0x1c80   :  { %v2769_v3 = vpop.f32.mrf.mxu0 }
0x1c81   :  { %v2782_v41 = vadd.f32 %v2769_v3, %v4534_v33 }
0x1c82   :  { %v3445_v47 = vpop.f32.mrf.mxu0 }
0x1c83   :  { %v2792_v38 = vadd.f32 %v3055_v48, %v2782_v41 }
0x1c84   :  { %v2772_v54 = vpop.f32.mrf.mxu0 }
0x1c85   :  { %v2864_v7 = vsel %vm2863_vm15, %v2792_v38, 0.0 }
0x1c86   :  { %v3446_v10 = vpop.f32.mrf.mxu0  ;;  %2865 = vadd.xlane.f32.xlu1 %v2864_v7 }
0x1c87   :  { %v2799_v10 = vld [vmem:[%s4698_s8] sm:$0x1]  ;;  %s3656_s8 = scalar_lea.vmem %s2946_s4, 32 }
0x1c88   :  { %p3657_p0 = scmp.ne.s32.totalorder %s2946_s4, %s3656_s8  ;;  %p3662_p2 = scmp.lt.s32.totalorder %s3656_s8, %s3656_s8 }
0x1c8a   :  { %p3663_p3 = por %p3662_p2, %p3661_p1 }
0x1c8c   :  { %p3664_p4 = pnand %p3663_p3, %p3657_p0 }
0x1cab   :  { %v2532_v13 = vpop.xlane.xlu1 %2531 }
0x1cac   :  { %v2537_v22 = vmul.f32 0.03125, %v2532_v13 }
0x1cae   :  { %v2542_v11 = vadd.f32 1e-06, %v2537_v22 }
0x1caf   :  { %v2802_v12 = vpop.xlane.xlu1 %2801 }
0x1cb0   :  { %3645 = vrsqrt.f32 %v2542_v11  ;;  %v2803_v15 = vmul.f32 0.03125, %v2802_v12 }
0x1cb2   :  { %v2804_v17 = vsub.f32 %v2791_v55, %v2803_v15 }
0x1cb4   :  { %v2805_v20 = vmul.f32 %v2804_v17, %v2804_v17 }
0x1cb6   :  { %v2806_v21 = vsel %vm153_vm1, %v2805_v20, 0.0 }
0x1cb7   :  { %2807 = vadd.xlane.f32.xlu1 %v2806_v21 }
0x1cbd   :  { %v3646_v33 = vpop.eup %3645 }
0x1cbe   :  { %v2552_v24 = vmul.f32 %v3646_v33, %v2512_v46 }
0x1cc0   :  { %v2563_v57 = vmul.f32 %v4567_v49, %v2552_v24  ;;  %v2795_v49 = vld [vmem:[%s4697_s7] sm:$0xff] }
0x1cc2   :  { %v2574_v53 = vadd.f32 %v4573_v14, %v2563_v57  ;;  %v2796_v14 = vld [vmem:[%s4697_s7 + $0x8] sm:$0xff] }
0x1cc3   :  { %v2816_v26 = vpack.c.bf16 %v2796_v14, %v2795_v49 }
0x1cc4   :  { %v2582_v52 = vpack.c.bf16 %v2574_v53, %v2574_v53 }
0x1cc5   :  { %3454 = vmatpush3.bf16.msra.mxu1 %v2816_v26 }
0x1cc6   :  { %3428 = vmatmul.mubr.msk.bf16.gmra.mxu1 %vm168_vm3, %v2582_v52  ;;  %3459 = vmatprep.subr.bf16.mxu1 %v3678_v5 }
0x1cc7   :  { %3455 = vmatprep.mubr.msk.bf16.mxu1 %vm3679_vm4, %v3678_v5 }
0x1d0f   :  { %v2866_v0 = vpop.xlane.xlu1 %2865 }
0x1d10   :  { %v2867_v27 = vmul.f32 0.03125, %v2866_v0 }
0x1d12   :  { %v2868_v29 = vsub.f32 %v2792_v38, %v2867_v27 }
0x1d14   :  { %v2869_v50 = vmul.f32 %v2868_v29, %v2868_v29 }
0x1d16   :  { %v2870_v59 = vsel %vm2863_vm15, %v2869_v50, 0.0 }
0x1d17   :  { %2871 = vadd.xlane.f32.xlu1 %v2870_v59 }
0x1d40   :  { %v2808_v63 = vpop.xlane.xlu1 %2807 }
0x1d41   :  { %v2809_v31 = vmul.f32 0.03125, %v2808_v63 }
0x1d43   :  { %v2810_v62 = vadd.f32 1e-06, %v2809_v31 }
0x1d45   :  { %3647 = vrsqrt.f32 %v2810_v62 }
0x1d52   :  { %v3648_v4 = vpop.eup %3647 }
0x1d53   :  { %v2812_v19 = vmul.f32 %v3648_v4, %v2804_v17 }
0x1d55   :  { %v2813_v6 = vmul.f32 %v2812_v19, %v2793_v8 }
0x1d57   :  { %v2814_v35 = vadd.f32 %v2813_v6, %v2794_v34 }
0x1d59   :  { %v2815_v2 = vpack.c.bf16 %v2814_v35, %v2814_v35 }
0x1d5b   :  { %3456 = vmatmul.mubr.msk.bf16.vlgmr.msra.gmra.mxu1 %vm168_vm3, %v2815_v2 }
0x1d5c   :  { %3460 = vmatpush3.bf16.msra.mxu1 %v2817_v58  ;;  %3463 = vmatprep.mubr.msk.bf16.mxu1 %vm3679_vm4, %v3678_v5 }
0x1d5d   :  { %3461 = vmatprep.subr.bf16.mxu1 %v3678_v5 }
0x1d60   :  { %3462 = vmatpush3.bf16.msra.mxu1 %v2816_v26 }
0x1d86   :  { %v2652_v37 = vpop.f32.mrf.mxu1 }
0x1d87   :  { %v2653_v40 = vadd.f32 %v4625_v30, %v2652_v37  ;;  %v2879_v30 = vshrl.u32 %v2878_v60, 7 }
0x1d88   :  { %v3429_v1 = vpop.f32.mrf.mxu1 }
0x1d89   :  { %v2667_v42 = vmul.f32 0.044715, %v2653_v40  ;;  %v2662_v23 = vmul.f32 0.5, %v2653_v40  ;;  %v2880_v55 = vsub.s32 0, %v2879_v30 }
0x1d8a   :  { %v2655_v25 = vpop.f32.mrf.mxu1 }
0x1d8b   :  { %v2672_v9 = vmul.f32 %v2667_v42, %v2653_v40  ;;  %v2881_v56 = vrot.slane %v2793_v8, %v2880_v55  ;;  %v2888_v41 = vrot.slane %v2794_v34, %v2880_v55 }
0x1d8c   :  { %v3430_v16 = vpop.f32.mrf.mxu1 }
0x1d8d   :  { %v2677_v43 = vmul.f32 %v2672_v9, %v2653_v40 }
0x1d8f   :  { %v2682_v39 = vadd.f32 %v2677_v43, %v2653_v40 }
0x1d91   :  { %v2687_v18 = vmul.f32 0.7978846, %v2682_v39 }
0x1d93   :  { %3649 = vtanh.f32 %v2687_v18 }
0x1da0   :  { %v3650_v45 = vpop.eup %3649  ;;  %v2872_v51 = vpop.xlane.xlu1 %2871 }
0x1da1   :  { %v2873_v32 = vmul.f32 0.03125, %v2872_v51  ;;  %v2697_v28 = vadd.f32 1.0, %v3650_v45 }
0x1da3   :  { %v2874_v46 = vadd.f32 1e-06, %v2873_v32  ;;  %v2702_v5 = vmul.f32 %v2697_v28, %v2662_v23 }
0x1da5   :  { %3651 = vrsqrt.f32 %v2874_v46  ;;  %v2714_v48 = vpack.c.bf16 %v2702_v5, %v2702_v5 }
0x1da7   :  { %3448 = vmatmul.mubr.msk.bf16.gmra.mxu0 %vm1409_vm14, %v2714_v48 }
0x1db2   :  { %v3652_v61 = vpop.eup %3651 }
0x1db3   :  { %v2876_v3 = vmul.f32 %v3652_v61, %v2868_v29 }
0x1db5   :  { %v2883_v47 = vmul.f32 %v2881_v56, %v2876_v3 }
0x1db7   :  { %v2890_v38 = vadd.f32 %v2888_v41, %v2883_v47 }
0x1db9   :  { %v2891_v54 = vpack.c.bf16 %v2890_v38, %v2890_v38 }
0x1dbb   :  { %v2893_v7 = vshrl.u32 %v2891_v54, 16 }
0x1dbd   :  { %3464 = vmatmul.mubr.msk.bf16.vlgmr.msra.gmra.mxu1 %vm168_vm3, %v2893_v7 }
0x1e1b   :  { %v2855_v13 = vpop.f32.mrf.mxu1 }
0x1e1c   :  { %v2856_v22 = vadd.f32 %v2855_v13, %v2799_v10 }
0x1e1d   :  { %v3457_v11 = vpop.f32.mrf.mxu1 }
0x1e1e   :  { %2862 = vst.msk [vmem:[#allocation4] sm:$0x1] %vm2861_vm0, %v2856_v22 }
0x1e1f   :  { %v2858_v12 = vpop.f32.mrf.mxu1 }
0x1e21   :  { %v3458_v15 = vpop.f32.mrf.mxu1 }
0x1e67   :  { %v2776_v17 = vpop.f32.mrf.mxu0 }
0x1e69   :  { %v3449_v20 = vpop.f32.mrf.mxu0 }
0x1e6b   :  { %v2778_v21 = vpop.f32.mrf.mxu0 }
0x1e6d   :  { %v3450_v33 = vpop.f32.mrf.mxu0 }
0x1e7d   :  { %v2932_v24 = vpop.f32.mrf.mxu1 }
0x1e7e   :  { %v2933_v57 = vadd.f32 %v2932_v24, %v2799_v10 }
0x1e7f   :  { %v3465_v53 = vpop.f32.mrf.mxu1 }
0x1e80   :  { %2938 = vst.msk [vmem:[#allocation4 + $0x1] sm:$0x1] %vm2861_vm0, %v2933_v57 }
0x1e81   :  { %v2935_v52 = vpop.f32.mrf.mxu1 }
0x1e82   :  { %3667 = shalt.err (!%p3664_p4)
}
0x1e83   :  { %2948 = dma.vmem_to_hbm [thread:$0]  %s2946_s4, 32, %s4711_s21, [#allocation5]   ;;  %v3466_v44 = vpop.f32.mrf.mxu1 }
0x1e84   :  { %3676 = dma.done.wait [#allocation5], 32  }
0x1e85   :  { %3677 = vsyncadd [#allocation5], 4294967264 }
0x1e86   :  { %2952 = vsyncpa [#allocation5], 1 }

</bundles_post_ra>
